<compile_context>
chip_gen: v7x
topology: tpu7x:2x2x1
jax: 0.10.0
libtpu: 0.0.40
codegen_flags: <defaults>
</compile_context>

<pallas_src>
import functools

import jax
import jax.numpy as jnp
from jax import lax
from jax.experimental import pallas as pl


# ----------------------------------------------------------------------------
# In-kernel helpers (traced Python; all of this runs inside the single kernel)
# ----------------------------------------------------------------------------
def _sigmoid(x):
    return 1.0 / (1.0 + jnp.exp(-x))


def _bigru_steps(gi_steps, w_hh, b_hh, H):
    """Direction-fused bidirectional GRU recurrence (nn.GRU semantics, zero init).

    gi_steps : list (length T) of (Bt, 6H) hoisted input projections (b_ih included),
               columns packed as [fwd r|z|n | bwd r|z|n].
    w_hh     : (2H, 6H) block-diagonal recurrent weight ([h_f|h_b] -> both gate sets).
    b_hh     : (1, 6H).
    Returns (ys, h_f, h_b): ys[t] = (Bt, 2H) output at time t; h_f/h_b final hiddens.
    """
    T = len(gi_steps)
    Bt = gi_steps[0].shape[0]
    h_f = jnp.zeros((Bt, H), jnp.float32)
    h_b = jnp.zeros((Bt, H), jnp.float32)
    y_f = [None] * T
    y_b = [None] * T
    for t in range(T):                       # static T, fully unrolled
        # One fused recurrent matmul per step for BOTH directions (halves the serial
        # chain vs. one grid step per direction on single-TC v5e/v6e).
        gh = jnp.dot(jnp.concatenate([h_f, h_b], axis=-1), w_hh,
                     preferred_element_type=jnp.float32) + b_hh          # (Bt, 6H)
        gi_f = gi_steps[t]                   # forward walks t = 0 .. T-1
        gi_b = gi_steps[T - 1 - t]           # backward walks reversed time
        r_f = _sigmoid(gi_f[:, 0:H] + gh[:, 0:H])
        z_f = _sigmoid(gi_f[:, H:2 * H] + gh[:, H:2 * H])
        n_f = jnp.tanh(gi_f[:, 2 * H:3 * H] + r_f * gh[:, 2 * H:3 * H])
        h_f = (1.0 - z_f) * n_f + z_f * h_f
        r_b = _sigmoid(gi_b[:, 3 * H:4 * H] + gh[:, 3 * H:4 * H])
        z_b = _sigmoid(gi_b[:, 4 * H:5 * H] + gh[:, 4 * H:5 * H])
        n_b = jnp.tanh(gi_b[:, 5 * H:6 * H] + r_b * gh[:, 5 * H:6 * H])
        h_b = (1.0 - z_b) * n_b + z_b * h_b
        y_f[t] = h_f                         # fwd hidden belongs to time t
        y_b[T - 1 - t] = h_b                 # bwd hidden belongs to time T-1-t
    ys = [jnp.concatenate([y_f[t], y_b[t]], axis=-1) for t in range(T)]
    return ys, h_f, h_b


def _take_rows(y_flat, T, stride, col):
    """(T, D) matrix whose row t is y_flat[t*stride + col], via a one-hot selection
    matmul (robust TPU layout change: no strided sublane slicing / transposes)."""
    n = y_flat.shape[0]
    ri = lax.broadcasted_iota(jnp.int32, (T, n), 0)
    ci = lax.broadcasted_iota(jnp.int32, (T, n), 1)
    sel = (ci == ri * stride + col).astype(jnp.float32)
    return jnp.dot(sel, y_flat, preferred_element_type=jnp.float32)


def _spread_step(gi_cat, t, T, B, Bp):
    """(Bp, 6H) step-t GRU input whose row b (< B) is gi_cat[b*T + t] (rest zero)."""
    n = gi_cat.shape[0]
    ri = lax.broadcasted_iota(jnp.int32, (Bp, n), 0)
    ci = lax.broadcasted_iota(jnp.int32, (Bp, n), 1)
    sel = jnp.where((ci == ri * T + t) & (ri < B), 1.0, 0.0)
    return jnp.dot(sel, gi_cat, preferred_element_type=jnp.float32)


def _bidaf_single(p, q, w_p, w_q, w_pq):
    """BIDAF attention for one batch element, returning the fused concat slab.

    p: (Tp, D), q: (Tq, D); w_p/w_q/w_pq: (1, D) splits of the (1, 3D) similarity
    Linear (no bias).  Returns (Tp, 4D) = [p, c2q, p*c2q, p*q2c] (4D = 128 lanes).
    """
    a_p = lax.dot_general(p, w_p, (((1,), (1,)), ((), ())),
                          preferred_element_type=jnp.float32)             # (Tp, 1)
    a_q = lax.dot_general(w_q, q, (((1,), (1,)), ((), ())),
                          preferred_element_type=jnp.float32)             # (1, Tq)
    s = lax.dot_general(p * w_pq, q, (((1,), (1,)), ((), ())),
                        preferred_element_type=jnp.float32) + a_p + a_q   # (Tp, Tq)
    # c2q: softmax over Tq (torch dim=1); exact divide (review note on approx recip).
    m1 = jnp.max(s, axis=-1, keepdims=True)
    e = jnp.exp(s - m1)
    probs = e / jnp.sum(e, axis=-1, keepdims=True)
    c2q = jnp.dot(probs, q, preferred_element_type=jnp.float32)           # (Tp, D)
    # q2c: max over Tq, softmax over Tp (torch dim=0), weighted sum of p rows.
    em = jnp.exp(m1 - jnp.max(m1, axis=0, keepdims=True))
    alpha = em / jnp.sum(em, axis=0, keepdims=True)                       # (Tp, 1)
    q2c = jnp.sum(alpha * p, axis=0, keepdims=True)                       # (1, D)
    return jnp.concatenate([p, c2q, p * c2q, p * q2c], axis=-1)           # (Tp, 4D)


# ----------------------------------------------------------------------------
# The single fused Encoder kernel
# ----------------------------------------------------------------------------
def _encoder_kernel(p_emb_ref, q_emb_ref,
                    r1_wih_ref, r1_whh_ref, r1_bih_ref, r1_bhh_ref,
                    wp_ref, wq_ref, wpq_ref,
                    br_wih_ref, br_whh_ref, br_bih_ref, br_bhh_ref,
                    p_out_ref, p_hn_ref,
                    *, Tp, Tq, B, Bp, H):
    """Whole Encoder.forward in one kernel (all intermediates stay in VMEM/vregs).

    p_emb_ref : (Tp*Bp, Din)   q_emb_ref : (Tq*Bp, Din)   (batch padded to Bp)
    r1_*      : rnn_1 packed weights   wih (Din, 6H), whh (2H, 6H), b* (1, 6H)
    w*_ref    : (1, D) splits of the BIDAF similarity Linear (D = 2H = rnn_size)
    br_*      : BIDAF_rnn packed weights   wih (4D, 6H), whh (2H, 6H), b* (1, 6H)
    p_out_ref : (Tp, B, 2H)    p_hn_ref : (2, B, H)
    """
    # ---- Stage 1: rnn_1 over p and q.  Hoisted input projection (one MXU matmul per
    #      input for all time steps / gates / directions); when Tp == Tq the two
    #      inputs share a single recurrence by stacking along the batch rows (exact:
    #      GRU treats batch rows independently).
    gi_p = jnp.dot(p_emb_ref[...], r1_wih_ref[...],
                   preferred_element_type=jnp.float32) + r1_bih_ref[...]   # (Tp*Bp, 6H)
    gi_q = jnp.dot(q_emb_ref[...], r1_wih_ref[...],
                   preferred_element_type=jnp.float32) + r1_bih_ref[...]   # (Tq*Bp, 6H)
    r1_whh = r1_whh_ref[...]
    r1_bhh = r1_bhh_ref[...]

    if Tp == Tq:
        gi_steps = [jnp.concatenate([gi_p[t * Bp:(t + 1) * Bp],
                                     gi_q[t * Bp:(t + 1) * Bp]], axis=0)
                    for t in range(Tp)]                                    # (2Bp, 6H)
        ys1, _, _ = _bigru_steps(gi_steps, r1_whh, r1_bhh, H)
        y_flat = jnp.concatenate(ys1, axis=0)          # (Tp*2Bp, 2H), row = t*2Bp + i
        p_of = lambda b: _take_rows(y_flat, Tp, 2 * Bp, b)
        q_of = lambda b: _take_rows(y_flat, Tq, 2 * Bp, Bp + b)
    else:
        ys_p, _, _ = _bigru_steps([gi_p[t * Bp:(t + 1) * Bp] for t in range(Tp)],
                                  r1_whh, r1_bhh, H)
        ys_q, _, _ = _bigru_steps([gi_q[t * Bp:(t + 1) * Bp] for t in range(Tq)],
                                  r1_whh, r1_bhh, H)
        yp_flat = jnp.concatenate(ys_p, axis=0)
        yq_flat = jnp.concatenate(ys_q, axis=0)
        p_of = lambda b: _take_rows(yp_flat, Tp, Bp, b)
        q_of = lambda b: _take_rows(yq_flat, Tq, Bp, b)

    # nn.Dropout(p=0.0) is the identity -> nothing to do.

    # ---- Stage 2: BIDAF attention + fused 4-way concat, immediately consumed by the
    #      hoisted BIDAF_rnn input projection (per real batch element; B is static).
    w_p, w_q, w_pq = wp_ref[...], wq_ref[...], wpq_ref[...]
    br_wih, br_bih = br_wih_ref[...], br_bih_ref[...]
    gi3_per_b = []
    for b in range(B):
        slab = _bidaf_single(p_of(b), q_of(b), w_p, w_q, w_pq)             # (Tp, 4D)
        gi3_per_b.append(
            jnp.dot(slab, br_wih, preferred_element_type=jnp.float32) + br_bih)
    gi3_cat = jnp.concatenate(gi3_per_b, axis=0)                           # (B*Tp, 6H)

    # ---- Stage 3: BIDAF_rnn (directions fused, same recurrence helper).
    gi3_steps = [_spread_step(gi3_cat, t, Tp, B, Bp) for t in range(Tp)]   # (Bp, 6H)
    ys3, hf3, hb3 = _bigru_steps(gi3_steps, br_whh_ref[...], br_bhh_ref[...], H)

    # Single dense writebacks (no per-step masked stores).
    p_out_ref[...] = jnp.stack(ys3, axis=0)[:, :B, :]                      # (Tp, B, 2H)
    p_hn_ref[...] = jnp.stack([hf3[:B], hb3[:B]], axis=0)                  # (2, B, H)


# ----------------------------------------------------------------------------
# Wrapper: embedding lookup (XLA) + one pallas_call
# ----------------------------------------------------------------------------
def encoder_forward(packed, p_batch, q_batch):
    """Encoder.forward.  Returns (p_outputs: (Tp, B, 2H), p_hn: (2, B, H))."""
    emb = packed["embedding"]
    Tp, B = p_batch.shape
    Tq, _ = q_batch.shape
    H = packed["rnn_1"]["whh"].shape[0] // 2
    Bp = ((B + 7) // 8) * 8      # pad batch to a sublane multiple -> aligned slices

    # TODO(synk): embedding gather left to XLA take; a scalar-prefetch DMA-gather
    # kernel is not worth an extra launch at this size.  Padded batch columns use
    # PAD=0 ids (zero embedding row) and are dropped inside the kernel.
    p_tok = jnp.pad(p_batch, ((0, 0), (0, Bp - B))).reshape(-1)
    q_tok = jnp.pad(q_batch, ((0, 0), (0, Bp - B))).reshape(-1)
    p_emb = jnp.take(emb, p_tok, axis=0).astype(jnp.float32)     # (Tp*Bp, Din)
    q_emb = jnp.take(emb, q_tok, axis=0).astype(jnp.float32)     # (Tq*Bp, Din)

    r1, br = packed["rnn_1"], packed["bidaf_rnn"]
    kernel = functools.partial(_encoder_kernel, Tp=Tp, Tq=Tq, B=B, Bp=Bp, H=H)
    # Single launch, no grid: the whole problem (< 200 KiB of weights + activations)
    # is VMEM-resident on every TPU generation (incl. v7x's 64 MiB).
    # TODO(synk): for large batches, grid over batch with
    # dimension_semantics=("parallel",) so v7x's second TensorCore is used.
    p_out, p_hn = pl.pallas_call(
        kernel,
        out_shape=(jax.ShapeDtypeStruct((Tp, B, 2 * H), jnp.float32),
                   jax.ShapeDtypeStruct((2, B, H), jnp.float32)),
    )(p_emb, q_emb,
      r1["wih"], r1["whh"], r1["bih"], r1["bhh"],
      packed["w_p"], packed["w_q"], packed["w_pq"],
      br["wih"], br["whh"], br["bih"], br["bhh"])
    return p_out, p_hn


# ----------------------------------------------------------------------------
# Parameters: PyTorch-layout init + one-time packing into the kernel layout
# ----------------------------------------------------------------------------
def init_params(key, vocab, word_vec_size, hidden_size, rnn_size, pad_idx=0):
    """Deterministic PyTorch-like init (uniform(-1/sqrt(H), 1/sqrt(H)))."""
    H, D = hidden_size, rnn_size
    s = 1.0 / (H ** 0.5)

    def u(k, shape, scale):
        return jax.random.uniform(k, shape, jnp.float32, -scale, scale)

    def gru_params(kbase, d_in):
        ks = jax.random.split(kbase, 8)
        return {
            "w_ih_f": u(ks[0], (3 * H, d_in), s),
            "w_hh_f": u(ks[1], (3 * H, H), s),
            "b_ih_f": u(ks[2], (3 * H,), s),
            "b_hh_f": u(ks[3], (3 * H,), s),
            "w_ih_b": u(ks[4], (3 * H, d_in), s),
            "w_hh_b": u(ks[5], (3 * H, H), s),
            "b_ih_b": u(ks[6], (3 * H,), s),
            "b_hh_b": u(ks[7], (3 * H,), s),
        }

    k_emb, k_r1, k_br, k_sim = jax.random.split(key, 4)
    emb = jax.random.normal(k_emb, (vocab, word_vec_size), jnp.float32) * 0.1
    emb = emb.at[pad_idx].set(0.0)   # nn.Embedding padding_idx row is zero

    return {
        "embedding": emb,
        "rnn_1": gru_params(k_r1, word_vec_size),
        "bidaf_rnn": gru_params(k_br, 4 * D),
        "w_sim": u(k_sim, (1, 3 * D), 1.0 / ((3 * D) ** 0.5)),
    }


def pack_params(params):
    """One-time packing of PyTorch-layout parameters into the kernel layout
    (done once OUTSIDE the jitted forward; weights never change per call)."""
    H = params["rnn_1"]["w_hh_f"].shape[1]
    D = 2 * H

    def pack_gru(g):
        # Gates packed per direction as [r | z | n]; directions fused along columns.
        wih = jnp.concatenate([g["w_ih_f"].T, g["w_ih_b"].T], axis=1)    # (Din, 6H)
        whh = jnp.zeros((2 * H, 6 * H), jnp.float32)                     # block-diag
        whh = whh.at[:H, :3 * H].set(g["w_hh_f"].T)
        whh = whh.at[H:, 3 * H:].set(g["w_hh_b"].T)
        bih = jnp.concatenate([g["b_ih_f"], g["b_ih_b"]]).reshape(1, 6 * H)
        bhh = jnp.concatenate([g["b_hh_f"], g["b_hh_b"]]).reshape(1, 6 * H)
        return {"wih": wih, "whh": whh, "bih": bih, "bhh": bhh}

    w_sim = params["w_sim"][0]                                           # (3D,)
    return {
        "embedding": params["embedding"],
        "rnn_1": pack_gru(params["rnn_1"]),
        "bidaf_rnn": pack_gru(params["bidaf_rnn"]),
        "w_p": w_sim[:D].reshape(1, D),
        "w_q": w_sim[D:2 * D].reshape(1, D),
        "w_pq": w_sim[2 * D:].reshape(1, D),
    }


if __name__ == "__main__":
    # opt: layers=1, brnn=True, rnn_size=32, word_vec_size=32, dropout=0.0, PAD=0
    vocab, word_vec_size, rnn_size = 50, 32, 32
    hidden_size = rnn_size // 2
    Tp, Tq, B = 8, 8, 2

    key = jax.random.PRNGKey(0)
    k_params, k_p, k_q = jax.random.split(key, 3)
    params = init_params(k_params, vocab, word_vec_size, hidden_size, rnn_size)
    packed = pack_params(params)                 # one-time weight packing

    p_batch = jax.random.randint(k_p, (Tp, B), 1, vocab)   # (Tp, B) token ids
    q_batch = jax.random.randint(k_q, (Tq, B), 1, vocab)   # (Tq, B) token ids

    fwd = jax.jit(encoder_forward)
    p_outputs, p_hn = fwd(packed, p_batch, q_batch)
    jax.block_until_ready((p_outputs, p_hn))

    assert p_outputs.shape == (Tp, B, rnn_size)
    assert p_hn.shape == (2, B, hidden_size)
    assert bool(jnp.all(jnp.isfinite(p_outputs))) and bool(jnp.all(jnp.isfinite(p_hn)))
    print("KERNEL_OK")
</pallas_src>

<mosaic_0001>
module attributes {stable_mosaic.version = 11 : i64} {
  func.func @_encoder_kernel(%arg0: memref<64x32xf32, #tpu.memory_space<vmem>>, %arg1: memref<64x32xf32, #tpu.memory_space<vmem>>, %arg2: memref<32x96xf32, #tpu.memory_space<vmem>>, %arg3: memref<32x96xf32, #tpu.memory_space<vmem>>, %arg4: memref<1x96xf32, #tpu.memory_space<vmem>>, %arg5: memref<1x96xf32, #tpu.memory_space<vmem>>, %arg6: memref<1x32xf32, #tpu.memory_space<vmem>>, %arg7: memref<1x32xf32, #tpu.memory_space<vmem>>, %arg8: memref<1x32xf32, #tpu.memory_space<vmem>>, %arg9: memref<128x96xf32, #tpu.memory_space<vmem>>, %arg10: memref<32x96xf32, #tpu.memory_space<vmem>>, %arg11: memref<1x96xf32, #tpu.memory_space<vmem>>, %arg12: memref<1x96xf32, #tpu.memory_space<vmem>>, %arg13: memref<8x2x32xf32, #tpu.memory_space<vmem>>, %arg14: memref<2x2x16xf32, #tpu.memory_space<vmem>>) attributes {dimension_semantics = [], scalar_prefetch = 0 : i64, scratch_operands = 0 : i64, tpu.core_type = #tpu.core_type<tc>} {
    %c0 = arith.constant 0 : index
    %c0_0 = arith.constant 0 : index
    %0 = vector.load %arg0[%c0, %c0_0] : memref<64x32xf32, #tpu.memory_space<vmem>>, vector<64x32xf32>
    %c0_1 = arith.constant 0 : index
    %c0_2 = arith.constant 0 : index
    %1 = vector.load %arg2[%c0_1, %c0_2] : memref<32x96xf32, #tpu.memory_space<vmem>>, vector<32x96xf32>
    %cst = arith.constant dense<0.000000e+00> : vector<64x96xf32>
    %2 = tpu.matmul %0, %1, %cst {dimension_numbers = #tpu.dot_dimension_numbers<[1], [0], [0], [1], [0, 0, 1, 1], [], []>} : vector<64x32xf32>, vector<32x96xf32>, vector<64x96xf32> -> vector<64x96xf32>
    %c0_3 = arith.constant 0 : index
    %c0_4 = arith.constant 0 : index
    %3 = vector.load %arg4[%c0_3, %c0_4] : memref<1x96xf32, #tpu.memory_space<vmem>>, vector<1x96xf32>
    %4 = vector.broadcast %3 : vector<1x96xf32> to vector<64x96xf32>
    %5 = arith.addf %2, %4 : vector<64x96xf32>
    %c0_5 = arith.constant 0 : index
    %c0_6 = arith.constant 0 : index
    %6 = vector.load %arg1[%c0_5, %c0_6] : memref<64x32xf32, #tpu.memory_space<vmem>>, vector<64x32xf32>
    %c0_7 = arith.constant 0 : index
    %c0_8 = arith.constant 0 : index
    %7 = vector.load %arg2[%c0_7, %c0_8] : memref<32x96xf32, #tpu.memory_space<vmem>>, vector<32x96xf32>
    %cst_9 = arith.constant dense<0.000000e+00> : vector<64x96xf32>
    %8 = tpu.matmul %6, %7, %cst_9 {dimension_numbers = #tpu.dot_dimension_numbers<[1], [0], [0], [1], [0, 0, 1, 1], [], []>} : vector<64x32xf32>, vector<32x96xf32>, vector<64x96xf32> -> vector<64x96xf32>
    %c0_10 = arith.constant 0 : index
    %c0_11 = arith.constant 0 : index
    %9 = vector.load %arg4[%c0_10, %c0_11] : memref<1x96xf32, #tpu.memory_space<vmem>>, vector<1x96xf32>
    %10 = vector.broadcast %9 : vector<1x96xf32> to vector<64x96xf32>
    %11 = arith.addf %8, %10 : vector<64x96xf32>
    %c0_12 = arith.constant 0 : index
    %c0_13 = arith.constant 0 : index
    %12 = vector.load %arg3[%c0_12, %c0_13] : memref<32x96xf32, #tpu.memory_space<vmem>>, vector<32x96xf32>
    %c0_14 = arith.constant 0 : index
    %c0_15 = arith.constant 0 : index
    %13 = vector.load %arg5[%c0_14, %c0_15] : memref<1x96xf32, #tpu.memory_space<vmem>>, vector<1x96xf32>
    %14 = vector.extract_strided_slice %5 {offsets = [0, 0], sizes = [8, 96], strides = [1, 1]} : vector<64x96xf32> to vector<8x96xf32>
    %15 = vector.extract_strided_slice %11 {offsets = [0, 0], sizes = [8, 96], strides = [1, 1]} : vector<64x96xf32> to vector<8x96xf32>
    %16 = tpu.concatenate %14, %15 in 0 : vector<8x96xf32>, vector<8x96xf32> -> vector<16x96xf32>
    %17 = vector.extract_strided_slice %5 {offsets = [8, 0], sizes = [8, 96], strides = [1, 1]} : vector<64x96xf32> to vector<8x96xf32>
    %18 = vector.extract_strided_slice %11 {offsets = [8, 0], sizes = [8, 96], strides = [1, 1]} : vector<64x96xf32> to vector<8x96xf32>
    %19 = tpu.concatenate %17, %18 in 0 : vector<8x96xf32>, vector<8x96xf32> -> vector<16x96xf32>
    %20 = vector.extract_strided_slice %5 {offsets = [16, 0], sizes = [8, 96], strides = [1, 1]} : vector<64x96xf32> to vector<8x96xf32>
    %21 = vector.extract_strided_slice %11 {offsets = [16, 0], sizes = [8, 96], strides = [1, 1]} : vector<64x96xf32> to vector<8x96xf32>
    %22 = tpu.concatenate %20, %21 in 0 : vector<8x96xf32>, vector<8x96xf32> -> vector<16x96xf32>
    %23 = vector.extract_strided_slice %5 {offsets = [24, 0], sizes = [8, 96], strides = [1, 1]} : vector<64x96xf32> to vector<8x96xf32>
    %24 = vector.extract_strided_slice %11 {offsets = [24, 0], sizes = [8, 96], strides = [1, 1]} : vector<64x96xf32> to vector<8x96xf32>
    %25 = tpu.concatenate %23, %24 in 0 : vector<8x96xf32>, vector<8x96xf32> -> vector<16x96xf32>
    %26 = vector.extract_strided_slice %5 {offsets = [32, 0], sizes = [8, 96], strides = [1, 1]} : vector<64x96xf32> to vector<8x96xf32>
    %27 = vector.extract_strided_slice %11 {offsets = [32, 0], sizes = [8, 96], strides = [1, 1]} : vector<64x96xf32> to vector<8x96xf32>
    %28 = tpu.concatenate %26, %27 in 0 : vector<8x96xf32>, vector<8x96xf32> -> vector<16x96xf32>
    %29 = vector.extract_strided_slice %5 {offsets = [40, 0], sizes = [8, 96], strides = [1, 1]} : vector<64x96xf32> to vector<8x96xf32>
    %30 = vector.extract_strided_slice %11 {offsets = [40, 0], sizes = [8, 96], strides = [1, 1]} : vector<64x96xf32> to vector<8x96xf32>
    %31 = tpu.concatenate %29, %30 in 0 : vector<8x96xf32>, vector<8x96xf32> -> vector<16x96xf32>
    %32 = vector.extract_strided_slice %5 {offsets = [48, 0], sizes = [8, 96], strides = [1, 1]} : vector<64x96xf32> to vector<8x96xf32>
    %33 = vector.extract_strided_slice %11 {offsets = [48, 0], sizes = [8, 96], strides = [1, 1]} : vector<64x96xf32> to vector<8x96xf32>
    %34 = tpu.concatenate %32, %33 in 0 : vector<8x96xf32>, vector<8x96xf32> -> vector<16x96xf32>
    %35 = vector.extract_strided_slice %5 {offsets = [56, 0], sizes = [8, 96], strides = [1, 1]} : vector<64x96xf32> to vector<8x96xf32>
    %36 = vector.extract_strided_slice %11 {offsets = [56, 0], sizes = [8, 96], strides = [1, 1]} : vector<64x96xf32> to vector<8x96xf32>
    %37 = tpu.concatenate %35, %36 in 0 : vector<8x96xf32>, vector<8x96xf32> -> vector<16x96xf32>
    %cst_16 = arith.constant 0.000000e+00 : f32
    %38 = vector.broadcast %cst_16 : f32 to vector<16x16xf32>
    %cst_17 = arith.constant 0.000000e+00 : f32
    %39 = vector.broadcast %cst_17 : f32 to vector<16x16xf32>
    %40 = tpu.concatenate %38, %39 in 1 : vector<16x16xf32>, vector<16x16xf32> -> vector<16x32xf32>
    %cst_18 = arith.constant dense<0.000000e+00> : vector<16x96xf32>
    %41 = tpu.matmul %40, %12, %cst_18 {dimension_numbers = #tpu.dot_dimension_numbers<[1], [0], [0], [1], [0, 0, 1, 1], [], []>} : vector<16x32xf32>, vector<32x96xf32>, vector<16x96xf32> -> vector<16x96xf32>
    %42 = vector.broadcast %13 : vector<1x96xf32> to vector<16x96xf32>
    %43 = arith.addf %41, %42 : vector<16x96xf32>
    %44 = vector.extract_strided_slice %16 {offsets = [0, 0], sizes = [16, 16], strides = [1, 1]} : vector<16x96xf32> to vector<16x16xf32>
    %45 = vector.extract_strided_slice %43 {offsets = [0, 0], sizes = [16, 16], strides = [1, 1]} : vector<16x96xf32> to vector<16x16xf32>
    %46 = arith.addf %44, %45 : vector<16x16xf32>
    %cst_19 = arith.constant 0.000000e+00 : f32
    %47 = vector.broadcast %cst_19 : f32 to vector<16x16xf32>
    %48 = arith.subf %47, %46 : vector<16x16xf32>
    %49 = math.exp %48 : vector<16x16xf32>
    %cst_20 = arith.constant 1.000000e+00 : f32
    %50 = vector.broadcast %cst_20 : f32 to vector<16x16xf32>
    %51 = arith.addf %50, %49 : vector<16x16xf32>
    %cst_21 = arith.constant 1.000000e+00 : f32
    %52 = vector.broadcast %cst_21 : f32 to vector<16x16xf32>
    %53 = arith.divf %52, %51 : vector<16x16xf32>
    %54 = vector.extract_strided_slice %16 {offsets = [0, 16], sizes = [16, 16], strides = [1, 1]} : vector<16x96xf32> to vector<16x16xf32>
    %55 = vector.extract_strided_slice %43 {offsets = [0, 16], sizes = [16, 16], strides = [1, 1]} : vector<16x96xf32> to vector<16x16xf32>
    %56 = arith.addf %54, %55 : vector<16x16xf32>
    %cst_22 = arith.constant 0.000000e+00 : f32
    %57 = vector.broadcast %cst_22 : f32 to vector<16x16xf32>
    %58 = arith.subf %57, %56 : vector<16x16xf32>
    %59 = math.exp %58 : vector<16x16xf32>
    %cst_23 = arith.constant 1.000000e+00 : f32
    %60 = vector.broadcast %cst_23 : f32 to vector<16x16xf32>
    %61 = arith.addf %60, %59 : vector<16x16xf32>
    %cst_24 = arith.constant 1.000000e+00 : f32
    %62 = vector.broadcast %cst_24 : f32 to vector<16x16xf32>
    %63 = arith.divf %62, %61 : vector<16x16xf32>
    %64 = vector.extract_strided_slice %16 {offsets = [0, 32], sizes = [16, 16], strides = [1, 1]} : vector<16x96xf32> to vector<16x16xf32>
    %65 = vector.extract_strided_slice %43 {offsets = [0, 32], sizes = [16, 16], strides = [1, 1]} : vector<16x96xf32> to vector<16x16xf32>
    %66 = arith.mulf %53, %65 : vector<16x16xf32>
    %67 = arith.addf %64, %66 : vector<16x16xf32>
    %68 = math.tanh %67 : vector<16x16xf32>
    %cst_25 = arith.constant 1.000000e+00 : f32
    %69 = vector.broadcast %cst_25 : f32 to vector<16x16xf32>
    %70 = arith.subf %69, %63 : vector<16x16xf32>
    %71 = arith.mulf %70, %68 : vector<16x16xf32>
    %72 = arith.mulf %63, %38 : vector<16x16xf32>
    %73 = arith.addf %71, %72 : vector<16x16xf32>
    %74 = vector.extract_strided_slice %37 {offsets = [0, 48], sizes = [16, 16], strides = [1, 1]} : vector<16x96xf32> to vector<16x16xf32>
    %75 = vector.extract_strided_slice %43 {offsets = [0, 48], sizes = [16, 16], strides = [1, 1]} : vector<16x96xf32> to vector<16x16xf32>
    %76 = arith.addf %74, %75 : vector<16x16xf32>
    %cst_26 = arith.constant 0.000000e+00 : f32
    %77 = vector.broadcast %cst_26 : f32 to vector<16x16xf32>
    %78 = arith.subf %77, %76 : vector<16x16xf32>
    %79 = math.exp %78 : vector<16x16xf32>
    %cst_27 = arith.constant 1.000000e+00 : f32
    %80 = vector.broadcast %cst_27 : f32 to vector<16x16xf32>
    %81 = arith.addf %80, %79 : vector<16x16xf32>
    %cst_28 = arith.constant 1.000000e+00 : f32
    %82 = vector.broadcast %cst_28 : f32 to vector<16x16xf32>
    %83 = arith.divf %82, %81 : vector<16x16xf32>
    %84 = vector.extract_strided_slice %37 {offsets = [0, 64], sizes = [16, 16], strides = [1, 1]} : vector<16x96xf32> to vector<16x16xf32>
    %85 = vector.extract_strided_slice %43 {offsets = [0, 64], sizes = [16, 16], strides = [1, 1]} : vector<16x96xf32> to vector<16x16xf32>
    %86 = arith.addf %84, %85 : vector<16x16xf32>
    %cst_29 = arith.constant 0.000000e+00 : f32
    %87 = vector.broadcast %cst_29 : f32 to vector<16x16xf32>
    %88 = arith.subf %87, %86 : vector<16x16xf32>
    %89 = math.exp %88 : vector<16x16xf32>
    %cst_30 = arith.constant 1.000000e+00 : f32
    %90 = vector.broadcast %cst_30 : f32 to vector<16x16xf32>
    %91 = arith.addf %90, %89 : vector<16x16xf32>
    %cst_31 = arith.constant 1.000000e+00 : f32
    %92 = vector.broadcast %cst_31 : f32 to vector<16x16xf32>
    %93 = arith.divf %92, %91 : vector<16x16xf32>
    %94 = vector.extract_strided_slice %37 {offsets = [0, 80], sizes = [16, 16], strides = [1, 1]} : vector<16x96xf32> to vector<16x16xf32>
    %95 = vector.extract_strided_slice %43 {offsets = [0, 80], sizes = [16, 16], strides = [1, 1]} : vector<16x96xf32> to vector<16x16xf32>
    %96 = arith.mulf %83, %95 : vector<16x16xf32>
    %97 = arith.addf %94, %96 : vector<16x16xf32>
    %98 = math.tanh %97 : vector<16x16xf32>
    %cst_32 = arith.constant 1.000000e+00 : f32
    %99 = vector.broadcast %cst_32 : f32 to vector<16x16xf32>
    %100 = arith.subf %99, %93 : vector<16x16xf32>
    %101 = arith.mulf %100, %98 : vector<16x16xf32>
    %102 = arith.mulf %93, %39 : vector<16x16xf32>
    %103 = arith.addf %101, %102 : vector<16x16xf32>
    %104 = tpu.concatenate %73, %103 in 1 : vector<16x16xf32>, vector<16x16xf32> -> vector<16x32xf32>
    %cst_33 = arith.constant dense<0.000000e+00> : vector<16x96xf32>
    %105 = tpu.matmul %104, %12, %cst_33 {dimension_numbers = #tpu.dot_dimension_numbers<[1], [0], [0], [1], [0, 0, 1, 1], [], []>} : vector<16x32xf32>, vector<32x96xf32>, vector<16x96xf32> -> vector<16x96xf32>
    %106 = vector.broadcast %13 : vector<1x96xf32> to vector<16x96xf32>
    %107 = arith.addf %105, %106 : vector<16x96xf32>
    %108 = vector.extract_strided_slice %19 {offsets = [0, 0], sizes = [16, 16], strides = [1, 1]} : vector<16x96xf32> to vector<16x16xf32>
    %109 = vector.extract_strided_slice %107 {offsets = [0, 0], sizes = [16, 16], strides = [1, 1]} : vector<16x96xf32> to vector<16x16xf32>
    %110 = arith.addf %108, %109 : vector<16x16xf32>
    %cst_34 = arith.constant 0.000000e+00 : f32
    %111 = vector.broadcast %cst_34 : f32 to vector<16x16xf32>
    %112 = arith.subf %111, %110 : vector<16x16xf32>
    %113 = math.exp %112 : vector<16x16xf32>
    %cst_35 = arith.constant 1.000000e+00 : f32
    %114 = vector.broadcast %cst_35 : f32 to vector<16x16xf32>
    %115 = arith.addf %114, %113 : vector<16x16xf32>
    %cst_36 = arith.constant 1.000000e+00 : f32
    %116 = vector.broadcast %cst_36 : f32 to vector<16x16xf32>
    %117 = arith.divf %116, %115 : vector<16x16xf32>
    %118 = vector.extract_strided_slice %19 {offsets = [0, 16], sizes = [16, 16], strides = [1, 1]} : vector<16x96xf32> to vector<16x16xf32>
    %119 = vector.extract_strided_slice %107 {offsets = [0, 16], sizes = [16, 16], strides = [1, 1]} : vector<16x96xf32> to vector<16x16xf32>
    %120 = arith.addf %118, %119 : vector<16x16xf32>
    %cst_37 = arith.constant 0.000000e+00 : f32
    %121 = vector.broadcast %cst_37 : f32 to vector<16x16xf32>
    %122 = arith.subf %121, %120 : vector<16x16xf32>
    %123 = math.exp %122 : vector<16x16xf32>
    %cst_38 = arith.constant 1.000000e+00 : f32
    %124 = vector.broadcast %cst_38 : f32 to vector<16x16xf32>
    %125 = arith.addf %124, %123 : vector<16x16xf32>
    %cst_39 = arith.constant 1.000000e+00 : f32
    %126 = vector.broadcast %cst_39 : f32 to vector<16x16xf32>
    %127 = arith.divf %126, %125 : vector<16x16xf32>
    %128 = vector.extract_strided_slice %19 {offsets = [0, 32], sizes = [16, 16], strides = [1, 1]} : vector<16x96xf32> to vector<16x16xf32>
    %129 = vector.extract_strided_slice %107 {offsets = [0, 32], sizes = [16, 16], strides = [1, 1]} : vector<16x96xf32> to vector<16x16xf32>
    %130 = arith.mulf %117, %129 : vector<16x16xf32>
    %131 = arith.addf %128, %130 : vector<16x16xf32>
    %132 = math.tanh %131 : vector<16x16xf32>
    %cst_40 = arith.constant 1.000000e+00 : f32
    %133 = vector.broadcast %cst_40 : f32 to vector<16x16xf32>
    %134 = arith.subf %133, %127 : vector<16x16xf32>
    %135 = arith.mulf %134, %132 : vector<16x16xf32>
    %136 = arith.mulf %127, %73 : vector<16x16xf32>
    %137 = arith.addf %135, %136 : vector<16x16xf32>
    %138 = vector.extract_strided_slice %34 {offsets = [0, 48], sizes = [16, 16], strides = [1, 1]} : vector<16x96xf32> to vector<16x16xf32>
    %139 = vector.extract_strided_slice %107 {offsets = [0, 48], sizes = [16, 16], strides = [1, 1]} : vector<16x96xf32> to vector<16x16xf32>
    %140 = arith.addf %138, %139 : vector<16x16xf32>
    %cst_41 = arith.constant 0.000000e+00 : f32
    %141 = vector.broadcast %cst_41 : f32 to vector<16x16xf32>
    %142 = arith.subf %141, %140 : vector<16x16xf32>
    %143 = math.exp %142 : vector<16x16xf32>
    %cst_42 = arith.constant 1.000000e+00 : f32
    %144 = vector.broadcast %cst_42 : f32 to vector<16x16xf32>
    %145 = arith.addf %144, %143 : vector<16x16xf32>
    %cst_43 = arith.constant 1.000000e+00 : f32
    %146 = vector.broadcast %cst_43 : f32 to vector<16x16xf32>
    %147 = arith.divf %146, %145 : vector<16x16xf32>
    %148 = vector.extract_strided_slice %34 {offsets = [0, 64], sizes = [16, 16], strides = [1, 1]} : vector<16x96xf32> to vector<16x16xf32>
    %149 = vector.extract_strided_slice %107 {offsets = [0, 64], sizes = [16, 16], strides = [1, 1]} : vector<16x96xf32> to vector<16x16xf32>
    %150 = arith.addf %148, %149 : vector<16x16xf32>
    %cst_44 = arith.constant 0.000000e+00 : f32
    %151 = vector.broadcast %cst_44 : f32 to vector<16x16xf32>
    %152 = arith.subf %151, %150 : vector<16x16xf32>
    %153 = math.exp %152 : vector<16x16xf32>
    %cst_45 = arith.constant 1.000000e+00 : f32
    %154 = vector.broadcast %cst_45 : f32 to vector<16x16xf32>
    %155 = arith.addf %154, %153 : vector<16x16xf32>
    %cst_46 = arith.constant 1.000000e+00 : f32
    %156 = vector.broadcast %cst_46 : f32 to vector<16x16xf32>
    %157 = arith.divf %156, %155 : vector<16x16xf32>
    %158 = vector.extract_strided_slice %34 {offsets = [0, 80], sizes = [16, 16], strides = [1, 1]} : vector<16x96xf32> to vector<16x16xf32>
    %159 = vector.extract_strided_slice %107 {offsets = [0, 80], sizes = [16, 16], strides = [1, 1]} : vector<16x96xf32> to vector<16x16xf32>
    %160 = arith.mulf %147, %159 : vector<16x16xf32>
    %161 = arith.addf %158, %160 : vector<16x16xf32>
    %162 = math.tanh %161 : vector<16x16xf32>
    %cst_47 = arith.constant 1.000000e+00 : f32
    %163 = vector.broadcast %cst_47 : f32 to vector<16x16xf32>
    %164 = arith.subf %163, %157 : vector<16x16xf32>
    %165 = arith.mulf %164, %162 : vector<16x16xf32>
    %166 = arith.mulf %157, %103 : vector<16x16xf32>
    %167 = arith.addf %165, %166 : vector<16x16xf32>
    %168 = tpu.concatenate %137, %167 in 1 : vector<16x16xf32>, vector<16x16xf32> -> vector<16x32xf32>
    %cst_48 = arith.constant dense<0.000000e+00> : vector<16x96xf32>
    %169 = tpu.matmul %168, %12, %cst_48 {dimension_numbers = #tpu.dot_dimension_numbers<[1], [0], [0], [1], [0, 0, 1, 1], [], []>} : vector<16x32xf32>, vector<32x96xf32>, vector<16x96xf32> -> vector<16x96xf32>
    %170 = vector.broadcast %13 : vector<1x96xf32> to vector<16x96xf32>
    %171 = arith.addf %169, %170 : vector<16x96xf32>
    %172 = vector.extract_strided_slice %22 {offsets = [0, 0], sizes = [16, 16], strides = [1, 1]} : vector<16x96xf32> to vector<16x16xf32>
    %173 = vector.extract_strided_slice %171 {offsets = [0, 0], sizes = [16, 16], strides = [1, 1]} : vector<16x96xf32> to vector<16x16xf32>
    %174 = arith.addf %172, %173 : vector<16x16xf32>
    %cst_49 = arith.constant 0.000000e+00 : f32
    %175 = vector.broadcast %cst_49 : f32 to vector<16x16xf32>
    %176 = arith.subf %175, %174 : vector<16x16xf32>
    %177 = math.exp %176 : vector<16x16xf32>
    %cst_50 = arith.constant 1.000000e+00 : f32
    %178 = vector.broadcast %cst_50 : f32 to vector<16x16xf32>
    %179 = arith.addf %178, %177 : vector<16x16xf32>
    %cst_51 = arith.constant 1.000000e+00 : f32
    %180 = vector.broadcast %cst_51 : f32 to vector<16x16xf32>
    %181 = arith.divf %180, %179 : vector<16x16xf32>
    %182 = vector.extract_strided_slice %22 {offsets = [0, 16], sizes = [16, 16], strides = [1, 1]} : vector<16x96xf32> to vector<16x16xf32>
    %183 = vector.extract_strided_slice %171 {offsets = [0, 16], sizes = [16, 16], strides = [1, 1]} : vector<16x96xf32> to vector<16x16xf32>
    %184 = arith.addf %182, %183 : vector<16x16xf32>
    %cst_52 = arith.constant 0.000000e+00 : f32
    %185 = vector.broadcast %cst_52 : f32 to vector<16x16xf32>
    %186 = arith.subf %185, %184 : vector<16x16xf32>
    %187 = math.exp %186 : vector<16x16xf32>
    %cst_53 = arith.constant 1.000000e+00 : f32
    %188 = vector.broadcast %cst_53 : f32 to vector<16x16xf32>
    %189 = arith.addf %188, %187 : vector<16x16xf32>
    %cst_54 = arith.constant 1.000000e+00 : f32
    %190 = vector.broadcast %cst_54 : f32 to vector<16x16xf32>
    %191 = arith.divf %190, %189 : vector<16x16xf32>
    %192 = vector.extract_strided_slice %22 {offsets = [0, 32], sizes = [16, 16], strides = [1, 1]} : vector<16x96xf32> to vector<16x16xf32>
    %193 = vector.extract_strided_slice %171 {offsets = [0, 32], sizes = [16, 16], strides = [1, 1]} : vector<16x96xf32> to vector<16x16xf32>
    %194 = arith.mulf %181, %193 : vector<16x16xf32>
    %195 = arith.addf %192, %194 : vector<16x16xf32>
    %196 = math.tanh %195 : vector<16x16xf32>
    %cst_55 = arith.constant 1.000000e+00 : f32
    %197 = vector.broadcast %cst_55 : f32 to vector<16x16xf32>
    %198 = arith.subf %197, %191 : vector<16x16xf32>
    %199 = arith.mulf %198, %196 : vector<16x16xf32>
    %200 = arith.mulf %191, %137 : vector<16x16xf32>
    %201 = arith.addf %199, %200 : vector<16x16xf32>
    %202 = vector.extract_strided_slice %31 {offsets = [0, 48], sizes = [16, 16], strides = [1, 1]} : vector<16x96xf32> to vector<16x16xf32>
    %203 = vector.extract_strided_slice %171 {offsets = [0, 48], sizes = [16, 16], strides = [1, 1]} : vector<16x96xf32> to vector<16x16xf32>
    %204 = arith.addf %202, %203 : vector<16x16xf32>
    %cst_56 = arith.constant 0.000000e+00 : f32
    %205 = vector.broadcast %cst_56 : f32 to vector<16x16xf32>
    %206 = arith.subf %205, %204 : vector<16x16xf32>
    %207 = math.exp %206 : vector<16x16xf32>
    %cst_57 = arith.constant 1.000000e+00 : f32
    %208 = vector.broadcast %cst_57 : f32 to vector<16x16xf32>
    %209 = arith.addf %208, %207 : vector<16x16xf32>
    %cst_58 = arith.constant 1.000000e+00 : f32
    %210 = vector.broadcast %cst_58 : f32 to vector<16x16xf32>
    %211 = arith.divf %210, %209 : vector<16x16xf32>
    %212 = vector.extract_strided_slice %31 {offsets = [0, 64], sizes = [16, 16], strides = [1, 1]} : vector<16x96xf32> to vector<16x16xf32>
    %213 = vector.extract_strided_slice %171 {offsets = [0, 64], sizes = [16, 16], strides = [1, 1]} : vector<16x96xf32> to vector<16x16xf32>
    %214 = arith.addf %212, %213 : vector<16x16xf32>
    %cst_59 = arith.constant 0.000000e+00 : f32
    %215 = vector.broadcast %cst_59 : f32 to vector<16x16xf32>
    %216 = arith.subf %215, %214 : vector<16x16xf32>
    %217 = math.exp %216 : vector<16x16xf32>
    %cst_60 = arith.constant 1.000000e+00 : f32
    %218 = vector.broadcast %cst_60 : f32 to vector<16x16xf32>
    %219 = arith.addf %218, %217 : vector<16x16xf32>
    %cst_61 = arith.constant 1.000000e+00 : f32
    %220 = vector.broadcast %cst_61 : f32 to vector<16x16xf32>
    %221 = arith.divf %220, %219 : vector<16x16xf32>
    %222 = vector.extract_strided_slice %31 {offsets = [0, 80], sizes = [16, 16], strides = [1, 1]} : vector<16x96xf32> to vector<16x16xf32>
    %223 = vector.extract_strided_slice %171 {offsets = [0, 80], sizes = [16, 16], strides = [1, 1]} : vector<16x96xf32> to vector<16x16xf32>
    %224 = arith.mulf %211, %223 : vector<16x16xf32>
    %225 = arith.addf %222, %224 : vector<16x16xf32>
    %226 = math.tanh %225 : vector<16x16xf32>
    %cst_62 = arith.constant 1.000000e+00 : f32
    %227 = vector.broadcast %cst_62 : f32 to vector<16x16xf32>
    %228 = arith.subf %227, %221 : vector<16x16xf32>
    %229 = arith.mulf %228, %226 : vector<16x16xf32>
    %230 = arith.mulf %221, %167 : vector<16x16xf32>
    %231 = arith.addf %229, %230 : vector<16x16xf32>
    %232 = tpu.concatenate %201, %231 in 1 : vector<16x16xf32>, vector<16x16xf32> -> vector<16x32xf32>
    %cst_63 = arith.constant dense<0.000000e+00> : vector<16x96xf32>
    %233 = tpu.matmul %232, %12, %cst_63 {dimension_numbers = #tpu.dot_dimension_numbers<[1], [0], [0], [1], [0, 0, 1, 1], [], []>} : vector<16x32xf32>, vector<32x96xf32>, vector<16x96xf32> -> vector<16x96xf32>
    %234 = vector.broadcast %13 : vector<1x96xf32> to vector<16x96xf32>
    %235 = arith.addf %233, %234 : vector<16x96xf32>
    %236 = vector.extract_strided_slice %25 {offsets = [0, 0], sizes = [16, 16], strides = [1, 1]} : vector<16x96xf32> to vector<16x16xf32>
    %237 = vector.extract_strided_slice %235 {offsets = [0, 0], sizes = [16, 16], strides = [1, 1]} : vector<16x96xf32> to vector<16x16xf32>
    %238 = arith.addf %236, %237 : vector<16x16xf32>
    %cst_64 = arith.constant 0.000000e+00 : f32
    %239 = vector.broadcast %cst_64 : f32 to vector<16x16xf32>
    %240 = arith.subf %239, %238 : vector<16x16xf32>
    %241 = math.exp %240 : vector<16x16xf32>
    %cst_65 = arith.constant 1.000000e+00 : f32
    %242 = vector.broadcast %cst_65 : f32 to vector<16x16xf32>
    %243 = arith.addf %242, %241 : vector<16x16xf32>
    %cst_66 = arith.constant 1.000000e+00 : f32
    %244 = vector.broadcast %cst_66 : f32 to vector<16x16xf32>
    %245 = arith.divf %244, %243 : vector<16x16xf32>
    %246 = vector.extract_strided_slice %25 {offsets = [0, 16], sizes = [16, 16], strides = [1, 1]} : vector<16x96xf32> to vector<16x16xf32>
    %247 = vector.extract_strided_slice %235 {offsets = [0, 16], sizes = [16, 16], strides = [1, 1]} : vector<16x96xf32> to vector<16x16xf32>
    %248 = arith.addf %246, %247 : vector<16x16xf32>
    %cst_67 = arith.constant 0.000000e+00 : f32
    %249 = vector.broadcast %cst_67 : f32 to vector<16x16xf32>
    %250 = arith.subf %249, %248 : vector<16x16xf32>
    %251 = math.exp %250 : vector<16x16xf32>
    %cst_68 = arith.constant 1.000000e+00 : f32
    %252 = vector.broadcast %cst_68 : f32 to vector<16x16xf32>
    %253 = arith.addf %252, %251 : vector<16x16xf32>
    %cst_69 = arith.constant 1.000000e+00 : f32
    %254 = vector.broadcast %cst_69 : f32 to vector<16x16xf32>
    %255 = arith.divf %254, %253 : vector<16x16xf32>
    %256 = vector.extract_strided_slice %25 {offsets = [0, 32], sizes = [16, 16], strides = [1, 1]} : vector<16x96xf32> to vector<16x16xf32>
    %257 = vector.extract_strided_slice %235 {offsets = [0, 32], sizes = [16, 16], strides = [1, 1]} : vector<16x96xf32> to vector<16x16xf32>
    %258 = arith.mulf %245, %257 : vector<16x16xf32>
    %259 = arith.addf %256, %258 : vector<16x16xf32>
    %260 = math.tanh %259 : vector<16x16xf32>
    %cst_70 = arith.constant 1.000000e+00 : f32
    %261 = vector.broadcast %cst_70 : f32 to vector<16x16xf32>
    %262 = arith.subf %261, %255 : vector<16x16xf32>
    %263 = arith.mulf %262, %260 : vector<16x16xf32>
    %264 = arith.mulf %255, %201 : vector<16x16xf32>
    %265 = arith.addf %263, %264 : vector<16x16xf32>
    %266 = vector.extract_strided_slice %28 {offsets = [0, 48], sizes = [16, 16], strides = [1, 1]} : vector<16x96xf32> to vector<16x16xf32>
    %267 = vector.extract_strided_slice %235 {offsets = [0, 48], sizes = [16, 16], strides = [1, 1]} : vector<16x96xf32> to vector<16x16xf32>
    %268 = arith.addf %266, %267 : vector<16x16xf32>
    %cst_71 = arith.constant 0.000000e+00 : f32
    %269 = vector.broadcast %cst_71 : f32 to vector<16x16xf32>
    %270 = arith.subf %269, %268 : vector<16x16xf32>
    %271 = math.exp %270 : vector<16x16xf32>
    %cst_72 = arith.constant 1.000000e+00 : f32
    %272 = vector.broadcast %cst_72 : f32 to vector<16x16xf32>
    %273 = arith.addf %272, %271 : vector<16x16xf32>
    %cst_73 = arith.constant 1.000000e+00 : f32
    %274 = vector.broadcast %cst_73 : f32 to vector<16x16xf32>
    %275 = arith.divf %274, %273 : vector<16x16xf32>
    %276 = vector.extract_strided_slice %28 {offsets = [0, 64], sizes = [16, 16], strides = [1, 1]} : vector<16x96xf32> to vector<16x16xf32>
    %277 = vector.extract_strided_slice %235 {offsets = [0, 64], sizes = [16, 16], strides = [1, 1]} : vector<16x96xf32> to vector<16x16xf32>
    %278 = arith.addf %276, %277 : vector<16x16xf32>
    %cst_74 = arith.constant 0.000000e+00 : f32
    %279 = vector.broadcast %cst_74 : f32 to vector<16x16xf32>
    %280 = arith.subf %279, %278 : vector<16x16xf32>
    %281 = math.exp %280 : vector<16x16xf32>
    %cst_75 = arith.constant 1.000000e+00 : f32
    %282 = vector.broadcast %cst_75 : f32 to vector<16x16xf32>
    %283 = arith.addf %282, %281 : vector<16x16xf32>
    %cst_76 = arith.constant 1.000000e+00 : f32
    %284 = vector.broadcast %cst_76 : f32 to vector<16x16xf32>
    %285 = arith.divf %284, %283 : vector<16x16xf32>
    %286 = vector.extract_strided_slice %28 {offsets = [0, 80], sizes = [16, 16], strides = [1, 1]} : vector<16x96xf32> to vector<16x16xf32>
    %287 = vector.extract_strided_slice %235 {offsets = [0, 80], sizes = [16, 16], strides = [1, 1]} : vector<16x96xf32> to vector<16x16xf32>
    %288 = arith.mulf %275, %287 : vector<16x16xf32>
    %289 = arith.addf %286, %288 : vector<16x16xf32>
    %290 = math.tanh %289 : vector<16x16xf32>
    %cst_77 = arith.constant 1.000000e+00 : f32
    %291 = vector.broadcast %cst_77 : f32 to vector<16x16xf32>
    %292 = arith.subf %291, %285 : vector<16x16xf32>
    %293 = arith.mulf %292, %290 : vector<16x16xf32>
    %294 = arith.mulf %285, %231 : vector<16x16xf32>
    %295 = arith.addf %293, %294 : vector<16x16xf32>
    %296 = tpu.concatenate %265, %295 in 1 : vector<16x16xf32>, vector<16x16xf32> -> vector<16x32xf32>
    %cst_78 = arith.constant dense<0.000000e+00> : vector<16x96xf32>
    %297 = tpu.matmul %296, %12, %cst_78 {dimension_numbers = #tpu.dot_dimension_numbers<[1], [0], [0], [1], [0, 0, 1, 1], [], []>} : vector<16x32xf32>, vector<32x96xf32>, vector<16x96xf32> -> vector<16x96xf32>
    %298 = vector.broadcast %13 : vector<1x96xf32> to vector<16x96xf32>
    %299 = arith.addf %297, %298 : vector<16x96xf32>
    %300 = vector.extract_strided_slice %28 {offsets = [0, 0], sizes = [16, 16], strides = [1, 1]} : vector<16x96xf32> to vector<16x16xf32>
    %301 = vector.extract_strided_slice %299 {offsets = [0, 0], sizes = [16, 16], strides = [1, 1]} : vector<16x96xf32> to vector<16x16xf32>
    %302 = arith.addf %300, %301 : vector<16x16xf32>
    %cst_79 = arith.constant 0.000000e+00 : f32
    %303 = vector.broadcast %cst_79 : f32 to vector<16x16xf32>
    %304 = arith.subf %303, %302 : vector<16x16xf32>
    %305 = math.exp %304 : vector<16x16xf32>
    %cst_80 = arith.constant 1.000000e+00 : f32
    %306 = vector.broadcast %cst_80 : f32 to vector<16x16xf32>
    %307 = arith.addf %306, %305 : vector<16x16xf32>
    %cst_81 = arith.constant 1.000000e+00 : f32
    %308 = vector.broadcast %cst_81 : f32 to vector<16x16xf32>
    %309 = arith.divf %308, %307 : vector<16x16xf32>
    %310 = vector.extract_strided_slice %28 {offsets = [0, 16], sizes = [16, 16], strides = [1, 1]} : vector<16x96xf32> to vector<16x16xf32>
    %311 = vector.extract_strided_slice %299 {offsets = [0, 16], sizes = [16, 16], strides = [1, 1]} : vector<16x96xf32> to vector<16x16xf32>
    %312 = arith.addf %310, %311 : vector<16x16xf32>
    %cst_82 = arith.constant 0.000000e+00 : f32
    %313 = vector.broadcast %cst_82 : f32 to vector<16x16xf32>
    %314 = arith.subf %313, %312 : vector<16x16xf32>
    %315 = math.exp %314 : vector<16x16xf32>
    %cst_83 = arith.constant 1.000000e+00 : f32
    %316 = vector.broadcast %cst_83 : f32 to vector<16x16xf32>
    %317 = arith.addf %316, %315 : vector<16x16xf32>
    %cst_84 = arith.constant 1.000000e+00 : f32
    %318 = vector.broadcast %cst_84 : f32 to vector<16x16xf32>
    %319 = arith.divf %318, %317 : vector<16x16xf32>
    %320 = vector.extract_strided_slice %28 {offsets = [0, 32], sizes = [16, 16], strides = [1, 1]} : vector<16x96xf32> to vector<16x16xf32>
    %321 = vector.extract_strided_slice %299 {offsets = [0, 32], sizes = [16, 16], strides = [1, 1]} : vector<16x96xf32> to vector<16x16xf32>
    %322 = arith.mulf %309, %321 : vector<16x16xf32>
    %323 = arith.addf %320, %322 : vector<16x16xf32>
    %324 = math.tanh %323 : vector<16x16xf32>
    %cst_85 = arith.constant 1.000000e+00 : f32
    %325 = vector.broadcast %cst_85 : f32 to vector<16x16xf32>
    %326 = arith.subf %325, %319 : vector<16x16xf32>
    %327 = arith.mulf %326, %324 : vector<16x16xf32>
    %328 = arith.mulf %319, %265 : vector<16x16xf32>
    %329 = arith.addf %327, %328 : vector<16x16xf32>
    %330 = vector.extract_strided_slice %25 {offsets = [0, 48], sizes = [16, 16], strides = [1, 1]} : vector<16x96xf32> to vector<16x16xf32>
    %331 = vector.extract_strided_slice %299 {offsets = [0, 48], sizes = [16, 16], strides = [1, 1]} : vector<16x96xf32> to vector<16x16xf32>
    %332 = arith.addf %330, %331 : vector<16x16xf32>
    %cst_86 = arith.constant 0.000000e+00 : f32
    %333 = vector.broadcast %cst_86 : f32 to vector<16x16xf32>
    %334 = arith.subf %333, %332 : vector<16x16xf32>
    %335 = math.exp %334 : vector<16x16xf32>
    %cst_87 = arith.constant 1.000000e+00 : f32
    %336 = vector.broadcast %cst_87 : f32 to vector<16x16xf32>
    %337 = arith.addf %336, %335 : vector<16x16xf32>
    %cst_88 = arith.constant 1.000000e+00 : f32
    %338 = vector.broadcast %cst_88 : f32 to vector<16x16xf32>
    %339 = arith.divf %338, %337 : vector<16x16xf32>
    %340 = vector.extract_strided_slice %25 {offsets = [0, 64], sizes = [16, 16], strides = [1, 1]} : vector<16x96xf32> to vector<16x16xf32>
    %341 = vector.extract_strided_slice %299 {offsets = [0, 64], sizes = [16, 16], strides = [1, 1]} : vector<16x96xf32> to vector<16x16xf32>
    %342 = arith.addf %340, %341 : vector<16x16xf32>
    %cst_89 = arith.constant 0.000000e+00 : f32
    %343 = vector.broadcast %cst_89 : f32 to vector<16x16xf32>
    %344 = arith.subf %343, %342 : vector<16x16xf32>
    %345 = math.exp %344 : vector<16x16xf32>
    %cst_90 = arith.constant 1.000000e+00 : f32
    %346 = vector.broadcast %cst_90 : f32 to vector<16x16xf32>
    %347 = arith.addf %346, %345 : vector<16x16xf32>
    %cst_91 = arith.constant 1.000000e+00 : f32
    %348 = vector.broadcast %cst_91 : f32 to vector<16x16xf32>
    %349 = arith.divf %348, %347 : vector<16x16xf32>
    %350 = vector.extract_strided_slice %25 {offsets = [0, 80], sizes = [16, 16], strides = [1, 1]} : vector<16x96xf32> to vector<16x16xf32>
    %351 = vector.extract_strided_slice %299 {offsets = [0, 80], sizes = [16, 16], strides = [1, 1]} : vector<16x96xf32> to vector<16x16xf32>
    %352 = arith.mulf %339, %351 : vector<16x16xf32>
    %353 = arith.addf %350, %352 : vector<16x16xf32>
    %354 = math.tanh %353 : vector<16x16xf32>
    %cst_92 = arith.constant 1.000000e+00 : f32
    %355 = vector.broadcast %cst_92 : f32 to vector<16x16xf32>
    %356 = arith.subf %355, %349 : vector<16x16xf32>
    %357 = arith.mulf %356, %354 : vector<16x16xf32>
    %358 = arith.mulf %349, %295 : vector<16x16xf32>
    %359 = arith.addf %357, %358 : vector<16x16xf32>
    %360 = tpu.concatenate %329, %359 in 1 : vector<16x16xf32>, vector<16x16xf32> -> vector<16x32xf32>
    %cst_93 = arith.constant dense<0.000000e+00> : vector<16x96xf32>
    %361 = tpu.matmul %360, %12, %cst_93 {dimension_numbers = #tpu.dot_dimension_numbers<[1], [0], [0], [1], [0, 0, 1, 1], [], []>} : vector<16x32xf32>, vector<32x96xf32>, vector<16x96xf32> -> vector<16x96xf32>
    %362 = vector.broadcast %13 : vector<1x96xf32> to vector<16x96xf32>
    %363 = arith.addf %361, %362 : vector<16x96xf32>
    %364 = vector.extract_strided_slice %31 {offsets = [0, 0], sizes = [16, 16], strides = [1, 1]} : vector<16x96xf32> to vector<16x16xf32>
    %365 = vector.extract_strided_slice %363 {offsets = [0, 0], sizes = [16, 16], strides = [1, 1]} : vector<16x96xf32> to vector<16x16xf32>
    %366 = arith.addf %364, %365 : vector<16x16xf32>
    %cst_94 = arith.constant 0.000000e+00 : f32
    %367 = vector.broadcast %cst_94 : f32 to vector<16x16xf32>
    %368 = arith.subf %367, %366 : vector<16x16xf32>
    %369 = math.exp %368 : vector<16x16xf32>
    %cst_95 = arith.constant 1.000000e+00 : f32
    %370 = vector.broadcast %cst_95 : f32 to vector<16x16xf32>
    %371 = arith.addf %370, %369 : vector<16x16xf32>
    %cst_96 = arith.constant 1.000000e+00 : f32
    %372 = vector.broadcast %cst_96 : f32 to vector<16x16xf32>
    %373 = arith.divf %372, %371 : vector<16x16xf32>
    %374 = vector.extract_strided_slice %31 {offsets = [0, 16], sizes = [16, 16], strides = [1, 1]} : vector<16x96xf32> to vector<16x16xf32>
    %375 = vector.extract_strided_slice %363 {offsets = [0, 16], sizes = [16, 16], strides = [1, 1]} : vector<16x96xf32> to vector<16x16xf32>
    %376 = arith.addf %374, %375 : vector<16x16xf32>
    %cst_97 = arith.constant 0.000000e+00 : f32
    %377 = vector.broadcast %cst_97 : f32 to vector<16x16xf32>
    %378 = arith.subf %377, %376 : vector<16x16xf32>
    %379 = math.exp %378 : vector<16x16xf32>
    %cst_98 = arith.constant 1.000000e+00 : f32
    %380 = vector.broadcast %cst_98 : f32 to vector<16x16xf32>
    %381 = arith.addf %380, %379 : vector<16x16xf32>
    %cst_99 = arith.constant 1.000000e+00 : f32
    %382 = vector.broadcast %cst_99 : f32 to vector<16x16xf32>
    %383 = arith.divf %382, %381 : vector<16x16xf32>
    %384 = vector.extract_strided_slice %31 {offsets = [0, 32], sizes = [16, 16], strides = [1, 1]} : vector<16x96xf32> to vector<16x16xf32>
    %385 = vector.extract_strided_slice %363 {offsets = [0, 32], sizes = [16, 16], strides = [1, 1]} : vector<16x96xf32> to vector<16x16xf32>
    %386 = arith.mulf %373, %385 : vector<16x16xf32>
    %387 = arith.addf %384, %386 : vector<16x16xf32>
    %388 = math.tanh %387 : vector<16x16xf32>
    %cst_100 = arith.constant 1.000000e+00 : f32
    %389 = vector.broadcast %cst_100 : f32 to vector<16x16xf32>
    %390 = arith.subf %389, %383 : vector<16x16xf32>
    %391 = arith.mulf %390, %388 : vector<16x16xf32>
    %392 = arith.mulf %383, %329 : vector<16x16xf32>
    %393 = arith.addf %391, %392 : vector<16x16xf32>
    %394 = vector.extract_strided_slice %22 {offsets = [0, 48], sizes = [16, 16], strides = [1, 1]} : vector<16x96xf32> to vector<16x16xf32>
    %395 = vector.extract_strided_slice %363 {offsets = [0, 48], sizes = [16, 16], strides = [1, 1]} : vector<16x96xf32> to vector<16x16xf32>
    %396 = arith.addf %394, %395 : vector<16x16xf32>
    %cst_101 = arith.constant 0.000000e+00 : f32
    %397 = vector.broadcast %cst_101 : f32 to vector<16x16xf32>
    %398 = arith.subf %397, %396 : vector<16x16xf32>
    %399 = math.exp %398 : vector<16x16xf32>
    %cst_102 = arith.constant 1.000000e+00 : f32
    %400 = vector.broadcast %cst_102 : f32 to vector<16x16xf32>
    %401 = arith.addf %400, %399 : vector<16x16xf32>
    %cst_103 = arith.constant 1.000000e+00 : f32
    %402 = vector.broadcast %cst_103 : f32 to vector<16x16xf32>
    %403 = arith.divf %402, %401 : vector<16x16xf32>
    %404 = vector.extract_strided_slice %22 {offsets = [0, 64], sizes = [16, 16], strides = [1, 1]} : vector<16x96xf32> to vector<16x16xf32>
    %405 = vector.extract_strided_slice %363 {offsets = [0, 64], sizes = [16, 16], strides = [1, 1]} : vector<16x96xf32> to vector<16x16xf32>
    %406 = arith.addf %404, %405 : vector<16x16xf32>
    %cst_104 = arith.constant 0.000000e+00 : f32
    %407 = vector.broadcast %cst_104 : f32 to vector<16x16xf32>
    %408 = arith.subf %407, %406 : vector<16x16xf32>
    %409 = math.exp %408 : vector<16x16xf32>
    %cst_105 = arith.constant 1.000000e+00 : f32
    %410 = vector.broadcast %cst_105 : f32 to vector<16x16xf32>
    %411 = arith.addf %410, %409 : vector<16x16xf32>
    %cst_106 = arith.constant 1.000000e+00 : f32
    %412 = vector.broadcast %cst_106 : f32 to vector<16x16xf32>
    %413 = arith.divf %412, %411 : vector<16x16xf32>
    %414 = vector.extract_strided_slice %22 {offsets = [0, 80], sizes = [16, 16], strides = [1, 1]} : vector<16x96xf32> to vector<16x16xf32>
    %415 = vector.extract_strided_slice %363 {offsets = [0, 80], sizes = [16, 16], strides = [1, 1]} : vector<16x96xf32> to vector<16x16xf32>
    %416 = arith.mulf %403, %415 : vector<16x16xf32>
    %417 = arith.addf %414, %416 : vector<16x16xf32>
    %418 = math.tanh %417 : vector<16x16xf32>
    %cst_107 = arith.constant 1.000000e+00 : f32
    %419 = vector.broadcast %cst_107 : f32 to vector<16x16xf32>
    %420 = arith.subf %419, %413 : vector<16x16xf32>
    %421 = arith.mulf %420, %418 : vector<16x16xf32>
    %422 = arith.mulf %413, %359 : vector<16x16xf32>
    %423 = arith.addf %421, %422 : vector<16x16xf32>
    %424 = tpu.concatenate %393, %423 in 1 : vector<16x16xf32>, vector<16x16xf32> -> vector<16x32xf32>
    %cst_108 = arith.constant dense<0.000000e+00> : vector<16x96xf32>
    %425 = tpu.matmul %424, %12, %cst_108 {dimension_numbers = #tpu.dot_dimension_numbers<[1], [0], [0], [1], [0, 0, 1, 1], [], []>} : vector<16x32xf32>, vector<32x96xf32>, vector<16x96xf32> -> vector<16x96xf32>
    %426 = vector.broadcast %13 : vector<1x96xf32> to vector<16x96xf32>
    %427 = arith.addf %425, %426 : vector<16x96xf32>
    %428 = vector.extract_strided_slice %34 {offsets = [0, 0], sizes = [16, 16], strides = [1, 1]} : vector<16x96xf32> to vector<16x16xf32>
    %429 = vector.extract_strided_slice %427 {offsets = [0, 0], sizes = [16, 16], strides = [1, 1]} : vector<16x96xf32> to vector<16x16xf32>
    %430 = arith.addf %428, %429 : vector<16x16xf32>
    %cst_109 = arith.constant 0.000000e+00 : f32
    %431 = vector.broadcast %cst_109 : f32 to vector<16x16xf32>
    %432 = arith.subf %431, %430 : vector<16x16xf32>
    %433 = math.exp %432 : vector<16x16xf32>
    %cst_110 = arith.constant 1.000000e+00 : f32
    %434 = vector.broadcast %cst_110 : f32 to vector<16x16xf32>
    %435 = arith.addf %434, %433 : vector<16x16xf32>
    %cst_111 = arith.constant 1.000000e+00 : f32
    %436 = vector.broadcast %cst_111 : f32 to vector<16x16xf32>
    %437 = arith.divf %436, %435 : vector<16x16xf32>
    %438 = vector.extract_strided_slice %34 {offsets = [0, 16], sizes = [16, 16], strides = [1, 1]} : vector<16x96xf32> to vector<16x16xf32>
    %439 = vector.extract_strided_slice %427 {offsets = [0, 16], sizes = [16, 16], strides = [1, 1]} : vector<16x96xf32> to vector<16x16xf32>
    %440 = arith.addf %438, %439 : vector<16x16xf32>
    %cst_112 = arith.constant 0.000000e+00 : f32
    %441 = vector.broadcast %cst_112 : f32 to vector<16x16xf32>
    %442 = arith.subf %441, %440 : vector<16x16xf32>
    %443 = math.exp %442 : vector<16x16xf32>
    %cst_113 = arith.constant 1.000000e+00 : f32
    %444 = vector.broadcast %cst_113 : f32 to vector<16x16xf32>
    %445 = arith.addf %444, %443 : vector<16x16xf32>
    %cst_114 = arith.constant 1.000000e+00 : f32
    %446 = vector.broadcast %cst_114 : f32 to vector<16x16xf32>
    %447 = arith.divf %446, %445 : vector<16x16xf32>
    %448 = vector.extract_strided_slice %34 {offsets = [0, 32], sizes = [16, 16], strides = [1, 1]} : vector<16x96xf32> to vector<16x16xf32>
    %449 = vector.extract_strided_slice %427 {offsets = [0, 32], sizes = [16, 16], strides = [1, 1]} : vector<16x96xf32> to vector<16x16xf32>
    %450 = arith.mulf %437, %449 : vector<16x16xf32>
    %451 = arith.addf %448, %450 : vector<16x16xf32>
    %452 = math.tanh %451 : vector<16x16xf32>
    %cst_115 = arith.constant 1.000000e+00 : f32
    %453 = vector.broadcast %cst_115 : f32 to vector<16x16xf32>
    %454 = arith.subf %453, %447 : vector<16x16xf32>
    %455 = arith.mulf %454, %452 : vector<16x16xf32>
    %456 = arith.mulf %447, %393 : vector<16x16xf32>
    %457 = arith.addf %455, %456 : vector<16x16xf32>
    %458 = vector.extract_strided_slice %19 {offsets = [0, 48], sizes = [16, 16], strides = [1, 1]} : vector<16x96xf32> to vector<16x16xf32>
    %459 = vector.extract_strided_slice %427 {offsets = [0, 48], sizes = [16, 16], strides = [1, 1]} : vector<16x96xf32> to vector<16x16xf32>
    %460 = arith.addf %458, %459 : vector<16x16xf32>
    %cst_116 = arith.constant 0.000000e+00 : f32
    %461 = vector.broadcast %cst_116 : f32 to vector<16x16xf32>
    %462 = arith.subf %461, %460 : vector<16x16xf32>
    %463 = math.exp %462 : vector<16x16xf32>
    %cst_117 = arith.constant 1.000000e+00 : f32
    %464 = vector.broadcast %cst_117 : f32 to vector<16x16xf32>
    %465 = arith.addf %464, %463 : vector<16x16xf32>
    %cst_118 = arith.constant 1.000000e+00 : f32
    %466 = vector.broadcast %cst_118 : f32 to vector<16x16xf32>
    %467 = arith.divf %466, %465 : vector<16x16xf32>
    %468 = vector.extract_strided_slice %19 {offsets = [0, 64], sizes = [16, 16], strides = [1, 1]} : vector<16x96xf32> to vector<16x16xf32>
    %469 = vector.extract_strided_slice %427 {offsets = [0, 64], sizes = [16, 16], strides = [1, 1]} : vector<16x96xf32> to vector<16x16xf32>
    %470 = arith.addf %468, %469 : vector<16x16xf32>
    %cst_119 = arith.constant 0.000000e+00 : f32
    %471 = vector.broadcast %cst_119 : f32 to vector<16x16xf32>
    %472 = arith.subf %471, %470 : vector<16x16xf32>
    %473 = math.exp %472 : vector<16x16xf32>
    %cst_120 = arith.constant 1.000000e+00 : f32
    %474 = vector.broadcast %cst_120 : f32 to vector<16x16xf32>
    %475 = arith.addf %474, %473 : vector<16x16xf32>
    %cst_121 = arith.constant 1.000000e+00 : f32
    %476 = vector.broadcast %cst_121 : f32 to vector<16x16xf32>
    %477 = arith.divf %476, %475 : vector<16x16xf32>
    %478 = vector.extract_strided_slice %19 {offsets = [0, 80], sizes = [16, 16], strides = [1, 1]} : vector<16x96xf32> to vector<16x16xf32>
    %479 = vector.extract_strided_slice %427 {offsets = [0, 80], sizes = [16, 16], strides = [1, 1]} : vector<16x96xf32> to vector<16x16xf32>
    %480 = arith.mulf %467, %479 : vector<16x16xf32>
    %481 = arith.addf %478, %480 : vector<16x16xf32>
    %482 = math.tanh %481 : vector<16x16xf32>
    %cst_122 = arith.constant 1.000000e+00 : f32
    %483 = vector.broadcast %cst_122 : f32 to vector<16x16xf32>
    %484 = arith.subf %483, %477 : vector<16x16xf32>
    %485 = arith.mulf %484, %482 : vector<16x16xf32>
    %486 = arith.mulf %477, %423 : vector<16x16xf32>
    %487 = arith.addf %485, %486 : vector<16x16xf32>
    %488 = tpu.concatenate %457, %487 in 1 : vector<16x16xf32>, vector<16x16xf32> -> vector<16x32xf32>
    %cst_123 = arith.constant dense<0.000000e+00> : vector<16x96xf32>
    %489 = tpu.matmul %488, %12, %cst_123 {dimension_numbers = #tpu.dot_dimension_numbers<[1], [0], [0], [1], [0, 0, 1, 1], [], []>} : vector<16x32xf32>, vector<32x96xf32>, vector<16x96xf32> -> vector<16x96xf32>
    %490 = vector.broadcast %13 : vector<1x96xf32> to vector<16x96xf32>
    %491 = arith.addf %489, %490 : vector<16x96xf32>
    %492 = vector.extract_strided_slice %37 {offsets = [0, 0], sizes = [16, 16], strides = [1, 1]} : vector<16x96xf32> to vector<16x16xf32>
    %493 = vector.extract_strided_slice %491 {offsets = [0, 0], sizes = [16, 16], strides = [1, 1]} : vector<16x96xf32> to vector<16x16xf32>
    %494 = arith.addf %492, %493 : vector<16x16xf32>
    %cst_124 = arith.constant 0.000000e+00 : f32
    %495 = vector.broadcast %cst_124 : f32 to vector<16x16xf32>
    %496 = arith.subf %495, %494 : vector<16x16xf32>
    %497 = math.exp %496 : vector<16x16xf32>
    %cst_125 = arith.constant 1.000000e+00 : f32
    %498 = vector.broadcast %cst_125 : f32 to vector<16x16xf32>
    %499 = arith.addf %498, %497 : vector<16x16xf32>
    %cst_126 = arith.constant 1.000000e+00 : f32
    %500 = vector.broadcast %cst_126 : f32 to vector<16x16xf32>
    %501 = arith.divf %500, %499 : vector<16x16xf32>
    %502 = vector.extract_strided_slice %37 {offsets = [0, 16], sizes = [16, 16], strides = [1, 1]} : vector<16x96xf32> to vector<16x16xf32>
    %503 = vector.extract_strided_slice %491 {offsets = [0, 16], sizes = [16, 16], strides = [1, 1]} : vector<16x96xf32> to vector<16x16xf32>
    %504 = arith.addf %502, %503 : vector<16x16xf32>
    %cst_127 = arith.constant 0.000000e+00 : f32
    %505 = vector.broadcast %cst_127 : f32 to vector<16x16xf32>
    %506 = arith.subf %505, %504 : vector<16x16xf32>
    %507 = math.exp %506 : vector<16x16xf32>
    %cst_128 = arith.constant 1.000000e+00 : f32
    %508 = vector.broadcast %cst_128 : f32 to vector<16x16xf32>
    %509 = arith.addf %508, %507 : vector<16x16xf32>
    %cst_129 = arith.constant 1.000000e+00 : f32
    %510 = vector.broadcast %cst_129 : f32 to vector<16x16xf32>
    %511 = arith.divf %510, %509 : vector<16x16xf32>
    %512 = vector.extract_strided_slice %37 {offsets = [0, 32], sizes = [16, 16], strides = [1, 1]} : vector<16x96xf32> to vector<16x16xf32>
    %513 = vector.extract_strided_slice %491 {offsets = [0, 32], sizes = [16, 16], strides = [1, 1]} : vector<16x96xf32> to vector<16x16xf32>
    %514 = arith.mulf %501, %513 : vector<16x16xf32>
    %515 = arith.addf %512, %514 : vector<16x16xf32>
    %516 = math.tanh %515 : vector<16x16xf32>
    %cst_130 = arith.constant 1.000000e+00 : f32
    %517 = vector.broadcast %cst_130 : f32 to vector<16x16xf32>
    %518 = arith.subf %517, %511 : vector<16x16xf32>
    %519 = arith.mulf %518, %516 : vector<16x16xf32>
    %520 = arith.mulf %511, %457 : vector<16x16xf32>
    %521 = arith.addf %519, %520 : vector<16x16xf32>
    %522 = vector.extract_strided_slice %16 {offsets = [0, 48], sizes = [16, 16], strides = [1, 1]} : vector<16x96xf32> to vector<16x16xf32>
    %523 = vector.extract_strided_slice %491 {offsets = [0, 48], sizes = [16, 16], strides = [1, 1]} : vector<16x96xf32> to vector<16x16xf32>
    %524 = arith.addf %522, %523 : vector<16x16xf32>
    %cst_131 = arith.constant 0.000000e+00 : f32
    %525 = vector.broadcast %cst_131 : f32 to vector<16x16xf32>
    %526 = arith.subf %525, %524 : vector<16x16xf32>
    %527 = math.exp %526 : vector<16x16xf32>
    %cst_132 = arith.constant 1.000000e+00 : f32
    %528 = vector.broadcast %cst_132 : f32 to vector<16x16xf32>
    %529 = arith.addf %528, %527 : vector<16x16xf32>
    %cst_133 = arith.constant 1.000000e+00 : f32
    %530 = vector.broadcast %cst_133 : f32 to vector<16x16xf32>
    %531 = arith.divf %530, %529 : vector<16x16xf32>
    %532 = vector.extract_strided_slice %16 {offsets = [0, 64], sizes = [16, 16], strides = [1, 1]} : vector<16x96xf32> to vector<16x16xf32>
    %533 = vector.extract_strided_slice %491 {offsets = [0, 64], sizes = [16, 16], strides = [1, 1]} : vector<16x96xf32> to vector<16x16xf32>
    %534 = arith.addf %532, %533 : vector<16x16xf32>
    %cst_134 = arith.constant 0.000000e+00 : f32
    %535 = vector.broadcast %cst_134 : f32 to vector<16x16xf32>
    %536 = arith.subf %535, %534 : vector<16x16xf32>
    %537 = math.exp %536 : vector<16x16xf32>
    %cst_135 = arith.constant 1.000000e+00 : f32
    %538 = vector.broadcast %cst_135 : f32 to vector<16x16xf32>
    %539 = arith.addf %538, %537 : vector<16x16xf32>
    %cst_136 = arith.constant 1.000000e+00 : f32
    %540 = vector.broadcast %cst_136 : f32 to vector<16x16xf32>
    %541 = arith.divf %540, %539 : vector<16x16xf32>
    %542 = vector.extract_strided_slice %16 {offsets = [0, 80], sizes = [16, 16], strides = [1, 1]} : vector<16x96xf32> to vector<16x16xf32>
    %543 = vector.extract_strided_slice %491 {offsets = [0, 80], sizes = [16, 16], strides = [1, 1]} : vector<16x96xf32> to vector<16x16xf32>
    %544 = arith.mulf %531, %543 : vector<16x16xf32>
    %545 = arith.addf %542, %544 : vector<16x16xf32>
    %546 = math.tanh %545 : vector<16x16xf32>
    %cst_137 = arith.constant 1.000000e+00 : f32
    %547 = vector.broadcast %cst_137 : f32 to vector<16x16xf32>
    %548 = arith.subf %547, %541 : vector<16x16xf32>
    %549 = arith.mulf %548, %546 : vector<16x16xf32>
    %550 = arith.mulf %541, %487 : vector<16x16xf32>
    %551 = arith.addf %549, %550 : vector<16x16xf32>
    %552 = tpu.concatenate %73, %551 in 1 : vector<16x16xf32>, vector<16x16xf32> -> vector<16x32xf32>
    %553 = tpu.concatenate %137, %487 in 1 : vector<16x16xf32>, vector<16x16xf32> -> vector<16x32xf32>
    %554 = tpu.concatenate %201, %423 in 1 : vector<16x16xf32>, vector<16x16xf32> -> vector<16x32xf32>
    %555 = tpu.concatenate %265, %359 in 1 : vector<16x16xf32>, vector<16x16xf32> -> vector<16x32xf32>
    %556 = tpu.concatenate %329, %295 in 1 : vector<16x16xf32>, vector<16x16xf32> -> vector<16x32xf32>
    %557 = tpu.concatenate %393, %231 in 1 : vector<16x16xf32>, vector<16x16xf32> -> vector<16x32xf32>
    %558 = tpu.concatenate %457, %167 in 1 : vector<16x16xf32>, vector<16x16xf32> -> vector<16x32xf32>
    %559 = tpu.concatenate %521, %103 in 1 : vector<16x16xf32>, vector<16x16xf32> -> vector<16x32xf32>
    %560 = tpu.concatenate %552, %553, %554, %555, %556, %557, %558, %559 in 0 : vector<16x32xf32>, vector<16x32xf32>, vector<16x32xf32>, vector<16x32xf32>, vector<16x32xf32>, vector<16x32xf32>, vector<16x32xf32>, vector<16x32xf32> -> vector<128x32xf32>
    %c0_138 = arith.constant 0 : index
    %c0_139 = arith.constant 0 : index
    %561 = vector.load %arg6[%c0_138, %c0_139] : memref<1x32xf32, #tpu.memory_space<vmem>>, vector<1x32xf32>
    %c0_140 = arith.constant 0 : index
    %c0_141 = arith.constant 0 : index
    %562 = vector.load %arg7[%c0_140, %c0_141] : memref<1x32xf32, #tpu.memory_space<vmem>>, vector<1x32xf32>
    %c0_142 = arith.constant 0 : index
    %c0_143 = arith.constant 0 : index
    %563 = vector.load %arg8[%c0_142, %c0_143] : memref<1x32xf32, #tpu.memory_space<vmem>>, vector<1x32xf32>
    %c0_144 = arith.constant 0 : index
    %c0_145 = arith.constant 0 : index
    %564 = vector.load %arg9[%c0_144, %c0_145] : memref<128x96xf32, #tpu.memory_space<vmem>>, vector<128x96xf32>
    %c0_146 = arith.constant 0 : index
    %c0_147 = arith.constant 0 : index
    %565 = vector.load %arg11[%c0_146, %c0_147] : memref<1x96xf32, #tpu.memory_space<vmem>>, vector<1x96xf32>
    %566 = tpu.iota {dimensions = array<i32: 0>} : vector<8x128xi32>
    %567 = tpu.iota {dimensions = array<i32: 1>} : vector<8x128xi32>
    %c16_i32 = arith.constant 16 : i32
    %568 = vector.broadcast %c16_i32 : i32 to vector<8x128xi32>
    %569 = arith.muli %566, %568 : vector<8x128xi32>
    %c0_i32 = arith.constant 0 : i32
    %570 = vector.broadcast %c0_i32 : i32 to vector<8x128xi32>
    %571 = arith.addi %569, %570 : vector<8x128xi32>
    %572 = arith.cmpi eq, %567, %571 : vector<8x128xi32>
    %573 = arith.extui %572 : vector<8x128xi1> to vector<8x128xi32>
    %574 = arith.sitofp %573 : vector<8x128xi32> to vector<8x128xf32>
    %cst_148 = arith.constant dense<0.000000e+00> : vector<8x32xf32>
    %575 = tpu.matmul %574, %560, %cst_148 {dimension_numbers = #tpu.dot_dimension_numbers<[1], [0], [0], [1], [0, 0, 1, 1], [], []>} : vector<8x128xf32>, vector<128x32xf32>, vector<8x32xf32> -> vector<8x32xf32>
    %576 = tpu.iota {dimensions = array<i32: 0>} : vector<8x128xi32>
    %577 = tpu.iota {dimensions = array<i32: 1>} : vector<8x128xi32>
    %c16_i32_149 = arith.constant 16 : i32
    %578 = vector.broadcast %c16_i32_149 : i32 to vector<8x128xi32>
    %579 = arith.muli %576, %578 : vector<8x128xi32>
    %c8_i32 = arith.constant 8 : i32
    %580 = vector.broadcast %c8_i32 : i32 to vector<8x128xi32>
    %581 = arith.addi %579, %580 : vector<8x128xi32>
    %582 = arith.cmpi eq, %577, %581 : vector<8x128xi32>
    %583 = arith.extui %582 : vector<8x128xi1> to vector<8x128xi32>
    %584 = arith.sitofp %583 : vector<8x128xi32> to vector<8x128xf32>
    %cst_150 = arith.constant dense<0.000000e+00> : vector<8x32xf32>
    %585 = tpu.matmul %584, %560, %cst_150 {dimension_numbers = #tpu.dot_dimension_numbers<[1], [0], [0], [1], [0, 0, 1, 1], [], []>} : vector<8x128xf32>, vector<128x32xf32>, vector<8x32xf32> -> vector<8x32xf32>
    %cst_151 = arith.constant dense<0.000000e+00> : vector<8x1xf32>
    %586 = tpu.matmul %575, %561, %cst_151 {dimension_numbers = #tpu.dot_dimension_numbers<[1], [1], [0], [0], [0, 0, 1, 0], [], []>} : vector<8x32xf32>, vector<1x32xf32>, vector<8x1xf32> -> vector<8x1xf32>
    %cst_152 = arith.constant dense<0.000000e+00> : vector<1x8xf32>
    %587 = tpu.matmul %562, %585, %cst_152 {dimension_numbers = #tpu.dot_dimension_numbers<[1], [1], [0], [0], [0, 0, 1, 0], [], []>} : vector<1x32xf32>, vector<8x32xf32>, vector<1x8xf32> -> vector<1x8xf32>
    %588 = vector.broadcast %563 : vector<1x32xf32> to vector<8x32xf32>
    %589 = arith.mulf %575, %588 : vector<8x32xf32>
    %cst_153 = arith.constant dense<0.000000e+00> : vector<8x8xf32>
    %590 = tpu.matmul %589, %585, %cst_153 {dimension_numbers = #tpu.dot_dimension_numbers<[1], [1], [0], [0], [0, 0, 1, 0], [], []>} : vector<8x32xf32>, vector<8x32xf32>, vector<8x8xf32> -> vector<8x8xf32>
    %591 = vector.broadcast %586 : vector<8x1xf32> to vector<8x8xf32>
    %592 = arith.addf %590, %591 : vector<8x8xf32>
    %593 = vector.broadcast %587 : vector<1x8xf32> to vector<8x8xf32>
    %594 = arith.addf %592, %593 : vector<8x8xf32>
    %cst_154 = arith.constant dense<0xFF800000> : vector<8xf32>
    %595 = vector.multi_reduction <maximumf>, %594, %cst_154 [1] : vector<8x8xf32> to vector<8xf32>
    %596 = vector.shape_cast %595 : vector<8xf32> to vector<8x1xf32>
    %597 = vector.broadcast %596 : vector<8x1xf32> to vector<8x8xf32>
    %598 = arith.subf %594, %597 : vector<8x8xf32>
    %599 = math.exp %598 : vector<8x8xf32>
    %cst_155 = arith.constant dense<0.000000e+00> : vector<8xf32>
    %600 = vector.multi_reduction <add>, %599, %cst_155 [1] : vector<8x8xf32> to vector<8xf32>
    %601 = vector.shape_cast %600 : vector<8xf32> to vector<8x1xf32>
    %602 = vector.broadcast %601 : vector<8x1xf32> to vector<8x8xf32>
    %603 = arith.divf %599, %602 : vector<8x8xf32>
    %cst_156 = arith.constant dense<0.000000e+00> : vector<8x32xf32>
    %604 = tpu.matmul %603, %585, %cst_156 {dimension_numbers = #tpu.dot_dimension_numbers<[1], [0], [0], [1], [0, 0, 1, 1], [], []>} : vector<8x8xf32>, vector<8x32xf32>, vector<8x32xf32> -> vector<8x32xf32>
    %cst_157 = arith.constant dense<0xFF800000> : vector<1xf32>
    %605 = vector.multi_reduction <maximumf>, %596, %cst_157 [0] : vector<8x1xf32> to vector<1xf32>
    %606 = vector.shape_cast %605 : vector<1xf32> to vector<1x1xf32>
    %607 = vector.broadcast %606 : vector<1x1xf32> to vector<8x1xf32>
    %608 = arith.subf %596, %607 : vector<8x1xf32>
    %609 = math.exp %608 : vector<8x1xf32>
    %cst_158 = arith.constant dense<0.000000e+00> : vector<1xf32>
    %610 = vector.multi_reduction <add>, %609, %cst_158 [0] : vector<8x1xf32> to vector<1xf32>
    %611 = vector.shape_cast %610 : vector<1xf32> to vector<1x1xf32>
    %612 = vector.broadcast %611 : vector<1x1xf32> to vector<8x1xf32>
    %613 = arith.divf %609, %612 : vector<8x1xf32>
    %614 = vector.broadcast %613 : vector<8x1xf32> to vector<8x32xf32>
    %615 = arith.mulf %614, %575 : vector<8x32xf32>
    %cst_159 = arith.constant dense<0.000000e+00> : vector<32xf32>
    %616 = vector.multi_reduction <add>, %615, %cst_159 [0] : vector<8x32xf32> to vector<32xf32>
    %617 = vector.shape_cast %616 : vector<32xf32> to vector<1x32xf32>
    %618 = arith.mulf %575, %604 : vector<8x32xf32>
    %619 = vector.broadcast %617 : vector<1x32xf32> to vector<8x32xf32>
    %620 = arith.mulf %575, %619 : vector<8x32xf32>
    %621 = tpu.concatenate %575, %604, %618, %620 in 1 : vector<8x32xf32>, vector<8x32xf32>, vector<8x32xf32>, vector<8x32xf32> -> vector<8x128xf32>
    %cst_160 = arith.constant dense<0.000000e+00> : vector<8x96xf32>
    %622 = tpu.matmul %621, %564, %cst_160 {dimension_numbers = #tpu.dot_dimension_numbers<[1], [0], [0], [1], [0, 0, 1, 1], [], []>} : vector<8x128xf32>, vector<128x96xf32>, vector<8x96xf32> -> vector<8x96xf32>
    %623 = vector.broadcast %565 : vector<1x96xf32> to vector<8x96xf32>
    %624 = arith.addf %622, %623 : vector<8x96xf32>
    %625 = tpu.iota {dimensions = array<i32: 0>} : vector<8x128xi32>
    %626 = tpu.iota {dimensions = array<i32: 1>} : vector<8x128xi32>
    %c16_i32_161 = arith.constant 16 : i32
    %627 = vector.broadcast %c16_i32_161 : i32 to vector<8x128xi32>
    %628 = arith.muli %625, %627 : vector<8x128xi32>
    %c1_i32 = arith.constant 1 : i32
    %629 = vector.broadcast %c1_i32 : i32 to vector<8x128xi32>
    %630 = arith.addi %628, %629 : vector<8x128xi32>
    %631 = arith.cmpi eq, %626, %630 : vector<8x128xi32>
    %632 = arith.extui %631 : vector<8x128xi1> to vector<8x128xi32>
    %633 = arith.sitofp %632 : vector<8x128xi32> to vector<8x128xf32>
    %cst_162 = arith.constant dense<0.000000e+00> : vector<8x32xf32>
    %634 = tpu.matmul %633, %560, %cst_162 {dimension_numbers = #tpu.dot_dimension_numbers<[1], [0], [0], [1], [0, 0, 1, 1], [], []>} : vector<8x128xf32>, vector<128x32xf32>, vector<8x32xf32> -> vector<8x32xf32>
    %635 = tpu.iota {dimensions = array<i32: 0>} : vector<8x128xi32>
    %636 = tpu.iota {dimensions = array<i32: 1>} : vector<8x128xi32>
    %c16_i32_163 = arith.constant 16 : i32
    %637 = vector.broadcast %c16_i32_163 : i32 to vector<8x128xi32>
    %638 = arith.muli %635, %637 : vector<8x128xi32>
    %c9_i32 = arith.constant 9 : i32
    %639 = vector.broadcast %c9_i32 : i32 to vector<8x128xi32>
    %640 = arith.addi %638, %639 : vector<8x128xi32>
    %641 = arith.cmpi eq, %636, %640 : vector<8x128xi32>
    %642 = arith.extui %641 : vector<8x128xi1> to vector<8x128xi32>
    %643 = arith.sitofp %642 : vector<8x128xi32> to vector<8x128xf32>
    %cst_164 = arith.constant dense<0.000000e+00> : vector<8x32xf32>
    %644 = tpu.matmul %643, %560, %cst_164 {dimension_numbers = #tpu.dot_dimension_numbers<[1], [0], [0], [1], [0, 0, 1, 1], [], []>} : vector<8x128xf32>, vector<128x32xf32>, vector<8x32xf32> -> vector<8x32xf32>
    %cst_165 = arith.constant dense<0.000000e+00> : vector<8x1xf32>
    %645 = tpu.matmul %634, %561, %cst_165 {dimension_numbers = #tpu.dot_dimension_numbers<[1], [1], [0], [0], [0, 0, 1, 0], [], []>} : vector<8x32xf32>, vector<1x32xf32>, vector<8x1xf32> -> vector<8x1xf32>
    %cst_166 = arith.constant dense<0.000000e+00> : vector<1x8xf32>
    %646 = tpu.matmul %562, %644, %cst_166 {dimension_numbers = #tpu.dot_dimension_numbers<[1], [1], [0], [0], [0, 0, 1, 0], [], []>} : vector<1x32xf32>, vector<8x32xf32>, vector<1x8xf32> -> vector<1x8xf32>
    %647 = vector.broadcast %563 : vector<1x32xf32> to vector<8x32xf32>
    %648 = arith.mulf %634, %647 : vector<8x32xf32>
    %cst_167 = arith.constant dense<0.000000e+00> : vector<8x8xf32>
    %649 = tpu.matmul %648, %644, %cst_167 {dimension_numbers = #tpu.dot_dimension_numbers<[1], [1], [0], [0], [0, 0, 1, 0], [], []>} : vector<8x32xf32>, vector<8x32xf32>, vector<8x8xf32> -> vector<8x8xf32>
    %650 = vector.broadcast %645 : vector<8x1xf32> to vector<8x8xf32>
    %651 = arith.addf %649, %650 : vector<8x8xf32>
    %652 = vector.broadcast %646 : vector<1x8xf32> to vector<8x8xf32>
    %653 = arith.addf %651, %652 : vector<8x8xf32>
    %cst_168 = arith.constant dense<0xFF800000> : vector<8xf32>
    %654 = vector.multi_reduction <maximumf>, %653, %cst_168 [1] : vector<8x8xf32> to vector<8xf32>
    %655 = vector.shape_cast %654 : vector<8xf32> to vector<8x1xf32>
    %656 = vector.broadcast %655 : vector<8x1xf32> to vector<8x8xf32>
    %657 = arith.subf %653, %656 : vector<8x8xf32>
    %658 = math.exp %657 : vector<8x8xf32>
    %cst_169 = arith.constant dense<0.000000e+00> : vector<8xf32>
    %659 = vector.multi_reduction <add>, %658, %cst_169 [1] : vector<8x8xf32> to vector<8xf32>
    %660 = vector.shape_cast %659 : vector<8xf32> to vector<8x1xf32>
    %661 = vector.broadcast %660 : vector<8x1xf32> to vector<8x8xf32>
    %662 = arith.divf %658, %661 : vector<8x8xf32>
    %cst_170 = arith.constant dense<0.000000e+00> : vector<8x32xf32>
    %663 = tpu.matmul %662, %644, %cst_170 {dimension_numbers = #tpu.dot_dimension_numbers<[1], [0], [0], [1], [0, 0, 1, 1], [], []>} : vector<8x8xf32>, vector<8x32xf32>, vector<8x32xf32> -> vector<8x32xf32>
    %cst_171 = arith.constant dense<0xFF800000> : vector<1xf32>
    %664 = vector.multi_reduction <maximumf>, %655, %cst_171 [0] : vector<8x1xf32> to vector<1xf32>
    %665 = vector.shape_cast %664 : vector<1xf32> to vector<1x1xf32>
    %666 = vector.broadcast %665 : vector<1x1xf32> to vector<8x1xf32>
    %667 = arith.subf %655, %666 : vector<8x1xf32>
    %668 = math.exp %667 : vector<8x1xf32>
    %cst_172 = arith.constant dense<0.000000e+00> : vector<1xf32>
    %669 = vector.multi_reduction <add>, %668, %cst_172 [0] : vector<8x1xf32> to vector<1xf32>
    %670 = vector.shape_cast %669 : vector<1xf32> to vector<1x1xf32>
    %671 = vector.broadcast %670 : vector<1x1xf32> to vector<8x1xf32>
    %672 = arith.divf %668, %671 : vector<8x1xf32>
    %673 = vector.broadcast %672 : vector<8x1xf32> to vector<8x32xf32>
    %674 = arith.mulf %673, %634 : vector<8x32xf32>
    %cst_173 = arith.constant dense<0.000000e+00> : vector<32xf32>
    %675 = vector.multi_reduction <add>, %674, %cst_173 [0] : vector<8x32xf32> to vector<32xf32>
    %676 = vector.shape_cast %675 : vector<32xf32> to vector<1x32xf32>
    %677 = arith.mulf %634, %663 : vector<8x32xf32>
    %678 = vector.broadcast %676 : vector<1x32xf32> to vector<8x32xf32>
    %679 = arith.mulf %634, %678 : vector<8x32xf32>
    %680 = tpu.concatenate %634, %663, %677, %679 in 1 : vector<8x32xf32>, vector<8x32xf32>, vector<8x32xf32>, vector<8x32xf32> -> vector<8x128xf32>
    %cst_174 = arith.constant dense<0.000000e+00> : vector<8x96xf32>
    %681 = tpu.matmul %680, %564, %cst_174 {dimension_numbers = #tpu.dot_dimension_numbers<[1], [0], [0], [1], [0, 0, 1, 1], [], []>} : vector<8x128xf32>, vector<128x96xf32>, vector<8x96xf32> -> vector<8x96xf32>
    %682 = vector.broadcast %565 : vector<1x96xf32> to vector<8x96xf32>
    %683 = arith.addf %681, %682 : vector<8x96xf32>
    %684 = tpu.concatenate %624, %683 in 0 : vector<8x96xf32>, vector<8x96xf32> -> vector<16x96xf32>
    %685 = tpu.iota {dimensions = array<i32: 0>} : vector<8x16xi32>
    %686 = tpu.iota {dimensions = array<i32: 1>} : vector<8x16xi32>
    %c8_i32_175 = arith.constant 8 : i32
    %687 = vector.broadcast %c8_i32_175 : i32 to vector<8x16xi32>
    %688 = arith.muli %685, %687 : vector<8x16xi32>
    %c0_i32_176 = arith.constant 0 : i32
    %689 = vector.broadcast %c0_i32_176 : i32 to vector<8x16xi32>
    %690 = arith.addi %688, %689 : vector<8x16xi32>
    %691 = arith.cmpi eq, %686, %690 : vector<8x16xi32>
    %c2_i32 = arith.constant 2 : i32
    %692 = vector.broadcast %c2_i32 : i32 to vector<8x16xi32>
    %693 = arith.cmpi slt, %685, %692 : vector<8x16xi32>
    %694 = arith.andi %691, %693 : vector<8x16xi1>
    %cst_177 = arith.constant 1.000000e+00 : f32
    %cst_178 = arith.constant 0.000000e+00 : f32
    %695 = vector.broadcast %cst_177 : f32 to vector<8x16xf32>
    %696 = vector.broadcast %cst_178 : f32 to vector<8x16xf32>
    %697 = arith.select %694, %695, %696 : vector<8x16xi1>, vector<8x16xf32>
    %cst_179 = arith.constant dense<0.000000e+00> : vector<8x96xf32>
    %698 = tpu.matmul %697, %684, %cst_179 {dimension_numbers = #tpu.dot_dimension_numbers<[1], [0], [0], [1], [0, 0, 1, 1], [], []>} : vector<8x16xf32>, vector<16x96xf32>, vector<8x96xf32> -> vector<8x96xf32>
    %699 = tpu.iota {dimensions = array<i32: 0>} : vector<8x16xi32>
    %700 = tpu.iota {dimensions = array<i32: 1>} : vector<8x16xi32>
    %c8_i32_180 = arith.constant 8 : i32
    %701 = vector.broadcast %c8_i32_180 : i32 to vector<8x16xi32>
    %702 = arith.muli %699, %701 : vector<8x16xi32>
    %c1_i32_181 = arith.constant 1 : i32
    %703 = vector.broadcast %c1_i32_181 : i32 to vector<8x16xi32>
    %704 = arith.addi %702, %703 : vector<8x16xi32>
    %705 = arith.cmpi eq, %700, %704 : vector<8x16xi32>
    %c2_i32_182 = arith.constant 2 : i32
    %706 = vector.broadcast %c2_i32_182 : i32 to vector<8x16xi32>
    %707 = arith.cmpi slt, %699, %706 : vector<8x16xi32>
    %708 = arith.andi %705, %707 : vector<8x16xi1>
    %cst_183 = arith.constant 1.000000e+00 : f32
    %cst_184 = arith.constant 0.000000e+00 : f32
    %709 = vector.broadcast %cst_183 : f32 to vector<8x16xf32>
    %710 = vector.broadcast %cst_184 : f32 to vector<8x16xf32>
    %711 = arith.select %708, %709, %710 : vector<8x16xi1>, vector<8x16xf32>
    %cst_185 = arith.constant dense<0.000000e+00> : vector<8x96xf32>
    %712 = tpu.matmul %711, %684, %cst_185 {dimension_numbers = #tpu.dot_dimension_numbers<[1], [0], [0], [1], [0, 0, 1, 1], [], []>} : vector<8x16xf32>, vector<16x96xf32>, vector<8x96xf32> -> vector<8x96xf32>
    %713 = tpu.iota {dimensions = array<i32: 0>} : vector<8x16xi32>
    %714 = tpu.iota {dimensions = array<i32: 1>} : vector<8x16xi32>
    %c8_i32_186 = arith.constant 8 : i32
    %715 = vector.broadcast %c8_i32_186 : i32 to vector<8x16xi32>
    %716 = arith.muli %713, %715 : vector<8x16xi32>
    %c2_i32_187 = arith.constant 2 : i32
    %717 = vector.broadcast %c2_i32_187 : i32 to vector<8x16xi32>
    %718 = arith.addi %716, %717 : vector<8x16xi32>
    %719 = arith.cmpi eq, %714, %718 : vector<8x16xi32>
    %c2_i32_188 = arith.constant 2 : i32
    %720 = vector.broadcast %c2_i32_188 : i32 to vector<8x16xi32>
    %721 = arith.cmpi slt, %713, %720 : vector<8x16xi32>
    %722 = arith.andi %719, %721 : vector<8x16xi1>
    %cst_189 = arith.constant 1.000000e+00 : f32
    %cst_190 = arith.constant 0.000000e+00 : f32
    %723 = vector.broadcast %cst_189 : f32 to vector<8x16xf32>
    %724 = vector.broadcast %cst_190 : f32 to vector<8x16xf32>
    %725 = arith.select %722, %723, %724 : vector<8x16xi1>, vector<8x16xf32>
    %cst_191 = arith.constant dense<0.000000e+00> : vector<8x96xf32>
    %726 = tpu.matmul %725, %684, %cst_191 {dimension_numbers = #tpu.dot_dimension_numbers<[1], [0], [0], [1], [0, 0, 1, 1], [], []>} : vector<8x16xf32>, vector<16x96xf32>, vector<8x96xf32> -> vector<8x96xf32>
    %727 = tpu.iota {dimensions = array<i32: 0>} : vector<8x16xi32>
    %728 = tpu.iota {dimensions = array<i32: 1>} : vector<8x16xi32>
    %c8_i32_192 = arith.constant 8 : i32
    %729 = vector.broadcast %c8_i32_192 : i32 to vector<8x16xi32>
    %730 = arith.muli %727, %729 : vector<8x16xi32>
    %c3_i32 = arith.constant 3 : i32
    %731 = vector.broadcast %c3_i32 : i32 to vector<8x16xi32>
    %732 = arith.addi %730, %731 : vector<8x16xi32>
    %733 = arith.cmpi eq, %728, %732 : vector<8x16xi32>
    %c2_i32_193 = arith.constant 2 : i32
    %734 = vector.broadcast %c2_i32_193 : i32 to vector<8x16xi32>
    %735 = arith.cmpi slt, %727, %734 : vector<8x16xi32>
    %736 = arith.andi %733, %735 : vector<8x16xi1>
    %cst_194 = arith.constant 1.000000e+00 : f32
    %cst_195 = arith.constant 0.000000e+00 : f32
    %737 = vector.broadcast %cst_194 : f32 to vector<8x16xf32>
    %738 = vector.broadcast %cst_195 : f32 to vector<8x16xf32>
    %739 = arith.select %736, %737, %738 : vector<8x16xi1>, vector<8x16xf32>
    %cst_196 = arith.constant dense<0.000000e+00> : vector<8x96xf32>
    %740 = tpu.matmul %739, %684, %cst_196 {dimension_numbers = #tpu.dot_dimension_numbers<[1], [0], [0], [1], [0, 0, 1, 1], [], []>} : vector<8x16xf32>, vector<16x96xf32>, vector<8x96xf32> -> vector<8x96xf32>
    %741 = tpu.iota {dimensions = array<i32: 0>} : vector<8x16xi32>
    %742 = tpu.iota {dimensions = array<i32: 1>} : vector<8x16xi32>
    %c8_i32_197 = arith.constant 8 : i32
    %743 = vector.broadcast %c8_i32_197 : i32 to vector<8x16xi32>
    %744 = arith.muli %741, %743 : vector<8x16xi32>
    %c4_i32 = arith.constant 4 : i32
    %745 = vector.broadcast %c4_i32 : i32 to vector<8x16xi32>
    %746 = arith.addi %744, %745 : vector<8x16xi32>
    %747 = arith.cmpi eq, %742, %746 : vector<8x16xi32>
    %c2_i32_198 = arith.constant 2 : i32
    %748 = vector.broadcast %c2_i32_198 : i32 to vector<8x16xi32>
    %749 = arith.cmpi slt, %741, %748 : vector<8x16xi32>
    %750 = arith.andi %747, %749 : vector<8x16xi1>
    %cst_199 = arith.constant 1.000000e+00 : f32
    %cst_200 = arith.constant 0.000000e+00 : f32
    %751 = vector.broadcast %cst_199 : f32 to vector<8x16xf32>
    %752 = vector.broadcast %cst_200 : f32 to vector<8x16xf32>
    %753 = arith.select %750, %751, %752 : vector<8x16xi1>, vector<8x16xf32>
    %cst_201 = arith.constant dense<0.000000e+00> : vector<8x96xf32>
    %754 = tpu.matmul %753, %684, %cst_201 {dimension_numbers = #tpu.dot_dimension_numbers<[1], [0], [0], [1], [0, 0, 1, 1], [], []>} : vector<8x16xf32>, vector<16x96xf32>, vector<8x96xf32> -> vector<8x96xf32>
    %755 = tpu.iota {dimensions = array<i32: 0>} : vector<8x16xi32>
    %756 = tpu.iota {dimensions = array<i32: 1>} : vector<8x16xi32>
    %c8_i32_202 = arith.constant 8 : i32
    %757 = vector.broadcast %c8_i32_202 : i32 to vector<8x16xi32>
    %758 = arith.muli %755, %757 : vector<8x16xi32>
    %c5_i32 = arith.constant 5 : i32
    %759 = vector.broadcast %c5_i32 : i32 to vector<8x16xi32>
    %760 = arith.addi %758, %759 : vector<8x16xi32>
    %761 = arith.cmpi eq, %756, %760 : vector<8x16xi32>
    %c2_i32_203 = arith.constant 2 : i32
    %762 = vector.broadcast %c2_i32_203 : i32 to vector<8x16xi32>
    %763 = arith.cmpi slt, %755, %762 : vector<8x16xi32>
    %764 = arith.andi %761, %763 : vector<8x16xi1>
    %cst_204 = arith.constant 1.000000e+00 : f32
    %cst_205 = arith.constant 0.000000e+00 : f32
    %765 = vector.broadcast %cst_204 : f32 to vector<8x16xf32>
    %766 = vector.broadcast %cst_205 : f32 to vector<8x16xf32>
    %767 = arith.select %764, %765, %766 : vector<8x16xi1>, vector<8x16xf32>
    %cst_206 = arith.constant dense<0.000000e+00> : vector<8x96xf32>
    %768 = tpu.matmul %767, %684, %cst_206 {dimension_numbers = #tpu.dot_dimension_numbers<[1], [0], [0], [1], [0, 0, 1, 1], [], []>} : vector<8x16xf32>, vector<16x96xf32>, vector<8x96xf32> -> vector<8x96xf32>
    %769 = tpu.iota {dimensions = array<i32: 0>} : vector<8x16xi32>
    %770 = tpu.iota {dimensions = array<i32: 1>} : vector<8x16xi32>
    %c8_i32_207 = arith.constant 8 : i32
    %771 = vector.broadcast %c8_i32_207 : i32 to vector<8x16xi32>
    %772 = arith.muli %769, %771 : vector<8x16xi32>
    %c6_i32 = arith.constant 6 : i32
    %773 = vector.broadcast %c6_i32 : i32 to vector<8x16xi32>
    %774 = arith.addi %772, %773 : vector<8x16xi32>
    %775 = arith.cmpi eq, %770, %774 : vector<8x16xi32>
    %c2_i32_208 = arith.constant 2 : i32
    %776 = vector.broadcast %c2_i32_208 : i32 to vector<8x16xi32>
    %777 = arith.cmpi slt, %769, %776 : vector<8x16xi32>
    %778 = arith.andi %775, %777 : vector<8x16xi1>
    %cst_209 = arith.constant 1.000000e+00 : f32
    %cst_210 = arith.constant 0.000000e+00 : f32
    %779 = vector.broadcast %cst_209 : f32 to vector<8x16xf32>
    %780 = vector.broadcast %cst_210 : f32 to vector<8x16xf32>
    %781 = arith.select %778, %779, %780 : vector<8x16xi1>, vector<8x16xf32>
    %cst_211 = arith.constant dense<0.000000e+00> : vector<8x96xf32>
    %782 = tpu.matmul %781, %684, %cst_211 {dimension_numbers = #tpu.dot_dimension_numbers<[1], [0], [0], [1], [0, 0, 1, 1], [], []>} : vector<8x16xf32>, vector<16x96xf32>, vector<8x96xf32> -> vector<8x96xf32>
    %783 = tpu.iota {dimensions = array<i32: 0>} : vector<8x16xi32>
    %784 = tpu.iota {dimensions = array<i32: 1>} : vector<8x16xi32>
    %c8_i32_212 = arith.constant 8 : i32
    %785 = vector.broadcast %c8_i32_212 : i32 to vector<8x16xi32>
    %786 = arith.muli %783, %785 : vector<8x16xi32>
    %c7_i32 = arith.constant 7 : i32
    %787 = vector.broadcast %c7_i32 : i32 to vector<8x16xi32>
    %788 = arith.addi %786, %787 : vector<8x16xi32>
    %789 = arith.cmpi eq, %784, %788 : vector<8x16xi32>
    %c2_i32_213 = arith.constant 2 : i32
    %790 = vector.broadcast %c2_i32_213 : i32 to vector<8x16xi32>
    %791 = arith.cmpi slt, %783, %790 : vector<8x16xi32>
    %792 = arith.andi %789, %791 : vector<8x16xi1>
    %cst_214 = arith.constant 1.000000e+00 : f32
    %cst_215 = arith.constant 0.000000e+00 : f32
    %793 = vector.broadcast %cst_214 : f32 to vector<8x16xf32>
    %794 = vector.broadcast %cst_215 : f32 to vector<8x16xf32>
    %795 = arith.select %792, %793, %794 : vector<8x16xi1>, vector<8x16xf32>
    %cst_216 = arith.constant dense<0.000000e+00> : vector<8x96xf32>
    %796 = tpu.matmul %795, %684, %cst_216 {dimension_numbers = #tpu.dot_dimension_numbers<[1], [0], [0], [1], [0, 0, 1, 1], [], []>} : vector<8x16xf32>, vector<16x96xf32>, vector<8x96xf32> -> vector<8x96xf32>
    %c0_217 = arith.constant 0 : index
    %c0_218 = arith.constant 0 : index
    %797 = vector.load %arg10[%c0_217, %c0_218] : memref<32x96xf32, #tpu.memory_space<vmem>>, vector<32x96xf32>
    %c0_219 = arith.constant 0 : index
    %c0_220 = arith.constant 0 : index
    %798 = vector.load %arg12[%c0_219, %c0_220] : memref<1x96xf32, #tpu.memory_space<vmem>>, vector<1x96xf32>
    %cst_221 = arith.constant 0.000000e+00 : f32
    %799 = vector.broadcast %cst_221 : f32 to vector<8x16xf32>
    %cst_222 = arith.constant 0.000000e+00 : f32
    %800 = vector.broadcast %cst_222 : f32 to vector<8x16xf32>
    %801 = tpu.concatenate %799, %800 in 1 : vector<8x16xf32>, vector<8x16xf32> -> vector<8x32xf32>
    %cst_223 = arith.constant dense<0.000000e+00> : vector<8x96xf32>
    %802 = tpu.matmul %801, %797, %cst_223 {dimension_numbers = #tpu.dot_dimension_numbers<[1], [0], [0], [1], [0, 0, 1, 1], [], []>} : vector<8x32xf32>, vector<32x96xf32>, vector<8x96xf32> -> vector<8x96xf32>
    %803 = vector.broadcast %798 : vector<1x96xf32> to vector<8x96xf32>
    %804 = arith.addf %802, %803 : vector<8x96xf32>
    %805 = vector.extract_strided_slice %698 {offsets = [0, 0], sizes = [8, 16], strides = [1, 1]} : vector<8x96xf32> to vector<8x16xf32>
    %806 = vector.extract_strided_slice %804 {offsets = [0, 0], sizes = [8, 16], strides = [1, 1]} : vector<8x96xf32> to vector<8x16xf32>
    %807 = arith.addf %805, %806 : vector<8x16xf32>
    %cst_224 = arith.constant 0.000000e+00 : f32
    %808 = vector.broadcast %cst_224 : f32 to vector<8x16xf32>
    %809 = arith.subf %808, %807 : vector<8x16xf32>
    %810 = math.exp %809 : vector<8x16xf32>
    %cst_225 = arith.constant 1.000000e+00 : f32
    %811 = vector.broadcast %cst_225 : f32 to vector<8x16xf32>
    %812 = arith.addf %811, %810 : vector<8x16xf32>
    %cst_226 = arith.constant 1.000000e+00 : f32
    %813 = vector.broadcast %cst_226 : f32 to vector<8x16xf32>
    %814 = arith.divf %813, %812 : vector<8x16xf32>
    %815 = vector.extract_strided_slice %698 {offsets = [0, 16], sizes = [8, 16], strides = [1, 1]} : vector<8x96xf32> to vector<8x16xf32>
    %816 = vector.extract_strided_slice %804 {offsets = [0, 16], sizes = [8, 16], strides = [1, 1]} : vector<8x96xf32> to vector<8x16xf32>
    %817 = arith.addf %815, %816 : vector<8x16xf32>
    %cst_227 = arith.constant 0.000000e+00 : f32
    %818 = vector.broadcast %cst_227 : f32 to vector<8x16xf32>
    %819 = arith.subf %818, %817 : vector<8x16xf32>
    %820 = math.exp %819 : vector<8x16xf32>
    %cst_228 = arith.constant 1.000000e+00 : f32
    %821 = vector.broadcast %cst_228 : f32 to vector<8x16xf32>
    %822 = arith.addf %821, %820 : vector<8x16xf32>
    %cst_229 = arith.constant 1.000000e+00 : f32
    %823 = vector.broadcast %cst_229 : f32 to vector<8x16xf32>
    %824 = arith.divf %823, %822 : vector<8x16xf32>
    %825 = vector.extract_strided_slice %698 {offsets = [0, 32], sizes = [8, 16], strides = [1, 1]} : vector<8x96xf32> to vector<8x16xf32>
    %826 = vector.extract_strided_slice %804 {offsets = [0, 32], sizes = [8, 16], strides = [1, 1]} : vector<8x96xf32> to vector<8x16xf32>
    %827 = arith.mulf %814, %826 : vector<8x16xf32>
    %828 = arith.addf %825, %827 : vector<8x16xf32>
    %829 = math.tanh %828 : vector<8x16xf32>
    %cst_230 = arith.constant 1.000000e+00 : f32
    %830 = vector.broadcast %cst_230 : f32 to vector<8x16xf32>
    %831 = arith.subf %830, %824 : vector<8x16xf32>
    %832 = arith.mulf %831, %829 : vector<8x16xf32>
    %833 = arith.mulf %824, %799 : vector<8x16xf32>
    %834 = arith.addf %832, %833 : vector<8x16xf32>
    %835 = vector.extract_strided_slice %796 {offsets = [0, 48], sizes = [8, 16], strides = [1, 1]} : vector<8x96xf32> to vector<8x16xf32>
    %836 = vector.extract_strided_slice %804 {offsets = [0, 48], sizes = [8, 16], strides = [1, 1]} : vector<8x96xf32> to vector<8x16xf32>
    %837 = arith.addf %835, %836 : vector<8x16xf32>
    %cst_231 = arith.constant 0.000000e+00 : f32
    %838 = vector.broadcast %cst_231 : f32 to vector<8x16xf32>
    %839 = arith.subf %838, %837 : vector<8x16xf32>
    %840 = math.exp %839 : vector<8x16xf32>
    %cst_232 = arith.constant 1.000000e+00 : f32
    %841 = vector.broadcast %cst_232 : f32 to vector<8x16xf32>
    %842 = arith.addf %841, %840 : vector<8x16xf32>
    %cst_233 = arith.constant 1.000000e+00 : f32
    %843 = vector.broadcast %cst_233 : f32 to vector<8x16xf32>
    %844 = arith.divf %843, %842 : vector<8x16xf32>
    %845 = vector.extract_strided_slice %796 {offsets = [0, 64], sizes = [8, 16], strides = [1, 1]} : vector<8x96xf32> to vector<8x16xf32>
    %846 = vector.extract_strided_slice %804 {offsets = [0, 64], sizes = [8, 16], strides = [1, 1]} : vector<8x96xf32> to vector<8x16xf32>
    %847 = arith.addf %845, %846 : vector<8x16xf32>
    %cst_234 = arith.constant 0.000000e+00 : f32
    %848 = vector.broadcast %cst_234 : f32 to vector<8x16xf32>
    %849 = arith.subf %848, %847 : vector<8x16xf32>
    %850 = math.exp %849 : vector<8x16xf32>
    %cst_235 = arith.constant 1.000000e+00 : f32
    %851 = vector.broadcast %cst_235 : f32 to vector<8x16xf32>
    %852 = arith.addf %851, %850 : vector<8x16xf32>
    %cst_236 = arith.constant 1.000000e+00 : f32
    %853 = vector.broadcast %cst_236 : f32 to vector<8x16xf32>
    %854 = arith.divf %853, %852 : vector<8x16xf32>
    %855 = vector.extract_strided_slice %796 {offsets = [0, 80], sizes = [8, 16], strides = [1, 1]} : vector<8x96xf32> to vector<8x16xf32>
    %856 = vector.extract_strided_slice %804 {offsets = [0, 80], sizes = [8, 16], strides = [1, 1]} : vector<8x96xf32> to vector<8x16xf32>
    %857 = arith.mulf %844, %856 : vector<8x16xf32>
    %858 = arith.addf %855, %857 : vector<8x16xf32>
    %859 = math.tanh %858 : vector<8x16xf32>
    %cst_237 = arith.constant 1.000000e+00 : f32
    %860 = vector.broadcast %cst_237 : f32 to vector<8x16xf32>
    %861 = arith.subf %860, %854 : vector<8x16xf32>
    %862 = arith.mulf %861, %859 : vector<8x16xf32>
    %863 = arith.mulf %854, %800 : vector<8x16xf32>
    %864 = arith.addf %862, %863 : vector<8x16xf32>
    %865 = tpu.concatenate %834, %864 in 1 : vector<8x16xf32>, vector<8x16xf32> -> vector<8x32xf32>
    %cst_238 = arith.constant dense<0.000000e+00> : vector<8x96xf32>
    %866 = tpu.matmul %865, %797, %cst_238 {dimension_numbers = #tpu.dot_dimension_numbers<[1], [0], [0], [1], [0, 0, 1, 1], [], []>} : vector<8x32xf32>, vector<32x96xf32>, vector<8x96xf32> -> vector<8x96xf32>
    %867 = vector.broadcast %798 : vector<1x96xf32> to vector<8x96xf32>
    %868 = arith.addf %866, %867 : vector<8x96xf32>
    %869 = vector.extract_strided_slice %712 {offsets = [0, 0], sizes = [8, 16], strides = [1, 1]} : vector<8x96xf32> to vector<8x16xf32>
    %870 = vector.extract_strided_slice %868 {offsets = [0, 0], sizes = [8, 16], strides = [1, 1]} : vector<8x96xf32> to vector<8x16xf32>
    %871 = arith.addf %869, %870 : vector<8x16xf32>
    %cst_239 = arith.constant 0.000000e+00 : f32
    %872 = vector.broadcast %cst_239 : f32 to vector<8x16xf32>
    %873 = arith.subf %872, %871 : vector<8x16xf32>
    %874 = math.exp %873 : vector<8x16xf32>
    %cst_240 = arith.constant 1.000000e+00 : f32
    %875 = vector.broadcast %cst_240 : f32 to vector<8x16xf32>
    %876 = arith.addf %875, %874 : vector<8x16xf32>
    %cst_241 = arith.constant 1.000000e+00 : f32
    %877 = vector.broadcast %cst_241 : f32 to vector<8x16xf32>
    %878 = arith.divf %877, %876 : vector<8x16xf32>
    %879 = vector.extract_strided_slice %712 {offsets = [0, 16], sizes = [8, 16], strides = [1, 1]} : vector<8x96xf32> to vector<8x16xf32>
    %880 = vector.extract_strided_slice %868 {offsets = [0, 16], sizes = [8, 16], strides = [1, 1]} : vector<8x96xf32> to vector<8x16xf32>
    %881 = arith.addf %879, %880 : vector<8x16xf32>
    %cst_242 = arith.constant 0.000000e+00 : f32
    %882 = vector.broadcast %cst_242 : f32 to vector<8x16xf32>
    %883 = arith.subf %882, %881 : vector<8x16xf32>
    %884 = math.exp %883 : vector<8x16xf32>
    %cst_243 = arith.constant 1.000000e+00 : f32
    %885 = vector.broadcast %cst_243 : f32 to vector<8x16xf32>
    %886 = arith.addf %885, %884 : vector<8x16xf32>
    %cst_244 = arith.constant 1.000000e+00 : f32
    %887 = vector.broadcast %cst_244 : f32 to vector<8x16xf32>
    %888 = arith.divf %887, %886 : vector<8x16xf32>
    %889 = vector.extract_strided_slice %712 {offsets = [0, 32], sizes = [8, 16], strides = [1, 1]} : vector<8x96xf32> to vector<8x16xf32>
    %890 = vector.extract_strided_slice %868 {offsets = [0, 32], sizes = [8, 16], strides = [1, 1]} : vector<8x96xf32> to vector<8x16xf32>
    %891 = arith.mulf %878, %890 : vector<8x16xf32>
    %892 = arith.addf %889, %891 : vector<8x16xf32>
    %893 = math.tanh %892 : vector<8x16xf32>
    %cst_245 = arith.constant 1.000000e+00 : f32
    %894 = vector.broadcast %cst_245 : f32 to vector<8x16xf32>
    %895 = arith.subf %894, %888 : vector<8x16xf32>
    %896 = arith.mulf %895, %893 : vector<8x16xf32>
    %897 = arith.mulf %888, %834 : vector<8x16xf32>
    %898 = arith.addf %896, %897 : vector<8x16xf32>
    %899 = vector.extract_strided_slice %782 {offsets = [0, 48], sizes = [8, 16], strides = [1, 1]} : vector<8x96xf32> to vector<8x16xf32>
    %900 = vector.extract_strided_slice %868 {offsets = [0, 48], sizes = [8, 16], strides = [1, 1]} : vector<8x96xf32> to vector<8x16xf32>
    %901 = arith.addf %899, %900 : vector<8x16xf32>
    %cst_246 = arith.constant 0.000000e+00 : f32
    %902 = vector.broadcast %cst_246 : f32 to vector<8x16xf32>
    %903 = arith.subf %902, %901 : vector<8x16xf32>
    %904 = math.exp %903 : vector<8x16xf32>
    %cst_247 = arith.constant 1.000000e+00 : f32
    %905 = vector.broadcast %cst_247 : f32 to vector<8x16xf32>
    %906 = arith.addf %905, %904 : vector<8x16xf32>
    %cst_248 = arith.constant 1.000000e+00 : f32
    %907 = vector.broadcast %cst_248 : f32 to vector<8x16xf32>
    %908 = arith.divf %907, %906 : vector<8x16xf32>
    %909 = vector.extract_strided_slice %782 {offsets = [0, 64], sizes = [8, 16], strides = [1, 1]} : vector<8x96xf32> to vector<8x16xf32>
    %910 = vector.extract_strided_slice %868 {offsets = [0, 64], sizes = [8, 16], strides = [1, 1]} : vector<8x96xf32> to vector<8x16xf32>
    %911 = arith.addf %909, %910 : vector<8x16xf32>
    %cst_249 = arith.constant 0.000000e+00 : f32
    %912 = vector.broadcast %cst_249 : f32 to vector<8x16xf32>
    %913 = arith.subf %912, %911 : vector<8x16xf32>
    %914 = math.exp %913 : vector<8x16xf32>
    %cst_250 = arith.constant 1.000000e+00 : f32
    %915 = vector.broadcast %cst_250 : f32 to vector<8x16xf32>
    %916 = arith.addf %915, %914 : vector<8x16xf32>
    %cst_251 = arith.constant 1.000000e+00 : f32
    %917 = vector.broadcast %cst_251 : f32 to vector<8x16xf32>
    %918 = arith.divf %917, %916 : vector<8x16xf32>
    %919 = vector.extract_strided_slice %782 {offsets = [0, 80], sizes = [8, 16], strides = [1, 1]} : vector<8x96xf32> to vector<8x16xf32>
    %920 = vector.extract_strided_slice %868 {offsets = [0, 80], sizes = [8, 16], strides = [1, 1]} : vector<8x96xf32> to vector<8x16xf32>
    %921 = arith.mulf %908, %920 : vector<8x16xf32>
    %922 = arith.addf %919, %921 : vector<8x16xf32>
    %923 = math.tanh %922 : vector<8x16xf32>
    %cst_252 = arith.constant 1.000000e+00 : f32
    %924 = vector.broadcast %cst_252 : f32 to vector<8x16xf32>
    %925 = arith.subf %924, %918 : vector<8x16xf32>
    %926 = arith.mulf %925, %923 : vector<8x16xf32>
    %927 = arith.mulf %918, %864 : vector<8x16xf32>
    %928 = arith.addf %926, %927 : vector<8x16xf32>
    %929 = tpu.concatenate %898, %928 in 1 : vector<8x16xf32>, vector<8x16xf32> -> vector<8x32xf32>
    %cst_253 = arith.constant dense<0.000000e+00> : vector<8x96xf32>
    %930 = tpu.matmul %929, %797, %cst_253 {dimension_numbers = #tpu.dot_dimension_numbers<[1], [0], [0], [1], [0, 0, 1, 1], [], []>} : vector<8x32xf32>, vector<32x96xf32>, vector<8x96xf32> -> vector<8x96xf32>
    %931 = vector.broadcast %798 : vector<1x96xf32> to vector<8x96xf32>
    %932 = arith.addf %930, %931 : vector<8x96xf32>
    %933 = vector.extract_strided_slice %726 {offsets = [0, 0], sizes = [8, 16], strides = [1, 1]} : vector<8x96xf32> to vector<8x16xf32>
    %934 = vector.extract_strided_slice %932 {offsets = [0, 0], sizes = [8, 16], strides = [1, 1]} : vector<8x96xf32> to vector<8x16xf32>
    %935 = arith.addf %933, %934 : vector<8x16xf32>
    %cst_254 = arith.constant 0.000000e+00 : f32
    %936 = vector.broadcast %cst_254 : f32 to vector<8x16xf32>
    %937 = arith.subf %936, %935 : vector<8x16xf32>
    %938 = math.exp %937 : vector<8x16xf32>
    %cst_255 = arith.constant 1.000000e+00 : f32
    %939 = vector.broadcast %cst_255 : f32 to vector<8x16xf32>
    %940 = arith.addf %939, %938 : vector<8x16xf32>
    %cst_256 = arith.constant 1.000000e+00 : f32
    %941 = vector.broadcast %cst_256 : f32 to vector<8x16xf32>
    %942 = arith.divf %941, %940 : vector<8x16xf32>
    %943 = vector.extract_strided_slice %726 {offsets = [0, 16], sizes = [8, 16], strides = [1, 1]} : vector<8x96xf32> to vector<8x16xf32>
    %944 = vector.extract_strided_slice %932 {offsets = [0, 16], sizes = [8, 16], strides = [1, 1]} : vector<8x96xf32> to vector<8x16xf32>
    %945 = arith.addf %943, %944 : vector<8x16xf32>
    %cst_257 = arith.constant 0.000000e+00 : f32
    %946 = vector.broadcast %cst_257 : f32 to vector<8x16xf32>
    %947 = arith.subf %946, %945 : vector<8x16xf32>
    %948 = math.exp %947 : vector<8x16xf32>
    %cst_258 = arith.constant 1.000000e+00 : f32
    %949 = vector.broadcast %cst_258 : f32 to vector<8x16xf32>
    %950 = arith.addf %949, %948 : vector<8x16xf32>
    %cst_259 = arith.constant 1.000000e+00 : f32
    %951 = vector.broadcast %cst_259 : f32 to vector<8x16xf32>
    %952 = arith.divf %951, %950 : vector<8x16xf32>
    %953 = vector.extract_strided_slice %726 {offsets = [0, 32], sizes = [8, 16], strides = [1, 1]} : vector<8x96xf32> to vector<8x16xf32>
    %954 = vector.extract_strided_slice %932 {offsets = [0, 32], sizes = [8, 16], strides = [1, 1]} : vector<8x96xf32> to vector<8x16xf32>
    %955 = arith.mulf %942, %954 : vector<8x16xf32>
    %956 = arith.addf %953, %955 : vector<8x16xf32>
    %957 = math.tanh %956 : vector<8x16xf32>
    %cst_260 = arith.constant 1.000000e+00 : f32
    %958 = vector.broadcast %cst_260 : f32 to vector<8x16xf32>
    %959 = arith.subf %958, %952 : vector<8x16xf32>
    %960 = arith.mulf %959, %957 : vector<8x16xf32>
    %961 = arith.mulf %952, %898 : vector<8x16xf32>
    %962 = arith.addf %960, %961 : vector<8x16xf32>
    %963 = vector.extract_strided_slice %768 {offsets = [0, 48], sizes = [8, 16], strides = [1, 1]} : vector<8x96xf32> to vector<8x16xf32>
    %964 = vector.extract_strided_slice %932 {offsets = [0, 48], sizes = [8, 16], strides = [1, 1]} : vector<8x96xf32> to vector<8x16xf32>
    %965 = arith.addf %963, %964 : vector<8x16xf32>
    %cst_261 = arith.constant 0.000000e+00 : f32
    %966 = vector.broadcast %cst_261 : f32 to vector<8x16xf32>
    %967 = arith.subf %966, %965 : vector<8x16xf32>
    %968 = math.exp %967 : vector<8x16xf32>
    %cst_262 = arith.constant 1.000000e+00 : f32
    %969 = vector.broadcast %cst_262 : f32 to vector<8x16xf32>
    %970 = arith.addf %969, %968 : vector<8x16xf32>
    %cst_263 = arith.constant 1.000000e+00 : f32
    %971 = vector.broadcast %cst_263 : f32 to vector<8x16xf32>
    %972 = arith.divf %971, %970 : vector<8x16xf32>
    %973 = vector.extract_strided_slice %768 {offsets = [0, 64], sizes = [8, 16], strides = [1, 1]} : vector<8x96xf32> to vector<8x16xf32>
    %974 = vector.extract_strided_slice %932 {offsets = [0, 64], sizes = [8, 16], strides = [1, 1]} : vector<8x96xf32> to vector<8x16xf32>
    %975 = arith.addf %973, %974 : vector<8x16xf32>
    %cst_264 = arith.constant 0.000000e+00 : f32
    %976 = vector.broadcast %cst_264 : f32 to vector<8x16xf32>
    %977 = arith.subf %976, %975 : vector<8x16xf32>
    %978 = math.exp %977 : vector<8x16xf32>
    %cst_265 = arith.constant 1.000000e+00 : f32
    %979 = vector.broadcast %cst_265 : f32 to vector<8x16xf32>
    %980 = arith.addf %979, %978 : vector<8x16xf32>
    %cst_266 = arith.constant 1.000000e+00 : f32
    %981 = vector.broadcast %cst_266 : f32 to vector<8x16xf32>
    %982 = arith.divf %981, %980 : vector<8x16xf32>
    %983 = vector.extract_strided_slice %768 {offsets = [0, 80], sizes = [8, 16], strides = [1, 1]} : vector<8x96xf32> to vector<8x16xf32>
    %984 = vector.extract_strided_slice %932 {offsets = [0, 80], sizes = [8, 16], strides = [1, 1]} : vector<8x96xf32> to vector<8x16xf32>
    %985 = arith.mulf %972, %984 : vector<8x16xf32>
    %986 = arith.addf %983, %985 : vector<8x16xf32>
    %987 = math.tanh %986 : vector<8x16xf32>
    %cst_267 = arith.constant 1.000000e+00 : f32
    %988 = vector.broadcast %cst_267 : f32 to vector<8x16xf32>
    %989 = arith.subf %988, %982 : vector<8x16xf32>
    %990 = arith.mulf %989, %987 : vector<8x16xf32>
    %991 = arith.mulf %982, %928 : vector<8x16xf32>
    %992 = arith.addf %990, %991 : vector<8x16xf32>
    %993 = tpu.concatenate %962, %992 in 1 : vector<8x16xf32>, vector<8x16xf32> -> vector<8x32xf32>
    %cst_268 = arith.constant dense<0.000000e+00> : vector<8x96xf32>
    %994 = tpu.matmul %993, %797, %cst_268 {dimension_numbers = #tpu.dot_dimension_numbers<[1], [0], [0], [1], [0, 0, 1, 1], [], []>} : vector<8x32xf32>, vector<32x96xf32>, vector<8x96xf32> -> vector<8x96xf32>
    %995 = vector.broadcast %798 : vector<1x96xf32> to vector<8x96xf32>
    %996 = arith.addf %994, %995 : vector<8x96xf32>
    %997 = vector.extract_strided_slice %740 {offsets = [0, 0], sizes = [8, 16], strides = [1, 1]} : vector<8x96xf32> to vector<8x16xf32>
    %998 = vector.extract_strided_slice %996 {offsets = [0, 0], sizes = [8, 16], strides = [1, 1]} : vector<8x96xf32> to vector<8x16xf32>
    %999 = arith.addf %997, %998 : vector<8x16xf32>
    %cst_269 = arith.constant 0.000000e+00 : f32
    %1000 = vector.broadcast %cst_269 : f32 to vector<8x16xf32>
    %1001 = arith.subf %1000, %999 : vector<8x16xf32>
    %1002 = math.exp %1001 : vector<8x16xf32>
    %cst_270 = arith.constant 1.000000e+00 : f32
    %1003 = vector.broadcast %cst_270 : f32 to vector<8x16xf32>
    %1004 = arith.addf %1003, %1002 : vector<8x16xf32>
    %cst_271 = arith.constant 1.000000e+00 : f32
    %1005 = vector.broadcast %cst_271 : f32 to vector<8x16xf32>
    %1006 = arith.divf %1005, %1004 : vector<8x16xf32>
    %1007 = vector.extract_strided_slice %740 {offsets = [0, 16], sizes = [8, 16], strides = [1, 1]} : vector<8x96xf32> to vector<8x16xf32>
    %1008 = vector.extract_strided_slice %996 {offsets = [0, 16], sizes = [8, 16], strides = [1, 1]} : vector<8x96xf32> to vector<8x16xf32>
    %1009 = arith.addf %1007, %1008 : vector<8x16xf32>
    %cst_272 = arith.constant 0.000000e+00 : f32
    %1010 = vector.broadcast %cst_272 : f32 to vector<8x16xf32>
    %1011 = arith.subf %1010, %1009 : vector<8x16xf32>
    %1012 = math.exp %1011 : vector<8x16xf32>
    %cst_273 = arith.constant 1.000000e+00 : f32
    %1013 = vector.broadcast %cst_273 : f32 to vector<8x16xf32>
    %1014 = arith.addf %1013, %1012 : vector<8x16xf32>
    %cst_274 = arith.constant 1.000000e+00 : f32
    %1015 = vector.broadcast %cst_274 : f32 to vector<8x16xf32>
    %1016 = arith.divf %1015, %1014 : vector<8x16xf32>
    %1017 = vector.extract_strided_slice %740 {offsets = [0, 32], sizes = [8, 16], strides = [1, 1]} : vector<8x96xf32> to vector<8x16xf32>
    %1018 = vector.extract_strided_slice %996 {offsets = [0, 32], sizes = [8, 16], strides = [1, 1]} : vector<8x96xf32> to vector<8x16xf32>
    %1019 = arith.mulf %1006, %1018 : vector<8x16xf32>
    %1020 = arith.addf %1017, %1019 : vector<8x16xf32>
    %1021 = math.tanh %1020 : vector<8x16xf32>
    %cst_275 = arith.constant 1.000000e+00 : f32
    %1022 = vector.broadcast %cst_275 : f32 to vector<8x16xf32>
    %1023 = arith.subf %1022, %1016 : vector<8x16xf32>
    %1024 = arith.mulf %1023, %1021 : vector<8x16xf32>
    %1025 = arith.mulf %1016, %962 : vector<8x16xf32>
    %1026 = arith.addf %1024, %1025 : vector<8x16xf32>
    %1027 = vector.extract_strided_slice %754 {offsets = [0, 48], sizes = [8, 16], strides = [1, 1]} : vector<8x96xf32> to vector<8x16xf32>
    %1028 = vector.extract_strided_slice %996 {offsets = [0, 48], sizes = [8, 16], strides = [1, 1]} : vector<8x96xf32> to vector<8x16xf32>
    %1029 = arith.addf %1027, %1028 : vector<8x16xf32>
    %cst_276 = arith.constant 0.000000e+00 : f32
    %1030 = vector.broadcast %cst_276 : f32 to vector<8x16xf32>
    %1031 = arith.subf %1030, %1029 : vector<8x16xf32>
    %1032 = math.exp %1031 : vector<8x16xf32>
    %cst_277 = arith.constant 1.000000e+00 : f32
    %1033 = vector.broadcast %cst_277 : f32 to vector<8x16xf32>
    %1034 = arith.addf %1033, %1032 : vector<8x16xf32>
    %cst_278 = arith.constant 1.000000e+00 : f32
    %1035 = vector.broadcast %cst_278 : f32 to vector<8x16xf32>
    %1036 = arith.divf %1035, %1034 : vector<8x16xf32>
    %1037 = vector.extract_strided_slice %754 {offsets = [0, 64], sizes = [8, 16], strides = [1, 1]} : vector<8x96xf32> to vector<8x16xf32>
    %1038 = vector.extract_strided_slice %996 {offsets = [0, 64], sizes = [8, 16], strides = [1, 1]} : vector<8x96xf32> to vector<8x16xf32>
    %1039 = arith.addf %1037, %1038 : vector<8x16xf32>
    %cst_279 = arith.constant 0.000000e+00 : f32
    %1040 = vector.broadcast %cst_279 : f32 to vector<8x16xf32>
    %1041 = arith.subf %1040, %1039 : vector<8x16xf32>
    %1042 = math.exp %1041 : vector<8x16xf32>
    %cst_280 = arith.constant 1.000000e+00 : f32
    %1043 = vector.broadcast %cst_280 : f32 to vector<8x16xf32>
    %1044 = arith.addf %1043, %1042 : vector<8x16xf32>
    %cst_281 = arith.constant 1.000000e+00 : f32
    %1045 = vector.broadcast %cst_281 : f32 to vector<8x16xf32>
    %1046 = arith.divf %1045, %1044 : vector<8x16xf32>
    %1047 = vector.extract_strided_slice %754 {offsets = [0, 80], sizes = [8, 16], strides = [1, 1]} : vector<8x96xf32> to vector<8x16xf32>
    %1048 = vector.extract_strided_slice %996 {offsets = [0, 80], sizes = [8, 16], strides = [1, 1]} : vector<8x96xf32> to vector<8x16xf32>
    %1049 = arith.mulf %1036, %1048 : vector<8x16xf32>
    %1050 = arith.addf %1047, %1049 : vector<8x16xf32>
    %1051 = math.tanh %1050 : vector<8x16xf32>
    %cst_282 = arith.constant 1.000000e+00 : f32
    %1052 = vector.broadcast %cst_282 : f32 to vector<8x16xf32>
    %1053 = arith.subf %1052, %1046 : vector<8x16xf32>
    %1054 = arith.mulf %1053, %1051 : vector<8x16xf32>
    %1055 = arith.mulf %1046, %992 : vector<8x16xf32>
    %1056 = arith.addf %1054, %1055 : vector<8x16xf32>
    %1057 = tpu.concatenate %1026, %1056 in 1 : vector<8x16xf32>, vector<8x16xf32> -> vector<8x32xf32>
    %cst_283 = arith.constant dense<0.000000e+00> : vector<8x96xf32>
    %1058 = tpu.matmul %1057, %797, %cst_283 {dimension_numbers = #tpu.dot_dimension_numbers<[1], [0], [0], [1], [0, 0, 1, 1], [], []>} : vector<8x32xf32>, vector<32x96xf32>, vector<8x96xf32> -> vector<8x96xf32>
    %1059 = vector.broadcast %798 : vector<1x96xf32> to vector<8x96xf32>
    %1060 = arith.addf %1058, %1059 : vector<8x96xf32>
    %1061 = vector.extract_strided_slice %754 {offsets = [0, 0], sizes = [8, 16], strides = [1, 1]} : vector<8x96xf32> to vector<8x16xf32>
    %1062 = vector.extract_strided_slice %1060 {offsets = [0, 0], sizes = [8, 16], strides = [1, 1]} : vector<8x96xf32> to vector<8x16xf32>
    %1063 = arith.addf %1061, %1062 : vector<8x16xf32>
    %cst_284 = arith.constant 0.000000e+00 : f32
    %1064 = vector.broadcast %cst_284 : f32 to vector<8x16xf32>
    %1065 = arith.subf %1064, %1063 : vector<8x16xf32>
    %1066 = math.exp %1065 : vector<8x16xf32>
    %cst_285 = arith.constant 1.000000e+00 : f32
    %1067 = vector.broadcast %cst_285 : f32 to vector<8x16xf32>
    %1068 = arith.addf %1067, %1066 : vector<8x16xf32>
    %cst_286 = arith.constant 1.000000e+00 : f32
    %1069 = vector.broadcast %cst_286 : f32 to vector<8x16xf32>
    %1070 = arith.divf %1069, %1068 : vector<8x16xf32>
    %1071 = vector.extract_strided_slice %754 {offsets = [0, 16], sizes = [8, 16], strides = [1, 1]} : vector<8x96xf32> to vector<8x16xf32>
    %1072 = vector.extract_strided_slice %1060 {offsets = [0, 16], sizes = [8, 16], strides = [1, 1]} : vector<8x96xf32> to vector<8x16xf32>
    %1073 = arith.addf %1071, %1072 : vector<8x16xf32>
    %cst_287 = arith.constant 0.000000e+00 : f32
    %1074 = vector.broadcast %cst_287 : f32 to vector<8x16xf32>
    %1075 = arith.subf %1074, %1073 : vector<8x16xf32>
    %1076 = math.exp %1075 : vector<8x16xf32>
    %cst_288 = arith.constant 1.000000e+00 : f32
    %1077 = vector.broadcast %cst_288 : f32 to vector<8x16xf32>
    %1078 = arith.addf %1077, %1076 : vector<8x16xf32>
    %cst_289 = arith.constant 1.000000e+00 : f32
    %1079 = vector.broadcast %cst_289 : f32 to vector<8x16xf32>
    %1080 = arith.divf %1079, %1078 : vector<8x16xf32>
    %1081 = vector.extract_strided_slice %754 {offsets = [0, 32], sizes = [8, 16], strides = [1, 1]} : vector<8x96xf32> to vector<8x16xf32>
    %1082 = vector.extract_strided_slice %1060 {offsets = [0, 32], sizes = [8, 16], strides = [1, 1]} : vector<8x96xf32> to vector<8x16xf32>
    %1083 = arith.mulf %1070, %1082 : vector<8x16xf32>
    %1084 = arith.addf %1081, %1083 : vector<8x16xf32>
    %1085 = math.tanh %1084 : vector<8x16xf32>
    %cst_290 = arith.constant 1.000000e+00 : f32
    %1086 = vector.broadcast %cst_290 : f32 to vector<8x16xf32>
    %1087 = arith.subf %1086, %1080 : vector<8x16xf32>
    %1088 = arith.mulf %1087, %1085 : vector<8x16xf32>
    %1089 = arith.mulf %1080, %1026 : vector<8x16xf32>
    %1090 = arith.addf %1088, %1089 : vector<8x16xf32>
    %1091 = vector.extract_strided_slice %740 {offsets = [0, 48], sizes = [8, 16], strides = [1, 1]} : vector<8x96xf32> to vector<8x16xf32>
    %1092 = vector.extract_strided_slice %1060 {offsets = [0, 48], sizes = [8, 16], strides = [1, 1]} : vector<8x96xf32> to vector<8x16xf32>
    %1093 = arith.addf %1091, %1092 : vector<8x16xf32>
    %cst_291 = arith.constant 0.000000e+00 : f32
    %1094 = vector.broadcast %cst_291 : f32 to vector<8x16xf32>
    %1095 = arith.subf %1094, %1093 : vector<8x16xf32>
    %1096 = math.exp %1095 : vector<8x16xf32>
    %cst_292 = arith.constant 1.000000e+00 : f32
    %1097 = vector.broadcast %cst_292 : f32 to vector<8x16xf32>
    %1098 = arith.addf %1097, %1096 : vector<8x16xf32>
    %cst_293 = arith.constant 1.000000e+00 : f32
    %1099 = vector.broadcast %cst_293 : f32 to vector<8x16xf32>
    %1100 = arith.divf %1099, %1098 : vector<8x16xf32>
    %1101 = vector.extract_strided_slice %740 {offsets = [0, 64], sizes = [8, 16], strides = [1, 1]} : vector<8x96xf32> to vector<8x16xf32>
    %1102 = vector.extract_strided_slice %1060 {offsets = [0, 64], sizes = [8, 16], strides = [1, 1]} : vector<8x96xf32> to vector<8x16xf32>
    %1103 = arith.addf %1101, %1102 : vector<8x16xf32>
    %cst_294 = arith.constant 0.000000e+00 : f32
    %1104 = vector.broadcast %cst_294 : f32 to vector<8x16xf32>
    %1105 = arith.subf %1104, %1103 : vector<8x16xf32>
    %1106 = math.exp %1105 : vector<8x16xf32>
    %cst_295 = arith.constant 1.000000e+00 : f32
    %1107 = vector.broadcast %cst_295 : f32 to vector<8x16xf32>
    %1108 = arith.addf %1107, %1106 : vector<8x16xf32>
    %cst_296 = arith.constant 1.000000e+00 : f32
    %1109 = vector.broadcast %cst_296 : f32 to vector<8x16xf32>
    %1110 = arith.divf %1109, %1108 : vector<8x16xf32>
    %1111 = vector.extract_strided_slice %740 {offsets = [0, 80], sizes = [8, 16], strides = [1, 1]} : vector<8x96xf32> to vector<8x16xf32>
    %1112 = vector.extract_strided_slice %1060 {offsets = [0, 80], sizes = [8, 16], strides = [1, 1]} : vector<8x96xf32> to vector<8x16xf32>
    %1113 = arith.mulf %1100, %1112 : vector<8x16xf32>
    %1114 = arith.addf %1111, %1113 : vector<8x16xf32>
    %1115 = math.tanh %1114 : vector<8x16xf32>
    %cst_297 = arith.constant 1.000000e+00 : f32
    %1116 = vector.broadcast %cst_297 : f32 to vector<8x16xf32>
    %1117 = arith.subf %1116, %1110 : vector<8x16xf32>
    %1118 = arith.mulf %1117, %1115 : vector<8x16xf32>
    %1119 = arith.mulf %1110, %1056 : vector<8x16xf32>
    %1120 = arith.addf %1118, %1119 : vector<8x16xf32>
    %1121 = tpu.concatenate %1090, %1120 in 1 : vector<8x16xf32>, vector<8x16xf32> -> vector<8x32xf32>
    %cst_298 = arith.constant dense<0.000000e+00> : vector<8x96xf32>
    %1122 = tpu.matmul %1121, %797, %cst_298 {dimension_numbers = #tpu.dot_dimension_numbers<[1], [0], [0], [1], [0, 0, 1, 1], [], []>} : vector<8x32xf32>, vector<32x96xf32>, vector<8x96xf32> -> vector<8x96xf32>
    %1123 = vector.broadcast %798 : vector<1x96xf32> to vector<8x96xf32>
    %1124 = arith.addf %1122, %1123 : vector<8x96xf32>
    %1125 = vector.extract_strided_slice %768 {offsets = [0, 0], sizes = [8, 16], strides = [1, 1]} : vector<8x96xf32> to vector<8x16xf32>
    %1126 = vector.extract_strided_slice %1124 {offsets = [0, 0], sizes = [8, 16], strides = [1, 1]} : vector<8x96xf32> to vector<8x16xf32>
    %1127 = arith.addf %1125, %1126 : vector<8x16xf32>
    %cst_299 = arith.constant 0.000000e+00 : f32
    %1128 = vector.broadcast %cst_299 : f32 to vector<8x16xf32>
    %1129 = arith.subf %1128, %1127 : vector<8x16xf32>
    %1130 = math.exp %1129 : vector<8x16xf32>
    %cst_300 = arith.constant 1.000000e+00 : f32
    %1131 = vector.broadcast %cst_300 : f32 to vector<8x16xf32>
    %1132 = arith.addf %1131, %1130 : vector<8x16xf32>
    %cst_301 = arith.constant 1.000000e+00 : f32
    %1133 = vector.broadcast %cst_301 : f32 to vector<8x16xf32>
    %1134 = arith.divf %1133, %1132 : vector<8x16xf32>
    %1135 = vector.extract_strided_slice %768 {offsets = [0, 16], sizes = [8, 16], strides = [1, 1]} : vector<8x96xf32> to vector<8x16xf32>
    %1136 = vector.extract_strided_slice %1124 {offsets = [0, 16], sizes = [8, 16], strides = [1, 1]} : vector<8x96xf32> to vector<8x16xf32>
    %1137 = arith.addf %1135, %1136 : vector<8x16xf32>
    %cst_302 = arith.constant 0.000000e+00 : f32
    %1138 = vector.broadcast %cst_302 : f32 to vector<8x16xf32>
    %1139 = arith.subf %1138, %1137 : vector<8x16xf32>
    %1140 = math.exp %1139 : vector<8x16xf32>
    %cst_303 = arith.constant 1.000000e+00 : f32
    %1141 = vector.broadcast %cst_303 : f32 to vector<8x16xf32>
    %1142 = arith.addf %1141, %1140 : vector<8x16xf32>
    %cst_304 = arith.constant 1.000000e+00 : f32
    %1143 = vector.broadcast %cst_304 : f32 to vector<8x16xf32>
    %1144 = arith.divf %1143, %1142 : vector<8x16xf32>
    %1145 = vector.extract_strided_slice %768 {offsets = [0, 32], sizes = [8, 16], strides = [1, 1]} : vector<8x96xf32> to vector<8x16xf32>
    %1146 = vector.extract_strided_slice %1124 {offsets = [0, 32], sizes = [8, 16], strides = [1, 1]} : vector<8x96xf32> to vector<8x16xf32>
    %1147 = arith.mulf %1134, %1146 : vector<8x16xf32>
    %1148 = arith.addf %1145, %1147 : vector<8x16xf32>
    %1149 = math.tanh %1148 : vector<8x16xf32>
    %cst_305 = arith.constant 1.000000e+00 : f32
    %1150 = vector.broadcast %cst_305 : f32 to vector<8x16xf32>
    %1151 = arith.subf %1150, %1144 : vector<8x16xf32>
    %1152 = arith.mulf %1151, %1149 : vector<8x16xf32>
    %1153 = arith.mulf %1144, %1090 : vector<8x16xf32>
    %1154 = arith.addf %1152, %1153 : vector<8x16xf32>
    %1155 = vector.extract_strided_slice %726 {offsets = [0, 48], sizes = [8, 16], strides = [1, 1]} : vector<8x96xf32> to vector<8x16xf32>
    %1156 = vector.extract_strided_slice %1124 {offsets = [0, 48], sizes = [8, 16], strides = [1, 1]} : vector<8x96xf32> to vector<8x16xf32>
    %1157 = arith.addf %1155, %1156 : vector<8x16xf32>
    %cst_306 = arith.constant 0.000000e+00 : f32
    %1158 = vector.broadcast %cst_306 : f32 to vector<8x16xf32>
    %1159 = arith.subf %1158, %1157 : vector<8x16xf32>
    %1160 = math.exp %1159 : vector<8x16xf32>
    %cst_307 = arith.constant 1.000000e+00 : f32
    %1161 = vector.broadcast %cst_307 : f32 to vector<8x16xf32>
    %1162 = arith.addf %1161, %1160 : vector<8x16xf32>
    %cst_308 = arith.constant 1.000000e+00 : f32
    %1163 = vector.broadcast %cst_308 : f32 to vector<8x16xf32>
    %1164 = arith.divf %1163, %1162 : vector<8x16xf32>
    %1165 = vector.extract_strided_slice %726 {offsets = [0, 64], sizes = [8, 16], strides = [1, 1]} : vector<8x96xf32> to vector<8x16xf32>
    %1166 = vector.extract_strided_slice %1124 {offsets = [0, 64], sizes = [8, 16], strides = [1, 1]} : vector<8x96xf32> to vector<8x16xf32>
    %1167 = arith.addf %1165, %1166 : vector<8x16xf32>
    %cst_309 = arith.constant 0.000000e+00 : f32
    %1168 = vector.broadcast %cst_309 : f32 to vector<8x16xf32>
    %1169 = arith.subf %1168, %1167 : vector<8x16xf32>
    %1170 = math.exp %1169 : vector<8x16xf32>
    %cst_310 = arith.constant 1.000000e+00 : f32
    %1171 = vector.broadcast %cst_310 : f32 to vector<8x16xf32>
    %1172 = arith.addf %1171, %1170 : vector<8x16xf32>
    %cst_311 = arith.constant 1.000000e+00 : f32
    %1173 = vector.broadcast %cst_311 : f32 to vector<8x16xf32>
    %1174 = arith.divf %1173, %1172 : vector<8x16xf32>
    %1175 = vector.extract_strided_slice %726 {offsets = [0, 80], sizes = [8, 16], strides = [1, 1]} : vector<8x96xf32> to vector<8x16xf32>
    %1176 = vector.extract_strided_slice %1124 {offsets = [0, 80], sizes = [8, 16], strides = [1, 1]} : vector<8x96xf32> to vector<8x16xf32>
    %1177 = arith.mulf %1164, %1176 : vector<8x16xf32>
    %1178 = arith.addf %1175, %1177 : vector<8x16xf32>
    %1179 = math.tanh %1178 : vector<8x16xf32>
    %cst_312 = arith.constant 1.000000e+00 : f32
    %1180 = vector.broadcast %cst_312 : f32 to vector<8x16xf32>
    %1181 = arith.subf %1180, %1174 : vector<8x16xf32>
    %1182 = arith.mulf %1181, %1179 : vector<8x16xf32>
    %1183 = arith.mulf %1174, %1120 : vector<8x16xf32>
    %1184 = arith.addf %1182, %1183 : vector<8x16xf32>
    %1185 = tpu.concatenate %1154, %1184 in 1 : vector<8x16xf32>, vector<8x16xf32> -> vector<8x32xf32>
    %cst_313 = arith.constant dense<0.000000e+00> : vector<8x96xf32>
    %1186 = tpu.matmul %1185, %797, %cst_313 {dimension_numbers = #tpu.dot_dimension_numbers<[1], [0], [0], [1], [0, 0, 1, 1], [], []>} : vector<8x32xf32>, vector<32x96xf32>, vector<8x96xf32> -> vector<8x96xf32>
    %1187 = vector.broadcast %798 : vector<1x96xf32> to vector<8x96xf32>
    %1188 = arith.addf %1186, %1187 : vector<8x96xf32>
    %1189 = vector.extract_strided_slice %782 {offsets = [0, 0], sizes = [8, 16], strides = [1, 1]} : vector<8x96xf32> to vector<8x16xf32>
    %1190 = vector.extract_strided_slice %1188 {offsets = [0, 0], sizes = [8, 16], strides = [1, 1]} : vector<8x96xf32> to vector<8x16xf32>
    %1191 = arith.addf %1189, %1190 : vector<8x16xf32>
    %cst_314 = arith.constant 0.000000e+00 : f32
    %1192 = vector.broadcast %cst_314 : f32 to vector<8x16xf32>
    %1193 = arith.subf %1192, %1191 : vector<8x16xf32>
    %1194 = math.exp %1193 : vector<8x16xf32>
    %cst_315 = arith.constant 1.000000e+00 : f32
    %1195 = vector.broadcast %cst_315 : f32 to vector<8x16xf32>
    %1196 = arith.addf %1195, %1194 : vector<8x16xf32>
    %cst_316 = arith.constant 1.000000e+00 : f32
    %1197 = vector.broadcast %cst_316 : f32 to vector<8x16xf32>
    %1198 = arith.divf %1197, %1196 : vector<8x16xf32>
    %1199 = vector.extract_strided_slice %782 {offsets = [0, 16], sizes = [8, 16], strides = [1, 1]} : vector<8x96xf32> to vector<8x16xf32>
    %1200 = vector.extract_strided_slice %1188 {offsets = [0, 16], sizes = [8, 16], strides = [1, 1]} : vector<8x96xf32> to vector<8x16xf32>
    %1201 = arith.addf %1199, %1200 : vector<8x16xf32>
    %cst_317 = arith.constant 0.000000e+00 : f32
    %1202 = vector.broadcast %cst_317 : f32 to vector<8x16xf32>
    %1203 = arith.subf %1202, %1201 : vector<8x16xf32>
    %1204 = math.exp %1203 : vector<8x16xf32>
    %cst_318 = arith.constant 1.000000e+00 : f32
    %1205 = vector.broadcast %cst_318 : f32 to vector<8x16xf32>
    %1206 = arith.addf %1205, %1204 : vector<8x16xf32>
    %cst_319 = arith.constant 1.000000e+00 : f32
    %1207 = vector.broadcast %cst_319 : f32 to vector<8x16xf32>
    %1208 = arith.divf %1207, %1206 : vector<8x16xf32>
    %1209 = vector.extract_strided_slice %782 {offsets = [0, 32], sizes = [8, 16], strides = [1, 1]} : vector<8x96xf32> to vector<8x16xf32>
    %1210 = vector.extract_strided_slice %1188 {offsets = [0, 32], sizes = [8, 16], strides = [1, 1]} : vector<8x96xf32> to vector<8x16xf32>
    %1211 = arith.mulf %1198, %1210 : vector<8x16xf32>
    %1212 = arith.addf %1209, %1211 : vector<8x16xf32>
    %1213 = math.tanh %1212 : vector<8x16xf32>
    %cst_320 = arith.constant 1.000000e+00 : f32
    %1214 = vector.broadcast %cst_320 : f32 to vector<8x16xf32>
    %1215 = arith.subf %1214, %1208 : vector<8x16xf32>
    %1216 = arith.mulf %1215, %1213 : vector<8x16xf32>
    %1217 = arith.mulf %1208, %1154 : vector<8x16xf32>
    %1218 = arith.addf %1216, %1217 : vector<8x16xf32>
    %1219 = vector.extract_strided_slice %712 {offsets = [0, 48], sizes = [8, 16], strides = [1, 1]} : vector<8x96xf32> to vector<8x16xf32>
    %1220 = vector.extract_strided_slice %1188 {offsets = [0, 48], sizes = [8, 16], strides = [1, 1]} : vector<8x96xf32> to vector<8x16xf32>
    %1221 = arith.addf %1219, %1220 : vector<8x16xf32>
    %cst_321 = arith.constant 0.000000e+00 : f32
    %1222 = vector.broadcast %cst_321 : f32 to vector<8x16xf32>
    %1223 = arith.subf %1222, %1221 : vector<8x16xf32>
    %1224 = math.exp %1223 : vector<8x16xf32>
    %cst_322 = arith.constant 1.000000e+00 : f32
    %1225 = vector.broadcast %cst_322 : f32 to vector<8x16xf32>
    %1226 = arith.addf %1225, %1224 : vector<8x16xf32>
    %cst_323 = arith.constant 1.000000e+00 : f32
    %1227 = vector.broadcast %cst_323 : f32 to vector<8x16xf32>
    %1228 = arith.divf %1227, %1226 : vector<8x16xf32>
    %1229 = vector.extract_strided_slice %712 {offsets = [0, 64], sizes = [8, 16], strides = [1, 1]} : vector<8x96xf32> to vector<8x16xf32>
    %1230 = vector.extract_strided_slice %1188 {offsets = [0, 64], sizes = [8, 16], strides = [1, 1]} : vector<8x96xf32> to vector<8x16xf32>
    %1231 = arith.addf %1229, %1230 : vector<8x16xf32>
    %cst_324 = arith.constant 0.000000e+00 : f32
    %1232 = vector.broadcast %cst_324 : f32 to vector<8x16xf32>
    %1233 = arith.subf %1232, %1231 : vector<8x16xf32>
    %1234 = math.exp %1233 : vector<8x16xf32>
    %cst_325 = arith.constant 1.000000e+00 : f32
    %1235 = vector.broadcast %cst_325 : f32 to vector<8x16xf32>
    %1236 = arith.addf %1235, %1234 : vector<8x16xf32>
    %cst_326 = arith.constant 1.000000e+00 : f32
    %1237 = vector.broadcast %cst_326 : f32 to vector<8x16xf32>
    %1238 = arith.divf %1237, %1236 : vector<8x16xf32>
    %1239 = vector.extract_strided_slice %712 {offsets = [0, 80], sizes = [8, 16], strides = [1, 1]} : vector<8x96xf32> to vector<8x16xf32>
    %1240 = vector.extract_strided_slice %1188 {offsets = [0, 80], sizes = [8, 16], strides = [1, 1]} : vector<8x96xf32> to vector<8x16xf32>
    %1241 = arith.mulf %1228, %1240 : vector<8x16xf32>
    %1242 = arith.addf %1239, %1241 : vector<8x16xf32>
    %1243 = math.tanh %1242 : vector<8x16xf32>
    %cst_327 = arith.constant 1.000000e+00 : f32
    %1244 = vector.broadcast %cst_327 : f32 to vector<8x16xf32>
    %1245 = arith.subf %1244, %1238 : vector<8x16xf32>
    %1246 = arith.mulf %1245, %1243 : vector<8x16xf32>
    %1247 = arith.mulf %1238, %1184 : vector<8x16xf32>
    %1248 = arith.addf %1246, %1247 : vector<8x16xf32>
    %1249 = tpu.concatenate %1218, %1248 in 1 : vector<8x16xf32>, vector<8x16xf32> -> vector<8x32xf32>
    %cst_328 = arith.constant dense<0.000000e+00> : vector<8x96xf32>
    %1250 = tpu.matmul %1249, %797, %cst_328 {dimension_numbers = #tpu.dot_dimension_numbers<[1], [0], [0], [1], [0, 0, 1, 1], [], []>} : vector<8x32xf32>, vector<32x96xf32>, vector<8x96xf32> -> vector<8x96xf32>
    %1251 = vector.broadcast %798 : vector<1x96xf32> to vector<8x96xf32>
    %1252 = arith.addf %1250, %1251 : vector<8x96xf32>
    %1253 = vector.extract_strided_slice %796 {offsets = [0, 0], sizes = [8, 16], strides = [1, 1]} : vector<8x96xf32> to vector<8x16xf32>
    %1254 = vector.extract_strided_slice %1252 {offsets = [0, 0], sizes = [8, 16], strides = [1, 1]} : vector<8x96xf32> to vector<8x16xf32>
    %1255 = arith.addf %1253, %1254 : vector<8x16xf32>
    %cst_329 = arith.constant 0.000000e+00 : f32
    %1256 = vector.broadcast %cst_329 : f32 to vector<8x16xf32>
    %1257 = arith.subf %1256, %1255 : vector<8x16xf32>
    %1258 = math.exp %1257 : vector<8x16xf32>
    %cst_330 = arith.constant 1.000000e+00 : f32
    %1259 = vector.broadcast %cst_330 : f32 to vector<8x16xf32>
    %1260 = arith.addf %1259, %1258 : vector<8x16xf32>
    %cst_331 = arith.constant 1.000000e+00 : f32
    %1261 = vector.broadcast %cst_331 : f32 to vector<8x16xf32>
    %1262 = arith.divf %1261, %1260 : vector<8x16xf32>
    %1263 = vector.extract_strided_slice %796 {offsets = [0, 16], sizes = [8, 16], strides = [1, 1]} : vector<8x96xf32> to vector<8x16xf32>
    %1264 = vector.extract_strided_slice %1252 {offsets = [0, 16], sizes = [8, 16], strides = [1, 1]} : vector<8x96xf32> to vector<8x16xf32>
    %1265 = arith.addf %1263, %1264 : vector<8x16xf32>
    %cst_332 = arith.constant 0.000000e+00 : f32
    %1266 = vector.broadcast %cst_332 : f32 to vector<8x16xf32>
    %1267 = arith.subf %1266, %1265 : vector<8x16xf32>
    %1268 = math.exp %1267 : vector<8x16xf32>
    %cst_333 = arith.constant 1.000000e+00 : f32
    %1269 = vector.broadcast %cst_333 : f32 to vector<8x16xf32>
    %1270 = arith.addf %1269, %1268 : vector<8x16xf32>
    %cst_334 = arith.constant 1.000000e+00 : f32
    %1271 = vector.broadcast %cst_334 : f32 to vector<8x16xf32>
    %1272 = arith.divf %1271, %1270 : vector<8x16xf32>
    %1273 = vector.extract_strided_slice %796 {offsets = [0, 32], sizes = [8, 16], strides = [1, 1]} : vector<8x96xf32> to vector<8x16xf32>
    %1274 = vector.extract_strided_slice %1252 {offsets = [0, 32], sizes = [8, 16], strides = [1, 1]} : vector<8x96xf32> to vector<8x16xf32>
    %1275 = arith.mulf %1262, %1274 : vector<8x16xf32>
    %1276 = arith.addf %1273, %1275 : vector<8x16xf32>
    %1277 = math.tanh %1276 : vector<8x16xf32>
    %cst_335 = arith.constant 1.000000e+00 : f32
    %1278 = vector.broadcast %cst_335 : f32 to vector<8x16xf32>
    %1279 = arith.subf %1278, %1272 : vector<8x16xf32>
    %1280 = arith.mulf %1279, %1277 : vector<8x16xf32>
    %1281 = arith.mulf %1272, %1218 : vector<8x16xf32>
    %1282 = arith.addf %1280, %1281 : vector<8x16xf32>
    %1283 = vector.extract_strided_slice %698 {offsets = [0, 48], sizes = [8, 16], strides = [1, 1]} : vector<8x96xf32> to vector<8x16xf32>
    %1284 = vector.extract_strided_slice %1252 {offsets = [0, 48], sizes = [8, 16], strides = [1, 1]} : vector<8x96xf32> to vector<8x16xf32>
    %1285 = arith.addf %1283, %1284 : vector<8x16xf32>
    %cst_336 = arith.constant 0.000000e+00 : f32
    %1286 = vector.broadcast %cst_336 : f32 to vector<8x16xf32>
    %1287 = arith.subf %1286, %1285 : vector<8x16xf32>
    %1288 = math.exp %1287 : vector<8x16xf32>
    %cst_337 = arith.constant 1.000000e+00 : f32
    %1289 = vector.broadcast %cst_337 : f32 to vector<8x16xf32>
    %1290 = arith.addf %1289, %1288 : vector<8x16xf32>
    %cst_338 = arith.constant 1.000000e+00 : f32
    %1291 = vector.broadcast %cst_338 : f32 to vector<8x16xf32>
    %1292 = arith.divf %1291, %1290 : vector<8x16xf32>
    %1293 = vector.extract_strided_slice %698 {offsets = [0, 64], sizes = [8, 16], strides = [1, 1]} : vector<8x96xf32> to vector<8x16xf32>
    %1294 = vector.extract_strided_slice %1252 {offsets = [0, 64], sizes = [8, 16], strides = [1, 1]} : vector<8x96xf32> to vector<8x16xf32>
    %1295 = arith.addf %1293, %1294 : vector<8x16xf32>
    %cst_339 = arith.constant 0.000000e+00 : f32
    %1296 = vector.broadcast %cst_339 : f32 to vector<8x16xf32>
    %1297 = arith.subf %1296, %1295 : vector<8x16xf32>
    %1298 = math.exp %1297 : vector<8x16xf32>
    %cst_340 = arith.constant 1.000000e+00 : f32
    %1299 = vector.broadcast %cst_340 : f32 to vector<8x16xf32>
    %1300 = arith.addf %1299, %1298 : vector<8x16xf32>
    %cst_341 = arith.constant 1.000000e+00 : f32
    %1301 = vector.broadcast %cst_341 : f32 to vector<8x16xf32>
    %1302 = arith.divf %1301, %1300 : vector<8x16xf32>
    %1303 = vector.extract_strided_slice %698 {offsets = [0, 80], sizes = [8, 16], strides = [1, 1]} : vector<8x96xf32> to vector<8x16xf32>
    %1304 = vector.extract_strided_slice %1252 {offsets = [0, 80], sizes = [8, 16], strides = [1, 1]} : vector<8x96xf32> to vector<8x16xf32>
    %1305 = arith.mulf %1292, %1304 : vector<8x16xf32>
    %1306 = arith.addf %1303, %1305 : vector<8x16xf32>
    %1307 = math.tanh %1306 : vector<8x16xf32>
    %cst_342 = arith.constant 1.000000e+00 : f32
    %1308 = vector.broadcast %cst_342 : f32 to vector<8x16xf32>
    %1309 = arith.subf %1308, %1302 : vector<8x16xf32>
    %1310 = arith.mulf %1309, %1307 : vector<8x16xf32>
    %1311 = arith.mulf %1302, %1248 : vector<8x16xf32>
    %1312 = arith.addf %1310, %1311 : vector<8x16xf32>
    %1313 = tpu.concatenate %834, %1312 in 1 : vector<8x16xf32>, vector<8x16xf32> -> vector<8x32xf32>
    %1314 = tpu.concatenate %898, %1248 in 1 : vector<8x16xf32>, vector<8x16xf32> -> vector<8x32xf32>
    %1315 = tpu.concatenate %962, %1184 in 1 : vector<8x16xf32>, vector<8x16xf32> -> vector<8x32xf32>
    %1316 = tpu.concatenate %1026, %1120 in 1 : vector<8x16xf32>, vector<8x16xf32> -> vector<8x32xf32>
    %1317 = tpu.concatenate %1090, %1056 in 1 : vector<8x16xf32>, vector<8x16xf32> -> vector<8x32xf32>
    %1318 = tpu.concatenate %1154, %992 in 1 : vector<8x16xf32>, vector<8x16xf32> -> vector<8x32xf32>
    %1319 = tpu.concatenate %1218, %928 in 1 : vector<8x16xf32>, vector<8x16xf32> -> vector<8x32xf32>
    %1320 = tpu.concatenate %1282, %864 in 1 : vector<8x16xf32>, vector<8x16xf32> -> vector<8x32xf32>
    %1321 = vector.shape_cast %1313 : vector<8x32xf32> to vector<1x8x32xf32>
    %1322 = vector.shape_cast %1314 : vector<8x32xf32> to vector<1x8x32xf32>
    %1323 = vector.shape_cast %1315 : vector<8x32xf32> to vector<1x8x32xf32>
    %1324 = vector.shape_cast %1316 : vector<8x32xf32> to vector<1x8x32xf32>
    %1325 = vector.shape_cast %1317 : vector<8x32xf32> to vector<1x8x32xf32>
    %1326 = vector.shape_cast %1318 : vector<8x32xf32> to vector<1x8x32xf32>
    %1327 = vector.shape_cast %1319 : vector<8x32xf32> to vector<1x8x32xf32>
    %1328 = vector.shape_cast %1320 : vector<8x32xf32> to vector<1x8x32xf32>
    %1329 = tpu.concatenate %1321, %1322, %1323, %1324, %1325, %1326, %1327, %1328 in 0 : vector<1x8x32xf32>, vector<1x8x32xf32>, vector<1x8x32xf32>, vector<1x8x32xf32>, vector<1x8x32xf32>, vector<1x8x32xf32>, vector<1x8x32xf32>, vector<1x8x32xf32> -> vector<8x8x32xf32>
    %1330 = vector.extract_strided_slice %1329 {offsets = [0, 0, 0], sizes = [8, 2, 32], strides = [1, 1, 1]} : vector<8x8x32xf32> to vector<8x2x32xf32>
    %c0_343 = arith.constant 0 : index
    %c0_344 = arith.constant 0 : index
    %c0_345 = arith.constant 0 : index
    %1331 = vector.load %arg13[%c0_343, %c0_344, %c0_345] : memref<8x2x32xf32, #tpu.memory_space<vmem>>, vector<8x2x32xf32>
    tpu.vector_store %arg13[%c0_343, %c0_344, %c0_345], %1330 {strides = array<i32>} : memref<8x2x32xf32, #tpu.memory_space<vmem>>, vector<8x2x32xf32>,
    %1332 = vector.extract_strided_slice %1282 {offsets = [0, 0], sizes = [2, 16], strides = [1, 1]} : vector<8x16xf32> to vector<2x16xf32>
    %1333 = vector.extract_strided_slice %1312 {offsets = [0, 0], sizes = [2, 16], strides = [1, 1]} : vector<8x16xf32> to vector<2x16xf32>
    %1334 = vector.shape_cast %1332 : vector<2x16xf32> to vector<1x2x16xf32>
    %1335 = vector.shape_cast %1333 : vector<2x16xf32> to vector<1x2x16xf32>
    %1336 = tpu.concatenate %1334, %1335 in 0 : vector<1x2x16xf32>, vector<1x2x16xf32> -> vector<2x2x16xf32>
    %c0_346 = arith.constant 0 : index
    %c0_347 = arith.constant 0 : index
    %c0_348 = arith.constant 0 : index
    %1337 = vector.load %arg14[%c0_346, %c0_347, %c0_348] : memref<2x2x16xf32, #tpu.memory_space<vmem>>, vector<2x2x16xf32>
    tpu.vector_store %arg14[%c0_346, %c0_347, %c0_348], %1336 {strides = array<i32>} : memref<2x2x16xf32, #tpu.memory_space<vmem>>, vector<2x2x16xf32>,
    return
  }
}

</mosaic_0001>

<bundles_post_ra>
// kernel: encoder_forward.1
= control target key start
LH: loop header
LB: loop body
LE: loop exit
PB: predicated region body
PF: predicated region fallthrough
CT: control target
= control target key end

     0   :  { %20 = vsyncpa [#allocation3], 0  ;;  %vm67_vm0 = vcmask 261120   ;;  %s7554_s0 = inlined_call_operand.vmem [shape: f32[64,32], index: 0, kind: input, shape index: {}]   ;;  %s7555_s1 = inlined_call_operand.vmem [shape: f32[64,32], index: 1, kind: input, shape index: {}]   ;;  %s7556_s2 = inlined_call_operand.vmem [shape: f32[32,96], index: 2, kind: input, shape index: {}]   ;;  %s7557_s3 = inlined_call_operand.vmem [shape: f32[32,96], index: 3, kind: input, shape index: {}]   ;;  %s7558_s4 = inlined_call_operand.vmem [shape: f32[1,96], index: 4, kind: input, shape index: {}]   ;;  %s7559_s5 = inlined_call_operand.vmem [shape: f32[1,96], index: 5, kind: input, shape index: {}]   ;;  %s7560_s6 = inlined_call_operand.vmem [shape: f32[1,32], index: 6, kind: input, shape index: {}]   ;;  %s7561_s7 = inlined_call_operand.vmem [shape: f32[1,32], index: 7, kind: input, shape index: {}]   ;;  %s7562_s8 = inlined_call_operand.vmem [shape: f32[1,32], index: 8, kind: input, shape index: {}]   ;;  %s7563_s9 = inlined_call_operand.vmem [shape: f32[128,96], index: 9, kind: input, shape index: {}]   ;;  %s7564_s10 = inlined_call_operand.vmem [shape: f32[32,96], index: 10, kind: input, shape index: {}]   ;;  %s7565_s11 = inlined_call_operand.vmem [shape: f32[1,96], index: 11, kind: input, shape index: {}]   ;;  %s7566_s12 = inlined_call_operand.vmem [shape: f32[1,96], index: 12, kind: input, shape index: {}]   ;;  %s7567_s13 = inlined_call_operand.hbm [shape: f32[8,2,32], index: 13, kind: output, shape index: {0}]   ;;  %s7568_s14 = inlined_call_operand.hbm [shape: f32[2,2,16], index: 14, kind: output, shape index: {1}]  }
   0x1   :  { %v56_v0 = vld [vmem:[%s7556_s2] sm:$0xff]  ;;  %v57_v1 = vld [vmem:[%s7556_s2 + $0x8] sm:$0xff]  ;;  %v58_v2 = vld [vmem:[%s7556_s2 + $0x10] sm:$0xff] }
   0x2   :  { %v5515_v3 = vpack.c.bf16 %v57_v1, %v56_v0  ;;  %v59_v4 = vld [vmem:[%s7556_s2 + $0x18] sm:$0xff]  ;;  %v48_v5 = vld [vmem:[%s7554_s0] sm:$0xff]  ;;  %v335_v8 = vld [vmem:[%s7557_s3 + $0x8] sm:$0xff] }
   0x3   :  { %v5519_v6 = vpack.c.bf16 %v59_v4, %v58_v2  ;;  %5011 = vmatprep.mubr.msk.f32.mxu0 %vm67_vm0, %v48_v5  ;;  %v334_v7 = vld [vmem:[%s7557_s3] sm:$0xff]  ;;  %v336_v11 = vld [vmem:[%s7557_s3 + $0x10] sm:$0xff]  ;;  %v337_v12 = vld [vmem:[%s7557_s3 + $0x18] sm:$0xff] }
   0x4   :  { %5516 = vmatprep.subr.bf16.mxu0 %v5515_v3  ;;  %5524 = vmatprep.subr.bf16.mxu1 %v5515_v3  ;;  %v197_v9 = vld [vmem:[%s7555_s1] sm:$0xff]  ;;  %v6298_v10 = vpack.c.bf16 %v335_v8, %v334_v7  ;;  %v49_v13 = vld [vmem:[%s7554_s0 + $0x8] sm:$0xff] }
   0x5   :  { %5518 = vmatpush3.bf16.msra.mxu0 %v5515_v3  ;;  %5526 = vmatpush3.bf16.msra.mxu1 %v5515_v3  ;;  %v198_v14 = vld [vmem:[%s7555_s1 + $0x8] sm:$0xff] }
   0x6   :  { %5520 = vmatprep.subr.bf16.mxu0 %v5519_v6  ;;  %5528 = vmatprep.subr.bf16.mxu1 %v5519_v6 }
   0x7   :  { %5031 = vmatprep.mubr.msk.f32.mxu1 %vm67_vm0, %v197_v9 }
   0x9   :  { %5522 = vmatpush3.bf16.msra.mxu0 %v5519_v6  ;;  %5530 = vmatpush3.bf16.msra.mxu1 %v5519_v6 }
   0xa   :  { %21 = vsyncpa [#allocation5], 0  ;;  %5532 = vmatprep.subr.bf16.mxu0 %v6298_v10  ;;  %v50_v15 = vld [vmem:[%s7554_s0 + $0x10] sm:$0xff]  ;;  %v6317_v16 = vpack.c.bf16 %v337_v12, %v336_v11  ;;  %5540 = vmatprep.subr.bf16.mxu1 %v6298_v10  ;;  %v51_v18 = vld [vmem:[%s7554_s0 + $0x18] sm:$0xff]  ;;  %v6186_v28 = vmov 0.0   ;;  %s6187_s26 = smov 96  }
   0xb   :  { %v199_v17 = vld [vmem:[%s7555_s1 + $0x10] sm:$0xff]  ;;  %v200_v19 = vld [vmem:[%s7555_s1 + $0x18] sm:$0xff]  ;;  %v52_v20 = vld [vmem:[%s7554_s0 + $0x20] sm:$0xff]  ;;  %s6188_s27 = smov 32   ;;  %s6189_s28 = smov 112   ;;  %vm535_vm1 = vcmask 130048  }
   0xc   :  { %5012 = vmatmul.mubr.msk.f32.vlgmr.msra.gmra.mrb[0].mxu0 %vm67_vm0, %v49_v13  ;;  %5032 = vmatmul.mubr.msk.f32.vlgmr.msra.gmra.mrb[0].mxu1 %vm67_vm0, %v198_v14  ;;  %v201_v21 = vld [vmem:[%s7555_s1 + $0x20] sm:$0xff]  ;;  %v53_v22 = vld [vmem:[%s7554_s0 + $0x28] sm:$0xff]  ;;  %v54_v24 = vld [vmem:[%s7554_s0 + $0x30] sm:$0xff]  ;;  %s6190_s2 = smov 80   ;;  %vm6192_vm2 = vmmov 0   ;;  %vm2260_vm5 = vcmask 64512  }
   0xd   :  { %5534 = vmatpush3.bf16.msra.mxu0 %v6298_v10  ;;  %5014 = vmatprep.mubr.msk.f32.mxu0 %vm67_vm0, %v50_v15  ;;  %v202_v23 = vld [vmem:[%s7555_s1 + $0x28] sm:$0xff]  ;;  %v203_v25 = vld [vmem:[%s7555_s1 + $0x30] sm:$0xff]  ;;  %v55_v26 = vld [vmem:[%s7554_s0 + $0x38] sm:$0xff]  ;;  %vm2385_vm7 = vcmask 523264   ;;  %vm2387_vm8 = vcmask 785408  }
   0xe   :  { %5034 = vmatprep.mubr.msk.f32.mxu1 %vm67_vm0, %v199_v17  ;;  %5536 = vmatprep.subr.bf16.mxu0 %v6317_v16  ;;  %v204_v27 = vld [vmem:[%s7555_s1 + $0x38] sm:$0xff]  ;;  %v4684_v29 = vld [vmem:[%s7558_s4] ss:$0 sm:$0xff]  ;;  %s6194_s4 = smov 64  }
   0xf   :  { %5542 = vmatpush3.bf16.msra.mxu1 %v6298_v10  ;;  %v6411_v58 = vld [vmem:[%s7559_s5] ss:$0 sm:$0xff] }
  0x10   :  { %5015 = vmatmul.mubr.msk.f32.gmra.mrb[2].mxu0 %vm67_vm0, %v51_v18  ;;  %5035 = vmatmul.mubr.msk.f32.gmra.mrb[2].mxu1 %vm67_vm0, %v200_v19 }
  0x11   :  { %5017 = vmatprep.mubr.msk.f32.mxu0 %vm67_vm0, %v52_v20  ;;  %5538 = vmatpush3.bf16.msra.mxu0 %v6317_v16 }
  0x12   :  { %5037 = vmatprep.mubr.msk.f32.mxu1 %vm67_vm0, %v201_v21  ;;  %5544 = vmatprep.subr.bf16.mxu1 %v6317_v16 }
  0x13   :  { %5546 = vmatpush3.bf16.msra.mxu1 %v6317_v16  ;;  %5548 = vmatprep.subr.bf16.mxu0 %v6298_v10 }
  0x14   :  { %5018 = vmatmul.mubr.msk.f32.gmra.mrb[4].mxu0 %vm67_vm0, %v53_v22  ;;  %5038 = vmatmul.mubr.msk.f32.gmra.mrb[4].mxu1 %vm67_vm0, %v202_v23 }
  0x15   :  { %5020 = vmatprep.mubr.msk.f32.mxu0 %vm67_vm0, %v54_v24  ;;  %5040 = vmatprep.mubr.msk.f32.mxu1 %vm67_vm0, %v203_v25 }
  0x16   :  { %5556 = vmatprep.subr.bf16.mxu1 %v6298_v10 }
  0x18   :  { %5021 = vmatmul.mubr.msk.f32.gmra.mrb[6].mxu0 %vm67_vm0, %v55_v26  ;;  %5041 = vmatmul.mubr.msk.f32.gmra.mrb[6].mxu1 %vm67_vm0, %v204_v27 }
  0x19   :  { %5051 = vmatprep.mubr.f32.mxu0 %v6186_v28 }
  0x1c   :  { %5052 = vmatmul.mubr.f32.vlgmr.msra.gmra.mrb[8].mxu0 %v6186_v28 }
  0x1d   :  { %5550 = vmatpush3.bf16.msra.mxu0 %v6298_v10 }
  0x1e   :  { %5552 = vmatprep.subr.bf16.mxu0 %v6317_v16 }
  0x21   :  { %5554 = vmatpush3.bf16.msra.mxu0 %v6317_v16 }
  0x22   :  { %5564 = vmatprep.subr.bf16.mxu0 %v6298_v10 }
  0xdf   :  { %v5013_v30 = vpop.f32.mrb[0].mxu0  ;;  %v5033_v31 = vpop.f32.mrb[0].mxu1 }
  0xe0   :  { %v6384_v32 = vadd.f32 %v5013_v30, %v4684_v29  ;;  %v158_v33 = vpop.f32.mrb[1].mxu0  ;;  %v6386_v34 = vadd.f32 %v5033_v31, %v4684_v29  ;;  %v295_v35 = vpop.f32.mrb[1].mxu1 }
  0xe1   :  { %v6417_v63 = vadd.f32 %v4684_v29, %v158_v33  ;;  %v6419_v0 = vadd.f32 %v4684_v29, %v295_v35 }
  0xe3   :  { %v5016_v36 = vpop.f32.mrb[2].mxu0  ;;  %v5036_v37 = vpop.f32.mrb[2].mxu1 }
  0xe4   :  { %v6388_v38 = vadd.f32 %v5016_v36, %v4684_v29  ;;  %v168_v39 = vpop.f32.mrb[3].mxu0  ;;  %v6390_v40 = vadd.f32 %v5036_v37, %v4684_v29  ;;  %v305_v41 = vpop.f32.mrb[3].mxu1 }
  0xe5   :  { %v6392_v42 = vadd.f32 %v4684_v29, %v168_v39  ;;  %v6394_v43 = vadd.f32 %v4684_v29, %v305_v41 }
  0xe7   :  { %v5019_v44 = vpop.f32.mrb[4].mxu0  ;;  %v5039_v45 = vpop.f32.mrb[4].mxu1 }
  0xe8   :  { %v6396_v46 = vadd.f32 %v5019_v44, %v4684_v29  ;;  %v178_v47 = vpop.f32.mrb[5].mxu0  ;;  %v6398_v48 = vadd.f32 %v5039_v45, %v4684_v29  ;;  %v315_v49 = vpop.f32.mrb[5].mxu1 }
  0xe9   :  { %v6400_v50 = vadd.f32 %v4684_v29, %v178_v47  ;;  %v6402_v51 = vadd.f32 %v4684_v29, %v315_v49 }
  0xeb   :  { %v5022_v52 = vpop.f32.mrb[6].mxu0  ;;  %v5042_v53 = vpop.f32.mrb[6].mxu1 }
  0xec   :  { %v188_v54 = vpop.f32.mrb[7].mxu0  ;;  %v325_v55 = vpop.f32.mrb[7].mxu1  ;;  %v6422_v2 = vadd.f32 %v5022_v52, %v4684_v29  ;;  %v6425_v4 = vadd.f32 %v5042_v53, %v4684_v29 }
  0xed   :  { %v6404_v56 = vadd.f32 %v4684_v29, %v188_v54  ;;  %v6406_v57 = vadd.f32 %v4684_v29, %v325_v55 }
  0xef   :  { %v5053_v59 = vpop.f32.mrb[8].mxu0 }
  0xf0   :  { %v414_v60 = vpop.f32.mrb[9].mxu0  ;;  %v420_v62 = vadd.f32 %v5053_v59, %v6411_v58 }
  0xf1   :  { %v415_v61 = vadd.f32 %v6411_v58, %v414_v60 }
  0xf2   :  { %v424_v3 = vadd.f32 %v420_v62, %v6419_v0  ;;  %v476_v8 = vadd.f32 %v420_v62, %v6425_v4 }
  0xf3   :  { %439 = vrot.lane.b32.xlu0 %v415_v61, %s6187_s26  ;;  %v423_v1 = vadd.f32 %v415_v61, %v6417_v63  ;;  %v475_v6 = vadd.f32 %v415_v61, %v6422_v2 }
  0xf4   :  { %v426_v7 = vsub.f32 0.0, %v424_v3  ;;  %v478_v13 = vsub.f32 0.0, %v476_v8 }
  0xf5   :  { %v425_v5 = vsub.f32 0.0, %v423_v1  ;;  %v477_v11 = vsub.f32 0.0, %v475_v6 }
  0xf6   :  { %v429_v12 = vmul.f32 1.442695, %v426_v7  ;;  %v481_v15 = vmul.f32 1.442695, %v478_v13 }
  0xf7   :  { %441 = vrot.lane.b32.xlu0 %v420_v62, %s6187_s26  ;;  %v427_v9 = vmul.f32 1.442695, %v425_v5  ;;  %v479_v14 = vmul.f32 1.442695, %v477_v11 }
  0xf9   :  { %5833 = vpow2.f32 %v427_v9 }
  0xfa   :  { %5835 = vpow2.f32 %v429_v12 }
  0xfb   :  { %5837 = vpow2.f32 %v479_v14 }
  0xfc   :  { %5839 = vpow2.f32 %v481_v15 }
 0x103   :  { %v5834_v17 = vpop.eup %5833 }
 0x104   :  { %v5836_v18 = vpop.eup %5835  ;;  %v431_v19 = vadd.f32 1.0, %v5834_v17 }
 0x105   :  { %v5838_v20 = vpop.eup %5837  ;;  %v432_v21 = vadd.f32 1.0, %v5836_v18 }
 0x106   :  { %5841 = vrcp.f32 %v431_v19  ;;  %v483_v22 = vadd.f32 1.0, %v5838_v20  ;;  %v5840_v23 = vpop.eup %5839 }
 0x107   :  { %5843 = vrcp.f32 %v432_v21  ;;  %v484_v24 = vadd.f32 1.0, %v5840_v23 }
 0x108   :  { %5845 = vrcp.f32 %v483_v22 }
 0x109   :  { %5847 = vrcp.f32 %v484_v24 }
 0x110   :  { %v5842_v25 = vpop.eup %5841 }
 0x111   :  { %v5844_v29 = vpop.eup %5843  ;;  %v459_v61 = vsub.f32 1.0, %v5842_v25  ;;  %v471_v1 = vmul.f32 0.0, %v5842_v25 }
 0x112   :  { %v5846_v30 = vpop.eup %5845  ;;  %v460_v6 = vsub.f32 1.0, %v5844_v29  ;;  %v472_v9 = vmul.f32 0.0, %v5844_v29 }
 0x113   :  { %v5848_v36 = vpop.eup %5847  ;;  %v503_v8 = vsub.f32 1.0, %v5846_v30  ;;  %v515_v13 = vmul.f32 0.0, %v5846_v30 }
 0x114   :  { %v504_v18 = vsub.f32 1.0, %v5848_v36  ;;  %v516_v20 = vmul.f32 0.0, %v5848_v36 }
 0x165   :  { %v440_v26 = vpop.permute.xlu0 %439 }
 0x166   :  { %v445_v27 = vmul.f32 %v5842_v25, %v440_v26  ;;  %v489_v33 = vmul.f32 %v5846_v30, %v440_v26 }
 0x168   :  { %449 = vrot.lane.b32.xlu1 %v445_v27, %s6188_s27 }
 0x169   :  { %v442_v31 = vpop.permute.xlu0 %441 }
 0x16a   :  { %v446_v35 = vmul.f32 %v5844_v29, %v442_v31  ;;  %v490_v37 = vmul.f32 %v5848_v36, %v442_v31 }
 0x16c   :  { %451 = vrot.lane.b32.xlu0 %v446_v35, %s6188_s27  ;;  %493 = vrot.lane.b32.xlu1 %v489_v33, %s6188_s27 }
 0x170   :  { %495 = vrot.lane.b32.xlu1 %v490_v37, %s6188_s27 }
 0x1da   :  { %v450_v39 = vpop.permute.xlu1 %449 }
 0x1db   :  { %v455_v41 = vadd.f32 %v450_v39, %v6417_v63 }
 0x1dd   :  { %5849 = vtanh.f32 %v455_v41 }
 0x1de   :  { %v452_v44 = vpop.permute.xlu0 %451  ;;  %v494_v45 = vpop.permute.xlu1 %493 }
 0x1df   :  { %v456_v47 = vadd.f32 %v452_v44, %v6419_v0  ;;  %v499_v49 = vadd.f32 %v494_v45, %v6422_v2 }
 0x1e1   :  { %5851 = vtanh.f32 %v456_v47 }
 0x1e2   :  { %5853 = vtanh.f32 %v499_v49  ;;  %v496_v52 = vpop.permute.xlu1 %495 }
 0x1e3   :  { %v500_v53 = vadd.f32 %v496_v52, %v6425_v4 }
 0x1e5   :  { %5855 = vtanh.f32 %v500_v53 }
 0x1e7   :  { %v5850_v54 = vpop.eup %5849 }
 0x1e8   :  { %463 = vrot.lane.b32.xlu0 %v5850_v54, %s6189_s28 }
 0x1eb   :  { %v5852_v55 = vpop.eup %5851 }
 0x1ec   :  { %v5854_v59 = vpop.eup %5853  ;;  %465 = vrot.lane.b32.xlu0 %v5852_v55, %s6189_s28 }
 0x1ed   :  { %507 = vrot.lane.b32.xlu1 %v5854_v59, %s6189_s28 }
 0x1ef   :  { %v5856_v60 = vpop.eup %5855 }
 0x1f1   :  { %509 = vrot.lane.b32.xlu1 %v5856_v60, %s6189_s28 }
 0x25a   :  { %v464_v62 = vpop.permute.xlu0 %463 }
 0x25b   :  { %v469_v3 = vmul.f32 %v464_v62, %v459_v61 }
 0x25d   :  { %v6441_v5 = vadd.f32 %v471_v1, %v469_v3 }
 0x25e   :  { %v466_v7 = vpop.permute.xlu0 %465 }
 0x25f   :  { %v470_v11 = vmul.f32 %v466_v7, %v460_v6  ;;  %v508_v12 = vpop.permute.xlu1 %507  ;;  %521 = vrot.lane.b32.xlu0 %v6441_v5, %s6189_s28 }
 0x260   :  { %v513_v14 = vmul.f32 %v508_v12, %v503_v8 }
 0x261   :  { %v6445_v15 = vadd.f32 %v472_v9, %v470_v11 }
 0x262   :  { %v6447_v17 = vadd.f32 %v515_v13, %v513_v14 }
 0x263   :  { %v510_v19 = vpop.permute.xlu1 %509  ;;  %523 = vrot.lane.b32.xlu0 %v6445_v15, %s6189_s28 }
 0x264   :  { %v514_v21 = vmul.f32 %v510_v19, %v504_v18  ;;  %529 = vrot.lane.b32.xlu1 %v6447_v17, %s6190_s2 }
 0x266   :  { %v6453_v22 = vadd.f32 %v516_v20, %v514_v21 }
 0x268   :  { %531 = vrot.lane.b32.xlu1 %v6453_v22, %s6190_s2 }
 0x2d1   :  { %v6457_v23 = vpop.permute.xlu0 %521 }
 0x2d5   :  { %v6465_v26 = vpop.permute.xlu0 %523 }
 0x2d6   :  { %v6459_v24 = vpop.permute.xlu1 %529 }
 0x2d7   :  { %v536_v25 = vsel %vm535_vm1, %v6457_v23, %v6459_v24 }
 0x2d8   :  { %5062 = vmatprep.mubr.msk.f32.mxu1 %vm67_vm0, %v536_v25 }
 0x2da   :  { %v6467_v27 = vpop.permute.xlu1 %531 }
 0x2db   :  { %v537_v29 = vsel %vm535_vm1, %v6465_v26, %v6467_v27 }
 0x2dc   :  { %5063 = vmatmul.mubr.msk.f32.vlgmr.msra.gmra.mrb[8].mxu1 %vm67_vm0, %v537_v29 }
 0x2dd   :  { %5558 = vmatpush3.bf16.msra.mxu1 %v6298_v10 }
 0x2de   :  { %5560 = vmatprep.subr.bf16.mxu1 %v6317_v16 }
 0x2e1   :  { %5562 = vmatpush3.bf16.msra.mxu1 %v6317_v16 }
 0x2e2   :  { %5572 = vmatprep.subr.bf16.mxu1 %v6298_v10 }
 0x3af   :  { %v5064_v30 = vpop.f32.mrb[8].mxu1 }
 0x3b0   :  { %v616_v31 = vadd.f32 %v5064_v30, %v6411_v58  ;;  %v610_v33 = vpop.f32.mrb[9].mxu1 }
 0x3b1   :  { %v611_v35 = vadd.f32 %v6411_v58, %v610_v33 }
 0x3b2   :  { %637 = vrot.lane.b32.xlu1 %v616_v31, %s6187_s26  ;;  %v620_v39 = vadd.f32 %v616_v31, %v6386_v34  ;;  %v672_v44 = vadd.f32 %v616_v31, %v6406_v57 }
 0x3b3   :  { %635 = vrot.lane.b32.xlu0 %v611_v35, %s6187_s26  ;;  %v619_v36 = vadd.f32 %v611_v35, %v6384_v32  ;;  %v671_v37 = vadd.f32 %v611_v35, %v6404_v56 }
 0x3b4   :  { %v622_v47 = vsub.f32 0.0, %v620_v39  ;;  %v674_v52 = vsub.f32 0.0, %v672_v44 }
 0x3b5   :  { %v621_v41 = vsub.f32 0.0, %v619_v36  ;;  %v673_v45 = vsub.f32 0.0, %v671_v37 }
 0x3b6   :  { %v625_v54 = vmul.f32 1.442695, %v622_v47  ;;  %v677_v55 = vmul.f32 1.442695, %v674_v52 }
 0x3b7   :  { %v623_v49 = vmul.f32 1.442695, %v621_v41  ;;  %v675_v53 = vmul.f32 1.442695, %v673_v45 }
 0x3b9   :  { %5857 = vpow2.f32 %v623_v49 }
 0x3ba   :  { %5859 = vpow2.f32 %v675_v53 }
 0x3bb   :  { %5861 = vpow2.f32 %v625_v54 }
 0x3bc   :  { %5863 = vpow2.f32 %v677_v55 }
 0x3c3   :  { %v5858_v59 = vpop.eup %5857 }
 0x3c4   :  { %v5860_v60 = vpop.eup %5859  ;;  %v627_v61 = vadd.f32 1.0, %v5858_v59 }
 0x3c5   :  { %v5862_v62 = vpop.eup %5861  ;;  %v679_v1 = vadd.f32 1.0, %v5860_v60 }
 0x3c6   :  { %v5864_v3 = vpop.eup %5863  ;;  %v628_v6 = vadd.f32 1.0, %v5862_v62  ;;  %5865 = vrcp.f32 %v627_v61 }
 0x3c7   :  { %v680_v7 = vadd.f32 1.0, %v5864_v3  ;;  %5867 = vrcp.f32 %v679_v1 }
 0x3c8   :  { %5869 = vrcp.f32 %v628_v6 }
 0x3c9   :  { %5871 = vrcp.f32 %v680_v7 }
 0x3d0   :  { %v5866_v8 = vpop.eup %5865 }
 0x3d1   :  { %v5868_v9 = vpop.eup %5867  ;;  %v655_v52 = vsub.f32 1.0, %v5866_v8  ;;  %v667_v59 = vmul.f32 %v5866_v8, %v6441_v5 }
 0x3d2   :  { %v5870_v18 = vpop.eup %5869  ;;  %v699_v47 = vsub.f32 1.0, %v5868_v9  ;;  %v711_v53 = vmul.f32 %v5868_v9, %v6447_v17 }
 0x3d3   :  { %v5872_v19 = vpop.eup %5871  ;;  %v656_v6 = vsub.f32 1.0, %v5870_v18  ;;  %v668_v17 = vmul.f32 %v5870_v18, %v6445_v15 }
 0x3d4   :  { %v700_v62 = vsub.f32 1.0, %v5872_v19  ;;  %v712_v7 = vmul.f32 %v5872_v19, %v6453_v22 }
 0x424   :  { %v638_v14 = vpop.permute.xlu1 %637 }
 0x425   :  { %v636_v11 = vpop.permute.xlu0 %635  ;;  %v642_v20 = vmul.f32 %v5870_v18, %v638_v14  ;;  %v686_v21 = vmul.f32 %v5872_v19, %v638_v14 }
 0x426   :  { %v641_v12 = vmul.f32 %v5866_v8, %v636_v11  ;;  %v685_v13 = vmul.f32 %v5868_v9, %v636_v11 }
 0x428   :  { %689 = vrot.lane.b32.xlu1 %v685_v13, %s6188_s27  ;;  %645 = vrot.lane.b32.xlu0 %v641_v12, %s6188_s27 }
 0x42c   :  { %691 = vrot.lane.b32.xlu1 %v686_v21, %s6188_s27  ;;  %647 = vrot.lane.b32.xlu0 %v642_v20, %s6188_s27 }
 0x49a   :  { %v690_v25 = vpop.permute.xlu1 %689  ;;  %v646_v29 = vpop.permute.xlu0 %645 }
 0x49b   :  { %v695_v30 = vadd.f32 %v690_v25, %v6404_v56  ;;  %v651_v31 = vadd.f32 %v646_v29, %v6384_v32 }
 0x49d   :  { %5873 = vtanh.f32 %v695_v30 }
 0x49e   :  { %5875 = vtanh.f32 %v651_v31  ;;  %v692_v33 = vpop.permute.xlu1 %691  ;;  %v648_v35 = vpop.permute.xlu0 %647 }
 0x49f   :  { %v696_v36 = vadd.f32 %v692_v33, %v6406_v57  ;;  %v652_v37 = vadd.f32 %v648_v35, %v6386_v34 }
 0x4a1   :  { %5877 = vtanh.f32 %v696_v36 }
 0x4a2   :  { %5879 = vtanh.f32 %v652_v37 }
 0x4a7   :  { %v5874_v39 = vpop.eup %5873 }
 0x4a8   :  { %v5876_v41 = vpop.eup %5875  ;;  %703 = vrot.lane.b32.xlu1 %v5874_v39, %s6189_s28 }
 0x4a9   :  { %659 = vrot.lane.b32.xlu0 %v5876_v41, %s6189_s28 }
 0x4ab   :  { %v5878_v44 = vpop.eup %5877 }
 0x4ac   :  { %v5880_v45 = vpop.eup %5879  ;;  %705 = vrot.lane.b32.xlu1 %v5878_v44, %s6189_s28 }
 0x4ad   :  { %661 = vrot.lane.b32.xlu0 %v5880_v45, %s6189_s28 }
 0x51a   :  { %v704_v49 = vpop.permute.xlu1 %703 }
 0x51b   :  { %v709_v54 = vmul.f32 %v704_v49, %v699_v47  ;;  %v660_v55 = vpop.permute.xlu0 %659 }
 0x51c   :  { %v665_v60 = vmul.f32 %v660_v55, %v655_v52 }
 0x51d   :  { %v6499_v61 = vadd.f32 %v711_v53, %v709_v54 }
 0x51e   :  { %v6501_v1 = vadd.f32 %v667_v59, %v665_v60  ;;  %v706_v3 = vpop.permute.xlu1 %705 }
 0x51f   :  { %v710_v11 = vmul.f32 %v706_v3, %v700_v62  ;;  %v662_v12 = vpop.permute.xlu0 %661  ;;  %725 = vrot.lane.b32.xlu1 %v6499_v61, %s6190_s2 }
 0x520   :  { %v666_v9 = vmul.f32 %v662_v12, %v656_v6  ;;  %717 = vrot.lane.b32.xlu0 %v6501_v1, %s6189_s28 }
 0x521   :  { %v6509_v5 = vadd.f32 %v712_v7, %v710_v11 }
 0x522   :  { %v6511_v8 = vadd.f32 %v668_v17, %v666_v9 }
 0x523   :  { %727 = vrot.lane.b32.xlu1 %v6509_v5, %s6190_s2 }
 0x524   :  { %719 = vrot.lane.b32.xlu0 %v6511_v8, %s6189_s28 }
 0x591   :  { %v6517_v22 = vpop.permute.xlu1 %725 }
 0x592   :  { %v6519_v13 = vpop.permute.xlu0 %717 }
 0x593   :  { %v731_v15 = vsel %vm535_vm1, %v6519_v13, %v6517_v22 }
 0x594   :  { %5073 = vmatprep.mubr.msk.f32.mxu0 %vm67_vm0, %v731_v15 }
 0x595   :  { %v6525_v14 = vpop.permute.xlu1 %727 }
 0x596   :  { %v6527_v18 = vpop.permute.xlu0 %719 }
 0x597   :  { %v732_v19 = vsel %vm535_vm1, %v6527_v18, %v6525_v14 }
 0x598   :  { %5074 = vmatmul.mubr.msk.f32.vlgmr.msra.gmra.mrb[10].mxu0 %vm67_vm0, %v732_v19 }
 0x599   :  { %5566 = vmatpush3.bf16.msra.mxu0 %v6298_v10 }
 0x59a   :  { %5568 = vmatprep.subr.bf16.mxu0 %v6317_v16 }
 0x59d   :  { %5570 = vmatpush3.bf16.msra.mxu0 %v6317_v16 }
 0x59e   :  { %5580 = vmatprep.subr.bf16.mxu0 %v6298_v10 }
 0x66b   :  { %v5075_v20 = vpop.f32.mrb[10].mxu0 }
 0x66c   :  { %v811_v21 = vadd.f32 %v5075_v20, %v6411_v58  ;;  %v805_v25 = vpop.f32.mrb[11].mxu0 }
 0x66d   :  { %v806_v29 = vadd.f32 %v6411_v58, %v805_v25 }
 0x66e   :  { %832 = vrot.lane.b32.xlu1 %v811_v21, %s6187_s26  ;;  %v815_v33 = vadd.f32 %v811_v21, %v6394_v43  ;;  %v867_v36 = vadd.f32 %v811_v21, %v6398_v48 }
 0x66f   :  { %830 = vrot.lane.b32.xlu0 %v806_v29, %s6187_s26  ;;  %v814_v30 = vadd.f32 %v806_v29, %v6392_v42  ;;  %v866_v31 = vadd.f32 %v806_v29, %v6396_v46 }
 0x670   :  { %v817_v39 = vsub.f32 0.0, %v815_v33  ;;  %v869_v44 = vsub.f32 0.0, %v867_v36 }
 0x671   :  { %v816_v35 = vsub.f32 0.0, %v814_v30  ;;  %v868_v37 = vsub.f32 0.0, %v866_v31 }
 0x672   :  { %v820_v47 = vmul.f32 1.442695, %v817_v39  ;;  %v872_v49 = vmul.f32 1.442695, %v869_v44 }
 0x673   :  { %v818_v41 = vmul.f32 1.442695, %v816_v35  ;;  %v870_v45 = vmul.f32 1.442695, %v868_v37 }
 0x675   :  { %5881 = vpow2.f32 %v818_v41 }
 0x676   :  { %5883 = vpow2.f32 %v870_v45 }
 0x677   :  { %5885 = vpow2.f32 %v820_v47 }
 0x678   :  { %5887 = vpow2.f32 %v872_v49 }
 0x67f   :  { %v5882_v52 = vpop.eup %5881 }
 0x680   :  { %v5884_v53 = vpop.eup %5883  ;;  %v822_v54 = vadd.f32 1.0, %v5882_v52 }
 0x681   :  { %v5886_v55 = vpop.eup %5885  ;;  %v874_v59 = vadd.f32 1.0, %v5884_v53 }
 0x682   :  { %v5888_v60 = vpop.eup %5887  ;;  %v823_v62 = vadd.f32 1.0, %v5886_v55  ;;  %5889 = vrcp.f32 %v822_v54 }
 0x683   :  { %v875_v3 = vadd.f32 1.0, %v5888_v60  ;;  %5891 = vrcp.f32 %v874_v59 }
 0x684   :  { %5893 = vrcp.f32 %v823_v62 }
 0x685   :  { %5895 = vrcp.f32 %v875_v3 }
 0x68c   :  { %v5890_v6 = vpop.eup %5889 }
 0x68d   :  { %v5892_v7 = vpop.eup %5891  ;;  %v850_v52 = vsub.f32 1.0, %v5890_v6  ;;  %v862_v59 = vmul.f32 %v5890_v6, %v6501_v1 }
 0x68e   :  { %v5894_v15 = vpop.eup %5893  ;;  %v894_v47 = vsub.f32 1.0, %v5892_v7  ;;  %v906_v53 = vmul.f32 %v5892_v7, %v6499_v61 }
 0x68f   :  { %v5896_v19 = vpop.eup %5895  ;;  %v863_v61 = vmul.f32 %v5894_v15, %v6511_v8 }
 0x690   :  { %v895_v3 = vsub.f32 1.0, %v5896_v19 }
 0x6e0   :  { %v833_v9 = vpop.permute.xlu1 %832 }
 0x6e1   :  { %v831_v11 = vpop.permute.xlu0 %830  ;;  %v837_v20 = vmul.f32 %v5894_v15, %v833_v9  ;;  %v881_v21 = vmul.f32 %v5896_v19, %v833_v9  ;;  %v907_v9 = vmul.f32 %v5896_v19, %v6509_v5 }
 0x6e2   :  { %v836_v12 = vmul.f32 %v5890_v6, %v831_v11  ;;  %v880_v17 = vmul.f32 %v5892_v7, %v831_v11 }
 0x6e4   :  { %884 = vrot.lane.b32.xlu1 %v880_v17, %s6188_s27  ;;  %840 = vrot.lane.b32.xlu0 %v836_v12, %s6188_s27  ;;  %v851_v17 = vsub.f32 1.0, %v5894_v15 }
 0x6e8   :  { %886 = vrot.lane.b32.xlu1 %v881_v21, %s6188_s27  ;;  %842 = vrot.lane.b32.xlu0 %v837_v20, %s6188_s27 }
 0x756   :  { %v885_v25 = vpop.permute.xlu1 %884  ;;  %v841_v29 = vpop.permute.xlu0 %840 }
 0x757   :  { %v890_v30 = vadd.f32 %v885_v25, %v6396_v46  ;;  %v846_v31 = vadd.f32 %v841_v29, %v6392_v42 }
 0x759   :  { %5897 = vtanh.f32 %v890_v30 }
 0x75a   :  { %5899 = vtanh.f32 %v846_v31  ;;  %v887_v33 = vpop.permute.xlu1 %886  ;;  %v843_v35 = vpop.permute.xlu0 %842 }
 0x75b   :  { %v891_v36 = vadd.f32 %v887_v33, %v6398_v48  ;;  %v847_v37 = vadd.f32 %v843_v35, %v6394_v43 }
 0x75d   :  { %5901 = vtanh.f32 %v891_v36 }
 0x75e   :  { %5903 = vtanh.f32 %v847_v37 }
 0x763   :  { %v5898_v39 = vpop.eup %5897 }
 0x764   :  { %v5900_v41 = vpop.eup %5899  ;;  %898 = vrot.lane.b32.xlu1 %v5898_v39, %s6189_s28 }
 0x765   :  { %854 = vrot.lane.b32.xlu0 %v5900_v41, %s6189_s28 }
 0x767   :  { %v5902_v44 = vpop.eup %5901 }
 0x768   :  { %v5904_v45 = vpop.eup %5903  ;;  %900 = vrot.lane.b32.xlu1 %v5902_v44, %s6189_s28 }
 0x769   :  { %856 = vrot.lane.b32.xlu0 %v5904_v45, %s6189_s28 }
 0x7d6   :  { %v899_v49 = vpop.permute.xlu1 %898 }
 0x7d7   :  { %v904_v54 = vmul.f32 %v899_v49, %v894_v47  ;;  %v855_v55 = vpop.permute.xlu0 %854 }
 0x7d8   :  { %v860_v60 = vmul.f32 %v855_v55, %v850_v52 }
 0x7d9   :  { %v6559_v62 = vadd.f32 %v906_v53, %v904_v54 }
 0x7da   :  { %v6561_v11 = vadd.f32 %v862_v59, %v860_v60  ;;  %v901_v12 = vpop.permute.xlu1 %900 }
 0x7db   :  { %v905_v20 = vmul.f32 %v901_v12, %v895_v3  ;;  %v857_v21 = vpop.permute.xlu0 %856  ;;  %920 = vrot.lane.b32.xlu1 %v6559_v62, %s6190_s2 }
 0x7dc   :  { %v861_v7 = vmul.f32 %v857_v21, %v851_v17  ;;  %912 = vrot.lane.b32.xlu0 %v6561_v11, %s6189_s28 }
 0x7dd   :  { %v6569_v1 = vadd.f32 %v907_v9, %v905_v20 }
 0x7de   :  { %v6571_v6 = vadd.f32 %v863_v61, %v861_v7 }
 0x7df   :  { %922 = vrot.lane.b32.xlu1 %v6569_v1, %s6190_s2 }
 0x7e0   :  { %914 = vrot.lane.b32.xlu0 %v6571_v6, %s6189_s28 }
 0x84d   :  { %v6577_v5 = vpop.permute.xlu1 %920 }
 0x84e   :  { %v6579_v19 = vpop.permute.xlu0 %912 }
 0x84f   :  { %v926_v8 = vsel %vm535_vm1, %v6579_v19, %v6577_v5 }
 0x850   :  { %5084 = vmatprep.mubr.msk.f32.mxu1 %vm67_vm0, %v926_v8 }
 0x851   :  { %v6585_v15 = vpop.permute.xlu1 %922 }
 0x852   :  { %v6587_v25 = vpop.permute.xlu0 %914 }
 0x853   :  { %v927_v29 = vsel %vm535_vm1, %v6587_v25, %v6585_v15 }
 0x854   :  { %5085 = vmatmul.mubr.msk.f32.vlgmr.msra.gmra.mrb[10].mxu1 %vm67_vm0, %v927_v29 }
 0x855   :  { %5574 = vmatpush3.bf16.msra.mxu1 %v6298_v10 }
 0x856   :  { %5576 = vmatprep.subr.bf16.mxu1 %v6317_v16 }
 0x859   :  { %5578 = vmatpush3.bf16.msra.mxu1 %v6317_v16 }
 0x85a   :  { %5588 = vmatprep.subr.bf16.mxu1 %v6298_v10 }
 0x927   :  { %v5086_v30 = vpop.f32.mrb[10].mxu1 }
 0x928   :  { %v1006_v31 = vadd.f32 %v5086_v30, %v6411_v58  ;;  %v1000_v33 = vpop.f32.mrb[11].mxu1 }
 0x929   :  { %v1001_v35 = vadd.f32 %v6411_v58, %v1000_v33 }
 0x92a   :  { %1027 = vrot.lane.b32.xlu1 %v1006_v31, %s6187_s26  ;;  %v1010_v39 = vadd.f32 %v1006_v31, %v6390_v40  ;;  %v1062_v44 = vadd.f32 %v1006_v31, %v6402_v51 }
 0x92b   :  { %1025 = vrot.lane.b32.xlu0 %v1001_v35, %s6187_s26  ;;  %v1009_v36 = vadd.f32 %v1001_v35, %v6388_v38  ;;  %v1061_v37 = vadd.f32 %v1001_v35, %v6400_v50 }
 0x92c   :  { %v1012_v47 = vsub.f32 0.0, %v1010_v39  ;;  %v1064_v52 = vsub.f32 0.0, %v1062_v44 }
 0x92d   :  { %v1011_v41 = vsub.f32 0.0, %v1009_v36  ;;  %v1063_v45 = vsub.f32 0.0, %v1061_v37 }
 0x92e   :  { %v1015_v54 = vmul.f32 1.442695, %v1012_v47  ;;  %v1067_v55 = vmul.f32 1.442695, %v1064_v52 }
 0x92f   :  { %v1013_v49 = vmul.f32 1.442695, %v1011_v41  ;;  %v1065_v53 = vmul.f32 1.442695, %v1063_v45 }
 0x931   :  { %5905 = vpow2.f32 %v1013_v49 }
 0x932   :  { %5907 = vpow2.f32 %v1065_v53 }
 0x933   :  { %5909 = vpow2.f32 %v1015_v54 }
 0x934   :  { %5911 = vpow2.f32 %v1067_v55 }
 0x93b   :  { %v5906_v59 = vpop.eup %5905 }
 0x93c   :  { %v5908_v60 = vpop.eup %5907  ;;  %v1017_v3 = vadd.f32 1.0, %v5906_v59 }
 0x93d   :  { %v5910_v12 = vpop.eup %5909  ;;  %v1069_v17 = vadd.f32 1.0, %v5908_v60 }
 0x93e   :  { %v5912_v9 = vpop.eup %5911  ;;  %v1018_v20 = vadd.f32 1.0, %v5910_v12  ;;  %5913 = vrcp.f32 %v1017_v3 }
 0x93f   :  { %v1070_v21 = vadd.f32 1.0, %v5912_v9  ;;  %5915 = vrcp.f32 %v1069_v17 }
 0x940   :  { %5917 = vrcp.f32 %v1018_v20 }
 0x941   :  { %5919 = vrcp.f32 %v1070_v21 }
 0x948   :  { %v5914_v61 = vpop.eup %5913 }
 0x949   :  { %v5916_v7 = vpop.eup %5915  ;;  %v1045_v17 = vsub.f32 1.0, %v5914_v61 }
 0x94a   :  { %v5918_v33 = vpop.eup %5917  ;;  %v1089_v3 = vsub.f32 1.0, %v5916_v7  ;;  %v1101_v9 = vmul.f32 %v5916_v7, %v6559_v62 }
 0x94b   :  { %v5920_v35 = vpop.eup %5919  ;;  %v1058_v62 = vmul.f32 %v5918_v33, %v6571_v6 }
 0x99c   :  { %v1028_v31 = vpop.permute.xlu1 %1027 }
 0x99d   :  { %v1026_v8 = vpop.permute.xlu0 %1025  ;;  %v1032_v36 = vmul.f32 %v5918_v33, %v1028_v31  ;;  %v1076_v37 = vmul.f32 %v5920_v35, %v1028_v31  ;;  %v1090_v31 = vsub.f32 1.0, %v5920_v35 }
 0x99e   :  { %v1031_v29 = vmul.f32 %v5914_v61, %v1026_v8  ;;  %v1075_v30 = vmul.f32 %v5916_v7, %v1026_v8  ;;  %v1057_v8 = vmul.f32 %v5914_v61, %v6561_v11 }
 0x9a0   :  { %1079 = vrot.lane.b32.xlu1 %v1075_v30, %s6188_s27  ;;  %1035 = vrot.lane.b32.xlu0 %v1031_v29, %s6188_s27 }
 0x9a4   :  { %1081 = vrot.lane.b32.xlu1 %v1076_v37, %s6188_s27  ;;  %1037 = vrot.lane.b32.xlu0 %v1032_v36, %s6188_s27 }
 0xa12   :  { %v1080_v39 = vpop.permute.xlu1 %1079  ;;  %v1036_v41 = vpop.permute.xlu0 %1035 }
 0xa13   :  { %v1085_v44 = vadd.f32 %v1080_v39, %v6400_v50  ;;  %v1041_v45 = vadd.f32 %v1036_v41, %v6388_v38  ;;  %v1046_v39 = vsub.f32 1.0, %v5918_v33  ;;  %v1102_v41 = vmul.f32 %v5920_v35, %v6569_v1 }
 0xa15   :  { %5921 = vtanh.f32 %v1085_v44 }
 0xa16   :  { %5923 = vtanh.f32 %v1041_v45  ;;  %v1082_v47 = vpop.permute.xlu1 %1081  ;;  %v1038_v49 = vpop.permute.xlu0 %1037 }
 0xa17   :  { %v1086_v52 = vadd.f32 %v1082_v47, %v6402_v51  ;;  %v1042_v53 = vadd.f32 %v1038_v49, %v6390_v40 }
 0xa19   :  { %5925 = vtanh.f32 %v1086_v52 }
 0xa1a   :  { %5927 = vtanh.f32 %v1042_v53 }
 0xa1f   :  { %v5922_v54 = vpop.eup %5921 }
 0xa20   :  { %v5924_v55 = vpop.eup %5923  ;;  %1093 = vrot.lane.b32.xlu1 %v5922_v54, %s6189_s28 }
 0xa21   :  { %1049 = vrot.lane.b32.xlu0 %v5924_v55, %s6189_s28 }
 0xa23   :  { %v5926_v59 = vpop.eup %5925 }
 0xa24   :  { %v5928_v60 = vpop.eup %5927  ;;  %1095 = vrot.lane.b32.xlu1 %v5926_v59, %s6189_s28 }
 0xa25   :  { %1051 = vrot.lane.b32.xlu0 %v5928_v60, %s6189_s28 }
 0xa92   :  { %v1094_v12 = vpop.permute.xlu1 %1093 }
 0xa93   :  { %v1099_v20 = vmul.f32 %v1094_v12, %v1089_v3  ;;  %v1050_v21 = vpop.permute.xlu0 %1049 }
 0xa94   :  { %v1055_v29 = vmul.f32 %v1050_v21, %v1045_v17 }
 0xa95   :  { %v6619_v30 = vadd.f32 %v1101_v9, %v1099_v20 }
 0xa96   :  { %v6621_v36 = vadd.f32 %v1057_v8, %v1055_v29  ;;  %v1096_v37 = vpop.permute.xlu1 %1095 }
 0xa97   :  { %v1100_v44 = vmul.f32 %v1096_v37, %v1090_v31  ;;  %v1052_v45 = vpop.permute.xlu0 %1051  ;;  %1115 = vrot.lane.b32.xlu1 %v6619_v30, %s6190_s2 }
 0xa98   :  { %v1056_v7 = vmul.f32 %v1052_v45, %v1046_v39  ;;  %1107 = vrot.lane.b32.xlu0 %v6621_v36, %s6189_s28 }
 0xa99   :  { %v6629_v11 = vadd.f32 %v1102_v41, %v1100_v44 }
 0xa9a   :  { %v6631_v61 = vadd.f32 %v1058_v62, %v1056_v7 }
 0xa9b   :  { %1117 = vrot.lane.b32.xlu1 %v6629_v11, %s6190_s2 }
 0xa9c   :  { %1109 = vrot.lane.b32.xlu0 %v6631_v61, %s6189_s28 }
 0xb09   :  { %v6637_v1 = vpop.permute.xlu1 %1115 }
 0xb0a   :  { %v6639_v35 = vpop.permute.xlu0 %1107 }
 0xb0b   :  { %v1121_v6 = vsel %vm535_vm1, %v6639_v35, %v6637_v1 }
 0xb0c   :  { %5095 = vmatprep.mubr.msk.f32.mxu0 %vm67_vm0, %v1121_v6 }
 0xb0d   :  { %v6645_v33 = vpop.permute.xlu1 %1117 }
 0xb0e   :  { %v6647_v47 = vpop.permute.xlu0 %1109 }
 0xb0f   :  { %v1122_v49 = vsel %vm535_vm1, %v6647_v47, %v6645_v33 }
 0xb10   :  { %5096 = vmatmul.mubr.msk.f32.vlgmr.msra.gmra.mrb[12].mxu0 %vm67_vm0, %v1122_v49 }
 0xb11   :  { %5582 = vmatpush3.bf16.msra.mxu0 %v6298_v10 }
 0xb12   :  { %5584 = vmatprep.subr.bf16.mxu0 %v6317_v16 }
 0xb15   :  { %5586 = vmatpush3.bf16.msra.mxu0 %v6317_v16 }
 0xbe3   :  { %v5097_v52 = vpop.f32.mrb[12].mxu0 }
 0xbe4   :  { %v1201_v53 = vadd.f32 %v5097_v52, %v6411_v58  ;;  %v1195_v54 = vpop.f32.mrb[13].mxu0 }
 0xbe5   :  { %v1196_v55 = vadd.f32 %v6411_v58, %v1195_v54 }
 0xbe6   :  { %1222 = vrot.lane.b32.xlu1 %v1201_v53, %s6187_s26  ;;  %v1205_v3 = vadd.f32 %v1201_v53, %v6402_v51  ;;  %v1257_v17 = vadd.f32 %v1201_v53, %v6390_v40 }
 0xbe7   :  { %1220 = vrot.lane.b32.xlu0 %v1196_v55, %s6187_s26  ;;  %v1204_v59 = vadd.f32 %v1196_v55, %v6400_v50  ;;  %v1256_v60 = vadd.f32 %v1196_v55, %v6388_v38 }
 0xbe8   :  { %v1207_v20 = vsub.f32 0.0, %v1205_v3  ;;  %v1259_v8 = vsub.f32 0.0, %v1257_v17 }
 0xbe9   :  { %v1206_v12 = vsub.f32 0.0, %v1204_v59  ;;  %v1258_v9 = vsub.f32 0.0, %v1256_v60 }
 0xbea   :  { %v1210_v31 = vmul.f32 1.442695, %v1207_v20  ;;  %v1262_v58 = vmul.f32 1.442695, %v1259_v8 }
 0xbeb   :  { %v1208_v21 = vmul.f32 1.442695, %v1206_v12  ;;  %v1260_v29 = vmul.f32 1.442695, %v1258_v9 }
 0xbed   :  { %5929 = vpow2.f32 %v1208_v21 }
 0xbee   :  { %5931 = vpow2.f32 %v1260_v29 }
 0xbef   :  { %5933 = vpow2.f32 %v1210_v31 }
 0xbf0   :  { %5935 = vpow2.f32 %v1262_v58 }
 0xbf7   :  { %v5930_v37 = vpop.eup %5929 }
 0xbf8   :  { %v5932_v39 = vpop.eup %5931  ;;  %v1212_v41 = vadd.f32 1.0, %v5930_v37 }
 0xbf9   :  { %v5934_v44 = vpop.eup %5933  ;;  %v1264_v45 = vadd.f32 1.0, %v5932_v39 }
 0xbfa   :  { %v5936_v62 = vpop.eup %5935  ;;  %v1213_v7 = vadd.f32 1.0, %v5934_v44  ;;  %5937 = vrcp.f32 %v1212_v41 }
 0xbfb   :  { %v1265_v6 = vadd.f32 1.0, %v5936_v62  ;;  %5939 = vrcp.f32 %v1264_v45 }
 0xbfc   :  { %5941 = vrcp.f32 %v1213_v7 }
 0xbfd   :  { %5943 = vrcp.f32 %v1265_v6 }
 0xc04   :  { %v5938_v49 = vpop.eup %5937 }
 0xc05   :  { %v5940_v52 = vpop.eup %5939  ;;  %v1240_v62 = vsub.f32 1.0, %v5938_v49  ;;  %v1252_v6 = vmul.f32 %v5938_v49, %v6621_v36 }
 0xc06   :  { %v5942_v60 = vpop.eup %5941 }
 0xc07   :  { %v5944_v3 = vpop.eup %5943 }
 0xc58   :  { %v1223_v59 = vpop.permute.xlu1 %1222 }
 0xc59   :  { %v1221_v53 = vpop.permute.xlu0 %1220  ;;  %v1227_v12 = vmul.f32 %v5942_v60, %v1223_v59  ;;  %v1271_v17 = vmul.f32 %v5944_v3, %v1223_v59 }
 0xc5a   :  { %v1226_v54 = vmul.f32 %v5938_v49, %v1221_v53  ;;  %v1270_v55 = vmul.f32 %v5940_v52, %v1221_v53 }
 0xc5c   :  { %1274 = vrot.lane.b32.xlu1 %v1270_v55, %s6188_s27  ;;  %1230 = vrot.lane.b32.xlu0 %v1226_v54, %s6188_s27  ;;  %v1285_v55 = vsub.f32 1.0, %v5944_v3 }
 0xc60   :  { %1276 = vrot.lane.b32.xlu1 %v1271_v17, %s6188_s27  ;;  %1232 = vrot.lane.b32.xlu0 %v1227_v12, %s6188_s27  ;;  %v1241_v17 = vsub.f32 1.0, %v5942_v60 }
 0xcce   :  { %v1275_v9 = vpop.permute.xlu1 %1274  ;;  %v1231_v20 = vpop.permute.xlu0 %1230 }
 0xccf   :  { %v1280_v21 = vadd.f32 %v1275_v9, %v6388_v38  ;;  %v1236_v8 = vadd.f32 %v1231_v20, %v6400_v50  ;;  %v1284_v50 = vsub.f32 1.0, %v5940_v52  ;;  %v1297_v9 = vmul.f32 %v5944_v3, %v6629_v11 }
 0xcd1   :  { %5945 = vtanh.f32 %v1280_v21 }
 0xcd2   :  { %5947 = vtanh.f32 %v1236_v8  ;;  %v1277_v29 = vpop.permute.xlu1 %1276  ;;  %v1233_v31 = vpop.permute.xlu0 %1232 }
 0xcd3   :  { %v1281_v58 = vadd.f32 %v1277_v29, %v6390_v40  ;;  %v1237_v37 = vadd.f32 %v1233_v31, %v6402_v51  ;;  %v1296_v40 = vmul.f32 %v5940_v52, %v6619_v30  ;;  %v1253_v30 = vmul.f32 %v5942_v60, %v6631_v61 }
 0xcd5   :  { %5949 = vtanh.f32 %v1281_v58  ;;  %v6718_v58 = vld [vmem:[%s7559_s5] ss:$0 sm:$0xff] }
 0xcd6   :  { %5951 = vtanh.f32 %v1237_v37 }
 0xcdb   :  { %v5946_v39 = vpop.eup %5945 }
 0xcdc   :  { %v5948_v41 = vpop.eup %5947  ;;  %1288 = vrot.lane.b32.xlu1 %v5946_v39, %s6189_s28 }
 0xcdd   :  { %1244 = vrot.lane.b32.xlu0 %v5948_v41, %s6189_s28 }
 0xcdf   :  { %v5950_v44 = vpop.eup %5949 }
 0xce0   :  { %v5952_v38 = vpop.eup %5951  ;;  %1290 = vrot.lane.b32.xlu1 %v5950_v44, %s6189_s28 }
 0xce1   :  { %1246 = vrot.lane.b32.xlu0 %v5952_v38, %s6189_s28 }
 0xd4e   :  { %v1289_v45 = vpop.permute.xlu1 %1288 }
 0xd4f   :  { %v1294_v51 = vmul.f32 %v1289_v45, %v1284_v50  ;;  %v1245_v7 = vpop.permute.xlu0 %1244 }
 0xd50   :  { %v1250_v53 = vmul.f32 %v1245_v7, %v1240_v62 }
 0xd51   :  { %v6678_v54 = vadd.f32 %v1296_v40, %v1294_v51 }
 0xd52   :  { %v6680_v59 = vadd.f32 %v1252_v6, %v1250_v53  ;;  %v1291_v12 = vpop.permute.xlu1 %1290 }
 0xd53   :  { %v1295_v20 = vmul.f32 %v1291_v12, %v1285_v55  ;;  %v1247_v21 = vpop.permute.xlu0 %1246  ;;  %1310 = vrot.lane.b32.xlu1 %v6678_v54, %s6190_s2 }
 0xd54   :  { %v1251_v52 = vmul.f32 %v1247_v21, %v1241_v17  ;;  %1302 = vrot.lane.b32.xlu0 %v6680_v59, %s6189_s28 }
 0xd55   :  { %v6688_v36 = vadd.f32 %v1297_v9, %v1295_v20 }
 0xd56   :  { %v6690_v49 = vadd.f32 %v1253_v30, %v1251_v52 }
 0xd57   :  { %1312 = vrot.lane.b32.xlu1 %v6688_v36, %s6190_s2 }
 0xd58   :  { %1304 = vrot.lane.b32.xlu0 %v6690_v49, %s6189_s28 }
 0xdc5   :  { %v6696_v11 = vpop.permute.xlu1 %1310 }
 0xdc6   :  { %v6698_v3 = vpop.permute.xlu0 %1302 }
 0xdc7   :  { %v1316_v61 = vsel %vm535_vm1, %v6698_v3, %v6696_v11 }
 0xdc8   :  { %5106 = vmatprep.mubr.msk.f32.mxu1 %vm67_vm0, %v1316_v61 }
 0xdc9   :  { %v6704_v60 = vpop.permute.xlu1 %1312 }
 0xdca   :  { %v6706_v8 = vpop.permute.xlu0 %1304 }
 0xdcb   :  { %v1317_v29 = vsel %vm535_vm1, %v6706_v8, %v6704_v60 }
 0xdcc   :  { %5107 = vmatmul.mubr.msk.f32.vlgmr.msra.gmra.mrb[12].mxu1 %vm67_vm0, %v1317_v29 }
 0xdcd   :  { %5590 = vmatpush3.bf16.msra.mxu1 %v6298_v10 }
 0xdce   :  { %5592 = vmatprep.subr.bf16.mxu1 %v6317_v16 }
 0xdd1   :  { %5594 = vmatpush3.bf16.msra.mxu1 %v6317_v16 }
 0xe9f   :  { %v5108_v31 = vpop.f32.mrb[12].mxu1 }
 0xea0   :  { %v1396_v37 = vadd.f32 %v6718_v58, %v5108_v31  ;;  %v1390_v39 = vpop.f32.mrb[13].mxu1 }
 0xea1   :  { %v1391_v41 = vadd.f32 %v6718_v58, %v1390_v39 }
 0xea2   :  { %1417 = vrot.lane.b32.xlu1 %v1396_v37, %s6187_s26  ;;  %v1400_v16 = vadd.f32 %v1396_v37, %v6398_v48  ;;  %v1452_v50 = vadd.f32 %v1396_v37, %v6394_v43 }
 0xea3   :  { %1415 = vrot.lane.b32.xlu0 %v1391_v41, %s6187_s26  ;;  %v1399_v10 = vadd.f32 %v1391_v41, %v6396_v46  ;;  %v1451_v44 = vadd.f32 %v1391_v41, %v6392_v42 }
 0xea4   :  { %v1402_v62 = vsub.f32 0.0, %v1400_v16  ;;  %v1454_v51 = vsub.f32 0.0, %v1452_v50 }
 0xea5   :  { %v1401_v38 = vsub.f32 0.0, %v1399_v10  ;;  %v1453_v45 = vsub.f32 0.0, %v1451_v44 }
 0xea6   :  { %v1405_v6 = vmul.f32 1.442695, %v1402_v62  ;;  %v1457_v53 = vmul.f32 1.442695, %v1454_v51 }
 0xea7   :  { %v1403_v40 = vmul.f32 1.442695, %v1401_v38  ;;  %v1455_v7 = vmul.f32 1.442695, %v1453_v45 }
 0xea9   :  { %5953 = vpow2.f32 %v1403_v40 }
 0xeaa   :  { %5955 = vpow2.f32 %v1455_v7 }
 0xeab   :  { %5957 = vpow2.f32 %v1405_v6 }
 0xeac   :  { %5959 = vpow2.f32 %v1457_v53 }
 0xeb3   :  { %v5954_v55 = vpop.eup %5953 }
 0xeb4   :  { %v5956_v12 = vpop.eup %5955  ;;  %v1407_v17 = vadd.f32 1.0, %v5954_v55 }
 0xeb5   :  { %v5958_v9 = vpop.eup %5957  ;;  %v1459_v20 = vadd.f32 1.0, %v5956_v12 }
 0xeb6   :  { %v5960_v21 = vpop.eup %5959  ;;  %v1408_v30 = vadd.f32 1.0, %v5958_v9  ;;  %5961 = vrcp.f32 %v1407_v17 }
 0xeb7   :  { %v1460_v52 = vadd.f32 1.0, %v5960_v21  ;;  %5963 = vrcp.f32 %v1459_v20 }
 0xeb8   :  { %5965 = vrcp.f32 %v1408_v30 }
 0xeb9   :  { %5967 = vrcp.f32 %v1460_v52 }
 0xec0   :  { %v5962_v61 = vpop.eup %5961 }
 0xec1   :  { %v5964_v29 = vpop.eup %5963  ;;  %v1435_v20 = vsub.f32 1.0, %v5962_v61  ;;  %v1447_v30 = vmul.f32 %v5962_v61, %v6680_v59 }
 0xec2   :  { %v5966_v10 = vpop.eup %5965 }
 0xec3   :  { %v5968_v44 = vpop.eup %5967 }
 0xf14   :  { %v1418_v41 = vpop.permute.xlu1 %1417 }
 0xf15   :  { %v1416_v31 = vpop.permute.xlu0 %1415  ;;  %v1422_v16 = vmul.f32 %v5966_v10, %v1418_v41  ;;  %v1466_v38 = vmul.f32 %v5968_v44, %v1418_v41 }
 0xf16   :  { %v1421_v37 = vmul.f32 %v5962_v61, %v1416_v31  ;;  %v1465_v39 = vmul.f32 %v5964_v29, %v1416_v31 }
 0xf18   :  { %1469 = vrot.lane.b32.xlu1 %v1465_v39, %s6188_s27  ;;  %1425 = vrot.lane.b32.xlu0 %v1421_v37, %s6188_s27  ;;  %v1480_v37 = vsub.f32 1.0, %v5968_v44 }
 0xf1c   :  { %1471 = vrot.lane.b32.xlu1 %v1466_v38, %s6188_s27  ;;  %1427 = vrot.lane.b32.xlu0 %v1422_v16, %s6188_s27  ;;  %v1436_v16 = vsub.f32 1.0, %v5966_v10  ;;  %v1492_v38 = vmul.f32 %v5968_v44, %v6688_v36 }
 0xf8a   :  { %v1470_v50 = vpop.permute.xlu1 %1469  ;;  %v1426_v45 = vpop.permute.xlu0 %1425 }
 0xf8b   :  { %v1475_v62 = vadd.f32 %v1470_v50, %v6392_v42  ;;  %v1431_v40 = vadd.f32 %v1426_v45, %v6396_v46  ;;  %v1479_v46 = vsub.f32 1.0, %v5964_v29 }
 0xf8d   :  { %5969 = vtanh.f32 %v1475_v62 }
 0xf8e   :  { %5971 = vtanh.f32 %v1431_v40  ;;  %v1472_v51 = vpop.permute.xlu1 %1471  ;;  %v1428_v7 = vpop.permute.xlu0 %1427 }
 0xf8f   :  { %v1476_v6 = vadd.f32 %v1472_v51, %v6394_v43  ;;  %v1432_v53 = vadd.f32 %v1428_v7, %v6398_v48  ;;  %v1491_v43 = vmul.f32 %v5964_v29, %v6678_v54  ;;  %v1448_v54 = vmul.f32 %v5966_v10, %v6690_v49 }
 0xf91   :  { %5973 = vtanh.f32 %v1476_v6 }
 0xf92   :  { %5975 = vtanh.f32 %v1432_v53 }
 0xf97   :  { %v5970_v55 = vpop.eup %5969 }
 0xf98   :  { %v5972_v12 = vpop.eup %5971  ;;  %1483 = vrot.lane.b32.xlu1 %v5970_v55, %s6189_s28 }
 0xf99   :  { %1439 = vrot.lane.b32.xlu0 %v5972_v12, %s6189_s28 }
 0xf9b   :  { %v5974_v17 = vpop.eup %5973 }
 0xf9c   :  { %v5976_v42 = vpop.eup %5975  ;;  %1485 = vrot.lane.b32.xlu1 %v5974_v17, %s6189_s28 }
 0xf9d   :  { %1441 = vrot.lane.b32.xlu0 %v5976_v42, %s6189_s28 }
0x100a   :  { %v1484_v9 = vpop.permute.xlu1 %1483 }
0x100b   :  { %v1489_v48 = vmul.f32 %v1484_v9, %v1479_v46  ;;  %v1440_v21 = vpop.permute.xlu0 %1439 }
0x100c   :  { %v1445_v52 = vmul.f32 %v1440_v21, %v1435_v20 }
0x100d   :  { %v6742_v31 = vadd.f32 %v1491_v43, %v1489_v48 }
0x100e   :  { %v6744_v39 = vadd.f32 %v1447_v30, %v1445_v52  ;;  %v1486_v41 = vpop.permute.xlu1 %1485 }
0x100f   :  { %v1490_v50 = vmul.f32 %v1486_v41, %v1480_v37  ;;  %v1442_v45 = vpop.permute.xlu0 %1441  ;;  %1505 = vrot.lane.b32.xlu1 %v6742_v31, %s6190_s2 }
0x1010   :  { %v1446_v29 = vmul.f32 %v1442_v45, %v1436_v16  ;;  %1497 = vrot.lane.b32.xlu0 %v6744_v39, %s6189_s28 }
0x1011   :  { %v6752_v59 = vadd.f32 %v1492_v38, %v1490_v50 }
0x1012   :  { %v6754_v61 = vadd.f32 %v1448_v54, %v1446_v29 }
0x1013   :  { %1507 = vrot.lane.b32.xlu1 %v6752_v59, %s6190_s2 }
0x1014   :  { %1499 = vrot.lane.b32.xlu0 %v6754_v61, %s6189_s28 }
0x1081   :  { %v6760_v36 = vpop.permute.xlu1 %1505 }
0x1082   :  { %v6762_v44 = vpop.permute.xlu0 %1497 }
0x1083   :  { %v1511_v49 = vsel %vm535_vm1, %v6762_v44, %v6760_v36 }
0x1084   :  { %5117 = vmatprep.mubr.msk.f32.mxu0 %vm67_vm0, %v1511_v49 }
0x1085   :  { %v6768_v10 = vpop.permute.xlu1 %1507 }
0x1086   :  { %v6770_v62 = vpop.permute.xlu0 %1499 }
0x1087   :  { %v1512_v40 = vsel %vm535_vm1, %v6770_v62, %v6768_v10 }
0x1088   :  { %5118 = vmatmul.mubr.msk.f32.vlgmr.msra.gmra.mrb[14].mxu0 %vm67_vm0, %v1512_v40 }
0x1089   :  { %5163 = vmatprep.mubr.msk.f32.mxu0 %vm6192_vm2, %v6186_v28 }
0x115b   :  { %v5119_v51 = vpop.f32.mrb[14].mxu0 }
0x115c   :  { %v1591_v7 = vadd.f32 %v6718_v58, %v5119_v51  ;;  %v1585_v6 = vpop.f32.mrb[15].mxu0 }
0x115d   :  { %v1586_v53 = vadd.f32 %v6718_v58, %v1585_v6 }
0x115e   :  { %1612 = vrot.lane.b32.xlu1 %v1591_v7, %s6187_s26  ;;  %v1595_v17 = vadd.f32 %v1591_v7, %v6406_v57  ;;  %v1647_v46 = vadd.f32 %v1591_v7, %v6386_v34 }
0x115f   :  { %1610 = vrot.lane.b32.xlu0 %v1586_v53, %s6187_s26  ;;  %v1594_v55 = vadd.f32 %v1586_v53, %v6404_v56  ;;  %v1646_v12 = vadd.f32 %v1586_v53, %v6384_v32 }
0x1160   :  { %v1597_v20 = vsub.f32 0.0, %v1595_v17  ;;  %v1649_v48 = vsub.f32 0.0, %v1647_v46 }
0x1161   :  { %v1596_v42 = vsub.f32 0.0, %v1594_v55  ;;  %v1648_v9 = vsub.f32 0.0, %v1646_v12 }
0x1162   :  { %v1600_v30 = vmul.f32 1.442695, %v1597_v20  ;;  %v1652_v52 = vmul.f32 1.442695, %v1649_v48 }
0x1163   :  { %v1598_v43 = vmul.f32 1.442695, %v1596_v42  ;;  %v1650_v21 = vmul.f32 1.442695, %v1648_v9 }
0x1165   :  { %5977 = vpow2.f32 %v1598_v43 }
0x1166   :  { %5979 = vpow2.f32 %v1650_v21 }
0x1167   :  { %5981 = vpow2.f32 %v1600_v30 }
0x1168   :  { %5983 = vpow2.f32 %v1652_v52 }
0x116f   :  { %v5978_v37 = vpop.eup %5977 }
0x1170   :  { %v5980_v41 = vpop.eup %5979  ;;  %v1602_v16 = vadd.f32 1.0, %v5978_v37 }
0x1171   :  { %v5982_v38 = vpop.eup %5981  ;;  %v1654_v50 = vadd.f32 1.0, %v5980_v41 }
0x1172   :  { %v5984_v45 = vpop.eup %5983  ;;  %v1603_v54 = vadd.f32 1.0, %v5982_v38  ;;  %5985 = vrcp.f32 %v1602_v16 }
0x1173   :  { %v1655_v29 = vadd.f32 1.0, %v5984_v45  ;;  %5987 = vrcp.f32 %v1654_v50 }
0x1174   :  { %5989 = vrcp.f32 %v1603_v54 }
0x1175   :  { %5991 = vrcp.f32 %v1655_v29 }
0x117c   :  { %v5986_v49 = vpop.eup %5985 }
0x117d   :  { %v5988_v40 = vpop.eup %5987  ;;  %v1630_v50 = vsub.f32 1.0, %v5986_v49  ;;  %v1642_v54 = vmul.f32 %v5986_v49, %v6744_v39 }
0x117e   :  { %v5990_v55 = vpop.eup %5989 }
0x117f   :  { %v5992_v12 = vpop.eup %5991 }
0x11d0   :  { %v1613_v53 = vpop.permute.xlu1 %1612 }
0x11d1   :  { %v1611_v51 = vpop.permute.xlu0 %1610  ;;  %v1617_v17 = vmul.f32 %v5990_v55, %v1613_v53  ;;  %v1661_v42 = vmul.f32 %v5992_v12, %v1613_v53 }
0x11d2   :  { %v1616_v7 = vmul.f32 %v5986_v49, %v1611_v51  ;;  %v1660_v6 = vmul.f32 %v5988_v40, %v1611_v51 }
0x11d4   :  { %1664 = vrot.lane.b32.xlu1 %v1660_v6, %s6188_s27  ;;  %1620 = vrot.lane.b32.xlu0 %v1616_v7, %s6188_s27  ;;  %v1675_v7 = vsub.f32 1.0, %v5992_v12 }
0x11d8   :  { %1666 = vrot.lane.b32.xlu1 %v1661_v42, %s6188_s27  ;;  %1622 = vrot.lane.b32.xlu0 %v1617_v17, %s6188_s27  ;;  %v1631_v17 = vsub.f32 1.0, %v5990_v55  ;;  %v1687_v42 = vmul.f32 %v5992_v12, %v6752_v59 }
0x1246   :  { %v1665_v46 = vpop.permute.xlu1 %1664  ;;  %v1621_v9 = vpop.permute.xlu0 %1620 }
0x1247   :  { %v1670_v20 = vadd.f32 %v1665_v46, %v6384_v32  ;;  %v1626_v43 = vadd.f32 %v1621_v9, %v6404_v56  ;;  %v1674_v56 = vsub.f32 1.0, %v5988_v40 }
0x1249   :  { %5993 = vtanh.f32 %v1670_v20 }
0x124a   :  { %5995 = vtanh.f32 %v1626_v43  ;;  %v1667_v48 = vpop.permute.xlu1 %1666  ;;  %v1623_v21 = vpop.permute.xlu0 %1622 }
0x124b   :  { %v1671_v30 = vadd.f32 %v1667_v48, %v6386_v34  ;;  %v1627_v52 = vadd.f32 %v1623_v21, %v6406_v57  ;;  %v1686_v34 = vmul.f32 %v5988_v40, %v6742_v31  ;;  %v1643_v31 = vmul.f32 %v5990_v55, %v6754_v61 }
0x124d   :  { %5997 = vtanh.f32 %v1671_v30 }
0x124e   :  { %5999 = vtanh.f32 %v1627_v52 }
0x1253   :  { %v5994_v37 = vpop.eup %5993 }
0x1254   :  { %v5996_v41 = vpop.eup %5995  ;;  %1678 = vrot.lane.b32.xlu1 %v5994_v37, %s6189_s28 }
0x1255   :  { %1634 = vrot.lane.b32.xlu0 %v5996_v41, %s6189_s28 }
0x1257   :  { %v5998_v16 = vpop.eup %5997 }
0x1258   :  { %v6000_v32 = vpop.eup %5999  ;;  %1680 = vrot.lane.b32.xlu1 %v5998_v16, %s6189_s28 }
0x1259   :  { %1636 = vrot.lane.b32.xlu0 %v6000_v32, %s6189_s28 }
0x12c6   :  { %v1679_v38 = vpop.permute.xlu1 %1678 }
0x12c7   :  { %v1684_v57 = vmul.f32 %v1679_v38, %v1674_v56  ;;  %v1635_v45 = vpop.permute.xlu0 %1634 }
0x12c8   :  { %v1640_v29 = vmul.f32 %v1635_v45, %v1630_v50 }
0x12c9   :  { %v6798_v51 = vadd.f32 %v1686_v34, %v1684_v57 }
0x12ca   :  { %v6800_v6 = vadd.f32 %v1642_v54, %v1640_v29  ;;  %v1681_v53 = vpop.permute.xlu1 %1680 }
0x12cb   :  { %v1685_v46 = vmul.f32 %v1681_v53, %v1675_v7  ;;  %v1637_v9 = vpop.permute.xlu0 %1636  ;;  %1700 = vrot.lane.b32.xlu1 %v6798_v51, %s6190_s2 }
0x12cc   :  { %v1641_v40 = vmul.f32 %v1637_v9, %v1631_v17  ;;  %1692 = vrot.lane.b32.xlu0 %v6800_v6, %s6189_s28 }
0x12cd   :  { %v6808_v39 = vadd.f32 %v1687_v42, %v1685_v46 }
0x12ce   :  { %v6810_v49 = vadd.f32 %v1643_v31, %v1641_v40 }
0x12cf   :  { %1702 = vrot.lane.b32.xlu1 %v6808_v39, %s6190_s2 }
0x12d0   :  { %1694 = vrot.lane.b32.xlu0 %v6810_v49, %s6189_s28 }
0x133d   :  { %v6816_v59 = vpop.permute.xlu1 %1700 }
0x133e   :  { %v6818_v12 = vpop.permute.xlu0 %1692 }
0x133f   :  { %v1706_v61 = vsel %vm535_vm1, %v6818_v12, %v6816_v59 }
0x1340   :  { %5128 = vmatprep.mubr.msk.f32.mxu1 %vm67_vm0, %v1706_v61 }
0x1341   :  { %v6824_v55 = vpop.permute.xlu1 %1702 }
0x1342   :  { %v6826_v20 = vpop.permute.xlu0 %1694 }
0x1343   :  { %v1707_v43 = vsel %vm535_vm1, %v6826_v20, %v6824_v55 }
0x1344   :  { %5129 = vmatmul.mubr.msk.f32.vlgmr.msra.gmra.mrb[14].mxu1 %vm67_vm0, %v1707_v43 }
0x1345   :  { %5198 = vmatprep.mubr.msk.f32.mxu1 %vm6192_vm2, %v6186_v28 }
0x1417   :  { %v5130_v48 = vpop.f32.mrb[14].mxu1 }
0x1418   :  { %v1786_v21 = vadd.f32 %v6718_v58, %v5130_v48  ;;  %v1780_v30 = vpop.f32.mrb[15].mxu1 }
0x1419   :  { %v1781_v52 = vadd.f32 %v6718_v58, %v1780_v30 }
0x141a   :  { %1807 = vrot.lane.b32.xlu1 %v1786_v21, %s6187_s26  ;;  %v1842_v37 = vadd.f32 %v1786_v21, %v6419_v0  ;;  %v1790_v16 = vadd.f32 %v1786_v21, %v6425_v4 }
0x141b   :  { %1805 = vrot.lane.b32.xlu0 %v1781_v52, %s6187_s26  ;;  %v1841_v41 = vadd.f32 %v1781_v52, %v6417_v63  ;;  %v1789_v56 = vadd.f32 %v1781_v52, %v6422_v2 }
0x141c   :  { %v1844_v32 = vsub.f32 0.0, %v1842_v37  ;;  %v1792_v50 = vsub.f32 0.0, %v1790_v16 }
0x141d   :  { %v1843_v38 = vsub.f32 0.0, %v1841_v41  ;;  %v1791_v57 = vsub.f32 0.0, %v1789_v56 }
0x141e   :  { %v1847_v34 = vmul.f32 1.442695, %v1844_v32  ;;  %v1795_v54 = vmul.f32 1.442695, %v1792_v50 }
0x141f   :  { %v1845_v45 = vmul.f32 1.442695, %v1843_v38  ;;  %v1793_v58 = vmul.f32 1.442695, %v1791_v57 }
0x1420   :  { %6001 = vpow2.f32 %v1847_v34 }
0x1421   :  { %6003 = vpow2.f32 %v1845_v45 }
0x1422   :  { %6005 = vpow2.f32 %v1795_v54 }
0x1423   :  { %6007 = vpow2.f32 %v1793_v58 }
0x142a   :  { %v6002_v29 = vpop.eup %6001 }
0x142b   :  { %v6004_v7 = vpop.eup %6003  ;;  %v1850_v53 = vadd.f32 1.0, %v6002_v29 }
0x142c   :  { %v6006_v17 = vpop.eup %6005  ;;  %v1849_v42 = vadd.f32 1.0, %v6004_v7 }
0x142d   :  { %v6008_v46 = vpop.eup %6007  ;;  %v1798_v9 = vadd.f32 1.0, %v6006_v17  ;;  %6009 = vrcp.f32 %v1850_v53 }
0x142e   :  { %v1797_v31 = vadd.f32 1.0, %v6008_v46  ;;  %6011 = vrcp.f32 %v1849_v42  ;;  %v6191_v46 = vmov 0.0|0.0  }
0x142f   :  { %6013 = vrcp.f32 %v1798_v9  ;;  %5595 = vmatprep.subr.bf16.mxu0 %v6191_v46  ;;  %5619 = vmatprep.subr.bf16.mxu1 %v6191_v46 }
0x1430   :  { %6015 = vrcp.f32 %v1797_v31 }
0x1437   :  { %v6010_v40 = vpop.eup %6009 }
0x1438   :  { %v6012_v43 = vpop.eup %6011  ;;  %v1882_v17 = vmul.f32 %v6010_v40, %v6808_v39 }
0x1439   :  { %v6014_v52 = vpop.eup %6013  ;;  %v1881_v9 = vmul.f32 %v6012_v43, %v6798_v51 }
0x143a   :  { %v6016_v37 = vpop.eup %6015 }
0x148c   :  { %v1808_v61 = vpop.permute.xlu1 %1807 }
0x148d   :  { %v1856_v48 = vmul.f32 %v6010_v40, %v1808_v61  ;;  %v1806_v21 = vpop.permute.xlu0 %1805  ;;  %v1812_v41 = vmul.f32 %v6014_v52, %v1808_v61 }
0x148e   :  { %v1855_v30 = vmul.f32 %v6012_v43, %v1806_v21  ;;  %v1811_v16 = vmul.f32 %v6016_v37, %v1806_v21 }
0x148f   :  { %1861 = vrot.lane.b32.xlu1 %v1856_v48, %s6188_s27  ;;  %v1826_v48 = vsub.f32 1.0, %v6014_v52 }
0x1490   :  { %1859 = vrot.lane.b32.xlu0 %v1855_v30, %s6188_s27 }
0x1493   :  { %1817 = vrot.lane.b32.xlu1 %v1812_v41, %s6188_s27  ;;  %v1825_v41 = vsub.f32 1.0, %v6016_v37 }
0x1494   :  { %1815 = vrot.lane.b32.xlu0 %v1811_v16, %s6188_s27  ;;  %v1838_v16 = vmul.f32 %v6014_v52, %v6810_v49 }
0x1501   :  { %v1862_v32 = vpop.permute.xlu1 %1861 }
0x1502   :  { %v1866_v56 = vadd.f32 %v1862_v32, %v6419_v0  ;;  %v1860_v38 = vpop.permute.xlu0 %1859 }
0x1503   :  { %v1865_v50 = vadd.f32 %v1860_v38, %v6417_v63  ;;  %v1870_v63 = vsub.f32 1.0, %v6010_v40  ;;  %v1837_v40 = vmul.f32 %v6016_v37, %v6800_v6 }
0x1504   :  { %6017 = vtanh.f32 %v1866_v56 }
0x1505   :  { %6019 = vtanh.f32 %v1865_v50  ;;  %v1818_v34 = vpop.permute.xlu1 %1817 }
0x1506   :  { %v1822_v57 = vadd.f32 %v1818_v34, %v6425_v4  ;;  %v1816_v45 = vpop.permute.xlu0 %1815  ;;  %v1869_v4 = vsub.f32 1.0, %v6012_v43 }
0x1507   :  { %v1821_v54 = vadd.f32 %v1816_v45, %v6422_v2  ;;  %v1896_v45 = vsel %vm535_vm1, %v6527_v18, %v6824_v55  ;;  %v1897_v18 = vsel %vm535_vm1, %v6579_v19, %v6760_v36  ;;  %v1902_v36 = vsel %vm535_vm1, %v6706_v8, %v6645_v33 }
0x1508   :  { %6021 = vtanh.f32 %v1822_v57 }
0x1509   :  { %6023 = vtanh.f32 %v1821_v54  ;;  %v1895_v54 = vsel %vm535_vm1, %v6519_v13, %v6816_v59  ;;  %v1900_v59 = vsel %vm535_vm1, %v6647_v47, %v6704_v60  ;;  %v1937_v47 = vlaneseq }
0x150a   :  { %v1901_v60 = vsel %vm535_vm1, %v6698_v3, %v6637_v1  ;;  %v1903_v1 = vsel %vm535_vm1, %v6762_v44, %v6577_v5  ;;  %v1905_v5 = vsel %vm535_vm1, %v6818_v12, %v6517_v22 }
0x150b   :  { %v6923_v8 = vshrl.u32 %v1937_v47, 7 }
0x150d   :  { %v6938_v55 = vmul.u32 16, %v6923_v8  ;;  %vm2967_vm11 = vcmp.lt.s32.totalorder %v6923_v8, 2 }
0x150e   :  { %v6018_v58 = vpop.eup %6017 }
0x150f   :  { %v6020_v29 = vpop.eup %6019  ;;  %1875 = vrot.lane.b32.xlu1 %v6018_v58, %s6189_s28  ;;  %v6953_v58 = vand.u32 127, %v1937_v47  ;;  %v2015_v22 = vadd.s32 8, %v6938_v55  ;;  %v1927_v47 = vld [vmem:[%s7563_s9 + $0x38] sm:$0xff] }
0x1510   :  { %1873 = vrot.lane.b32.xlu0 %v6020_v29, %s6189_s28  ;;  %v6981_v29 = vld [vmem:[%s7560_s6] ss:$0 sm:$0xff] }
0x1511   :  { %vm1942_vm3 = vcmp.eq.s32.totalorder %v6953_v58, %v6938_v55  ;;  %vm2016_vm4 = vcmp.eq.s32.totalorder %v6953_v58, %v2015_v22  ;;  %v1932_v22 = vld [vmem:[%s7563_s9 + $0x60] sm:$0xff] }
0x1512   :  { %v6022_v0 = vpop.eup %6021 }
0x1513   :  { %v6024_v7 = vpop.eup %6023  ;;  %1831 = vrot.lane.b32.xlu1 %v6022_v0, %s6189_s28 }
0x1514   :  { %1829 = vrot.lane.b32.xlu0 %v6024_v7, %s6189_s28 }
0x1581   :  { %v1876_v53 = vpop.permute.xlu1 %1875 }
0x1582   :  { %v1880_v2 = vmul.f32 %v1876_v53, %v1870_v63  ;;  %v1874_v42 = vpop.permute.xlu0 %1873 }
0x1583   :  { %v1879_v31 = vmul.f32 %v1874_v42, %v1869_v4 }
0x1584   :  { %v1884_v61 = vadd.f32 %v1882_v17, %v1880_v2  ;;  %v6992_v17 = vld [vmem:[%s7561_s7] sm:$0x1] }
0x1585   :  { %v1883_v21 = vadd.f32 %v1881_v9, %v1879_v31  ;;  %v1832_v30 = vpop.permute.xlu1 %1831  ;;  %v2257_v9 = vsub.s32 0, %v6923_v8 }
0x1586   :  { %v1836_v32 = vmul.f32 %v1832_v30, %v1826_v48  ;;  %v1830_v56 = vpop.permute.xlu0 %1829 }
0x1587   :  { %v5823_v39 = vpack.i.bf16 %v1884_v61, %v1883_v21  ;;  %v1835_v38 = vmul.f32 %v1830_v56, %v1825_v41 }
0x1588   :  { %v1840_v50 = vadd.f32 %v1838_v16, %v1836_v32 }
0x1589   :  { %v1839_v34 = vadd.f32 %v1837_v40, %v1835_v38  ;;  %5824 = vrot.lane.b32.xlu0 %v5823_v39, %s6190_s2 }
0x158b   :  { %v5828_v57 = vpack.i.bf16 %v1840_v50, %v1839_v34 }
0x158d   :  { %5829 = vrot.lane.b32.xlu1 %v5828_v57, %s6189_s28 }
0x15fb   :  { %v5825_v51 = vpop.permute.xlu0 %5824 }
0x15fc   :  { %v5827_v49 = vunpack.i.h.bf16 %v5825_v51  ;;  %v5826_v43 = vunpack.i.l.bf16 %v5825_v51 }
0x15fe   :  { %v1894_v6 = vsel %vm535_vm1, %v6465_v26, %v5827_v49  ;;  %v1893_v52 = vsel %vm535_vm1, %v6457_v23, %v5826_v43  ;;  %v6880_v26 = vpack.c.bf16 %v1896_v45, %v1895_v54  ;;  %v1898_v23 = vsel %vm535_vm1, %v6587_v25, %v6768_v10  ;;  %v1920_v43 = vld [vmem:[%s7563_s9] sm:$0xff]  ;;  %v1923_v54 = vld [vmem:[%s7563_s9 + $0x18] sm:$0xff] }
0x15ff   :  { %v6868_v37 = vpack.c.bf16 %v1894_v6, %v1893_v52  ;;  %v6892_v13 = vpack.c.bf16 %v1898_v23, %v1897_v18  ;;  %v1899_v25 = vsel %vm535_vm1, %v6639_v35, %v6696_v11  ;;  %v6916_v35 = vpack.c.bf16 %v1902_v36, %v1901_v60  ;;  %v5830_v33 = vpop.permute.xlu1 %5829  ;;  %v1921_v6 = vld [vmem:[%s7563_s9 + $0x8] sm:$0xff]  ;;  %v1922_v52 = vld [vmem:[%s7563_s9 + $0x10] sm:$0xff]  ;;  %v1924_v18 = vld [vmem:[%s7563_s9 + $0x20] sm:$0xff] }
0x1600   :  { %v6904_v19 = vpack.c.bf16 %v1900_v59, %v1899_v25  ;;  %v1904_v11 = vsel %vm535_vm1, %v6770_v62, %v6585_v15  ;;  %v1906_v15 = vsel %vm535_vm1, %v6826_v20, %v6525_v14  ;;  %v5832_v10 = vunpack.i.h.bf16 %v5830_v33  ;;  %v1925_v59 = vld [vmem:[%s7563_s9 + $0x28] sm:$0xff]  ;;  %v1926_v36 = vld [vmem:[%s7563_s9 + $0x30] sm:$0xff] }
0x1601   :  { %5597 = vmatpush3.bf16.msra.mxu0 %v6868_v37  ;;  %5621 = vmatpush3.bf16.msra.mxu1 %v6868_v37  ;;  %v6930_v3 = vpack.c.bf16 %v1904_v11, %v1903_v1  ;;  %v5831_v62 = vunpack.i.l.bf16 %v5830_v33  ;;  %v6945_v44 = vpack.c.bf16 %v1906_v15, %v1905_v5  ;;  %v7043_v45 = vpack.c.bf16 %v1921_v6, %v1920_v43  ;;  %v1928_v33 = vld [vmem:[%s7563_s9 + $0x40] sm:$0xff]  ;;  %v1929_v1 = vld [vmem:[%s7563_s9 + $0x48] sm:$0xff]  ;;  %v1931_v5 = vld [vmem:[%s7563_s9 + $0x58] sm:$0xff] }
0x1602   :  { %5598 = vmatprep.subr.bf16.mxu0 %v6191_v46  ;;  %5622 = vmatprep.subr.bf16.mxu1 %v6191_v46  ;;  %v1916_v14 = vsel %vm535_vm1, %v5832_v10, %v6467_v27  ;;  %v6976_v27 = vld [vmem:[%s7562_s8] ss:$0 sm:$0xff]  ;;  %v7049_v23 = vpack.c.bf16 %v1923_v54, %v1922_v52  ;;  %v7059_v25 = vpack.c.bf16 %v1925_v59, %v1924_v18 }
0x1603   :  { %v1915_v20 = vsel %vm535_vm1, %v5831_v62, %v6459_v24  ;;  %v6193_v24 = vmov 1.0   ;;  %v7070_v11 = vpack.c.bf16 %v1927_v47, %v1926_v36  ;;  %v7081_v10 = vpack.c.bf16 %v1929_v1, %v1928_v33  ;;  %v1930_v62 = vld [vmem:[%s7563_s9 + $0x50] sm:$0xff] }
0x1604   :  { %v6958_v12 = vpack.c.bf16 %v1916_v14, %v1915_v20  ;;  %v7091_v20 = vpack.c.bf16 %v1931_v5, %v1930_v62 }
0x1605   :  { %5600 = vmatpush3.bf16.msra.mxu0 %v6880_v26  ;;  %5624 = vmatpush3.bf16.msra.mxu1 %v6880_v26 }
0x1606   :  { %5601 = vmatprep.subr.bf16.mxu0 %v6191_v46  ;;  %5625 = vmatprep.subr.bf16.mxu1 %v6191_v46 }
0x1609   :  { %5603 = vmatpush3.bf16.msra.mxu0 %v6892_v13  ;;  %5627 = vmatpush3.bf16.msra.mxu1 %v6892_v13 }
0x160a   :  { %5604 = vmatprep.subr.bf16.mxu0 %v6191_v46  ;;  %5628 = vmatprep.subr.bf16.mxu1 %v6191_v46 }
0x160d   :  { %5606 = vmatpush3.bf16.msra.mxu0 %v6904_v19  ;;  %5630 = vmatpush3.bf16.msra.mxu1 %v6904_v19 }
0x160e   :  { %5607 = vmatprep.subr.bf16.mxu0 %v6191_v46  ;;  %5631 = vmatprep.subr.bf16.mxu1 %v6191_v46 }
0x1611   :  { %5609 = vmatpush3.bf16.msra.mxu0 %v6916_v35  ;;  %5633 = vmatpush3.bf16.msra.mxu1 %v6916_v35 }
0x1612   :  { %5610 = vmatprep.subr.bf16.mxu0 %v6191_v46  ;;  %5634 = vmatprep.subr.bf16.mxu1 %v6191_v46 }
0x1615   :  { %5612 = vmatpush3.bf16.msra.mxu0 %v6930_v3  ;;  %5636 = vmatpush3.bf16.msra.mxu1 %v6930_v3 }
0x1616   :  { %5613 = vmatprep.subr.bf16.mxu0 %v6191_v46  ;;  %5637 = vmatprep.subr.bf16.mxu1 %v6191_v46 }
0x1619   :  { %5615 = vmatpush3.bf16.msra.mxu0 %v6945_v44  ;;  %5639 = vmatpush3.bf16.msra.mxu1 %v6945_v44 }
0x161a   :  { %5616 = vmatprep.subr.bf16.mxu0 %v6191_v46  ;;  %5640 = vmatprep.subr.bf16.mxu1 %v6191_v46 }
0x161d   :  { %5618 = vmatpush3.bf16.msra.mxu0 %v6958_v12  ;;  %5642 = vmatpush3.bf16.msra.mxu1 %v6958_v12 }
0x161e   :  { %5201 = vmatprep.subr.mxu0 %v6186_v28  ;;  %5206 = vmatprep.subr.mxu1 %v6186_v28 }
0x1620   :  { %5164 = vmatmul.mubr.msk.f32.vlgmr.msra.gmra.mrb[16].mxu0 %vm1942_vm3, %v6193_v24  ;;  %5199 = vmatmul.mubr.msk.f32.vlgmr.msra.gmra.mrb[16].mxu1 %vm2016_vm4, %v6193_v24 }
0x1621   :  { %5203 = vmatprep.mubr.msk.f32.mxu0 %vm6192_vm2, %v6186_v28  ;;  %5208 = vmatprep.mubr.msk.f32.mxu1 %vm6192_vm2, %v6186_v28 }
0x16f3   :  { %v6983_v0 = vpop.f32.mrb[16].mxu0  ;;  %v2085_v7 = vpop.f32.mrb[16].mxu1 }
0x16f4   :  { %v2181_v63 = vmul.f32 %v6976_v27, %v6983_v0  ;;  %v5165_v53 = vpop.f32.mrb[17].mxu0  ;;  %v5200_v4 = vpop.f32.mrb[17].mxu1  ;;  %5202 = vmatpush3.xpose.msk.msra.mxu0 %vm67_vm0, %v2085_v7  ;;  %5207 = vmatpush3.xpose.msk.msra.mxu1 %vm67_vm0, %v2085_v7  ;;  %v2095_v2 = vmul.f32 %v6981_v29, %v6983_v0 }
0x16f5   :  { %5211 = vmatprep.subr.mxu0 %v6186_v28  ;;  %5643 = vmatprep.subr.bf16.mxu1 %v6191_v46 }
0x16f6   :  { %v2096_v42 = vsel %vm67_vm0, %v2095_v2, 0.0 }
0x16f7   :  { %5204 = vmatmul.mubr.msk.f32.vlgmr.msra.gmra.mrb[18].mxu0 %vm67_vm0, %v6992_v17  ;;  %5209 = vmatmul.mubr.msk.f32.vlgmr.msra.gmra.mrb[18].mxu1 %vm67_vm0, %v2181_v63 }
0x16f8   :  { %5212 = vmatpush3.msra.mxu0 %v2085_v7  ;;  %2097 = vadd.xlane.f32.xlu0 %v2096_v42  ;;  %v1933_v7 = vld [vmem:[%s7563_s9 + $0x68] sm:$0xff] }
0x16f9   :  { %5213 = vmatprep.mubr.msk.f32.mxu0 %vm6192_vm2, %v6186_v28  ;;  %5667 = vmatprep.subr.bf16.mxu0 %v6191_v46  ;;  %v7101_v53 = vpack.c.bf16 %v1933_v7, %v1932_v22 }
0x16fa   :  { %5248 = vmatprep.mubr.msk.f32.mxu1 %vm6192_vm2, %v6186_v28  ;;  %5645 = vmatpush3.bf16.msra.mxu1 %v7043_v45 }
0x16fb   :  { %5646 = vmatprep.subr.bf16.mxu1 %v6191_v46 }
0x16fe   :  { %5648 = vmatpush3.bf16.msra.mxu1 %v7049_v23 }
0x16ff   :  { %5649 = vmatprep.subr.bf16.mxu1 %v6191_v46 }
0x1702   :  { %5651 = vmatpush3.bf16.msra.mxu1 %v7059_v25 }
0x1703   :  { %5652 = vmatprep.subr.bf16.mxu1 %v6191_v46 }
0x1706   :  { %5654 = vmatpush3.bf16.msra.mxu1 %v7070_v11 }
0x1707   :  { %5655 = vmatprep.subr.bf16.mxu1 %v6191_v46 }
0x170a   :  { %5657 = vmatpush3.bf16.msra.mxu1 %v7081_v10 }
0x170b   :  { %5658 = vmatprep.subr.bf16.mxu1 %v6191_v46 }
0x170e   :  { %5660 = vmatpush3.bf16.msra.mxu1 %v7091_v20 }
0x170f   :  { %5661 = vmatprep.subr.bf16.mxu1 %v6191_v46 }
0x1712   :  { %5663 = vmatpush3.bf16.msra.mxu1 %v7101_v53 }
0x1713   :  { %5664 = vmatprep.subr.bf16.mxu1 %v6191_v46 }
0x1785   :  { %v2098_v31 = vpop.xlane.xlu0 %2097 }
0x17ca   :  { %v2171_v61 = vpop.f32.mrb[18].mxu0  ;;  %v2251_v48 = vpop.f32.mrb[18].mxu1 }
0x17cb   :  { %v2258_v21 = vrot.slane %v2171_v61, %v2257_v9  ;;  %v2252_v30 = vadd.f32 %v2251_v48, %v2098_v31  ;;  %v5205_v41 = vpop.f32.mrb[19].mxu0  ;;  %v5210_v16 = vpop.f32.mrb[19].mxu1 }
0x17cd   :  { %v2259_v32 = vadd.f32 %v2258_v21, %v2252_v30 }
0x17cf   :  { %v2261_v56 = vsel %vm2260_vm5, %v2259_v32, -inf }
0x17d0   :  { %2262 = vmax.xlane.f32.xlu1 %v2261_v56 }
0x185d   :  { %v7011_v39 = vpop.xlane.xlu1 %2262 }
0x185e   :  { %v2264_v40 = vsub.f32 %v2259_v32, %v7011_v39  ;;  %v2345_v60 = vrot.slane %v7011_v39, 4 }
0x1860   :  { %v2265_v38 = vmul.f32 1.442695, %v2264_v40  ;;  %v2346_v15 = vmax.f32 %v7011_v39, %v2345_v60  ;;  %v2465_v60 = vadd.s32 1, %v6938_v55 }
0x1862   :  { %6025 = vpow2.f32 %v2265_v38  ;;  %v2347_v14 = vrot.slane %v2346_v15, 2  ;;  %vm2466_vm6 = vcmp.eq.s32.totalorder %v6953_v58, %v2465_v60 }
0x1864   :  { %v2348_v63 = vmax.f32 %v2346_v15, %v2347_v14 }
0x1866   :  { %v2349_v4 = vrot.slane %v2348_v63, 1 }
0x1868   :  { %v2350_v2 = vmax.f32 %v2348_v63, %v2349_v4 }
0x186a   :  { %v2351_v42 = vsub.f32 %v7011_v39, %v2350_v2  ;;  %v1934_v39 = vld [vmem:[%s7563_s9 + $0x70] sm:$0xff] }
0x186c   :  { %v6026_v50 = vpop.eup %6025  ;;  %v2352_v31 = vmul.f32 1.442695, %v2351_v42 }
0x186d   :  { %v2267_v34 = vsel %vm2260_vm5, %v6026_v50, 0.0 }
0x186e   :  { %2268 = vadd.xlane.f32.xlu0 %v2267_v34 }
0x18fb   :  { %v2269_v57 = vpop.xlane.xlu0 %2268 }
0x18fc   :  { %6027 = vrcp.f32 %v2269_v57 }
0x18fd   :  { %6029 = vpow2.f32 %v2352_v31 }
0x1906   :  { %v6028_v51 = vpop.eup %6027 }
0x1907   :  { %v2271_v49 = vmul.f32 %v6028_v51, %v6026_v50  ;;  %v6030_v61 = vpop.eup %6029 }
0x1908   :  { %v2354_v48 = vrot.slane %v6030_v61, 4 }
0x1909   :  { %5214 = vmatmul.mubr.msk.f32.vlgmr.msra.gmra.mrb[20].mxu0 %vm2260_vm5, %v2271_v49  ;;  %v1935_v49 = vld [vmem:[%s7563_s9 + $0x78] sm:$0xff] }
0x190a   :  { %5669 = vmatpush3.bf16.msra.mxu0 %v6868_v37  ;;  %5283 = vmatprep.mubr.msk.f32.mxu0 %vm6192_vm2, %v6186_v28  ;;  %v2355_v21 = vadd.f32 %v6030_v61, %v2354_v48  ;;  %v7115_v43 = vpack.c.bf16 %v1935_v49, %v1934_v39 }
0x190b   :  { %5670 = vmatprep.subr.bf16.mxu0 %v6191_v46 }
0x190c   :  { %v2356_v30 = vrot.slane %v2355_v21, 2  ;;  %5666 = vmatpush3.bf16.msra.mxu1 %v7115_v43 }
0x190d   :  { %5691 = vmatprep.subr.bf16.mxu1 %v6191_v46 }
0x190e   :  { %5672 = vmatpush3.bf16.msra.mxu0 %v6880_v26  ;;  %v2357_v41 = vadd.f32 %v2356_v30, %v2355_v21 }
0x190f   :  { %5673 = vmatprep.subr.bf16.mxu0 %v6191_v46 }
0x1910   :  { %v2358_v16 = vrot.slane %v2357_v41, 1 }
0x1912   :  { %5675 = vmatpush3.bf16.msra.mxu0 %v6892_v13  ;;  %v2359_v32 = vadd.f32 %v2358_v16, %v2357_v41 }
0x1913   :  { %5676 = vmatprep.subr.bf16.mxu0 %v6191_v46 }
0x1914   :  { %6031 = vrcp.f32 %v2359_v32 }
0x1916   :  { %5678 = vmatpush3.bf16.msra.mxu0 %v6904_v19 }
0x1917   :  { %5679 = vmatprep.subr.bf16.mxu0 %v6191_v46 }
0x191a   :  { %5681 = vmatpush3.bf16.msra.mxu0 %v6916_v35 }
0x191b   :  { %5682 = vmatprep.subr.bf16.mxu0 %v6191_v46 }
0x191e   :  { %5684 = vmatpush3.bf16.msra.mxu0 %v6930_v3  ;;  %v6032_v56 = vpop.eup %6031 }
0x191f   :  { %5685 = vmatprep.subr.bf16.mxu0 %v6191_v46  ;;  %v2361_v40 = vmul.f32 %v6032_v56, %v6030_v61 }
0x1921   :  { %v2362_v38 = vmul.f32 %v2361_v40, %v6983_v0 }
0x1922   :  { %5687 = vmatpush3.bf16.msra.mxu0 %v6945_v44 }
0x1923   :  { %5688 = vmatprep.subr.bf16.mxu0 %v6191_v46  ;;  %v2363_v50 = vsel %vm67_vm0, %v2362_v38, 0.0 }
0x1924   :  { %v2364_v34 = vrot.slane %v2363_v50, 4 }
0x1926   :  { %5690 = vmatpush3.bf16.msra.mxu0 %v6958_v12  ;;  %v2365_v57 = vadd.f32 %v2364_v34, %v2363_v50 }
0x1927   :  { %5321 = vmatprep.subr.mxu0 %v6186_v28 }
0x1928   :  { %v2366_v51 = vrot.slane %v2365_v57, 2 }
0x1929   :  { %5284 = vmatmul.mubr.msk.f32.vlgmr.msra.gmra.mrb[22].mxu0 %vm2466_vm6, %v6193_v24 }
0x192a   :  { %v2367_v6 = vadd.f32 %v2366_v51, %v2365_v57  ;;  %5323 = vmatprep.mubr.msk.f32.mxu0 %vm6192_vm2, %v6186_v28 }
0x192c   :  { %v2368_v52 = vrot.slane %v2367_v6, 1 }
0x192e   :  { %v2369_v36 = vadd.f32 %v2368_v52, %v2367_v6 }
0x1930   :  { %v2371_v47 = vmul.f32 %v2369_v36, %v6983_v0 }
0x19dc   :  { %v2341_v54 = vpop.f32.mrb[20].mxu0 }
0x19dd   :  { %v2370_v18 = vmul.f32 %v2341_v54, %v6983_v0  ;;  %2373 = vrot.lane.b32.xlu0 %v2341_v54, %s6188_s27  ;;  %v5215_v59 = vpop.f32.mrb[21].mxu0 }
0x19df   :  { %2377 = vrot.lane.b32.xlu1 %v2370_v18, %s6194_s4 }
0x19e3   :  { %2381 = vrot.lane.b32.xlu1 %v2371_v47, %s6187_s26 }
0x1a4f   :  { %v2374_v33 = vpop.permute.xlu0 %2373 }
0x1a50   :  { %v2384_v15 = vsel %vm67_vm0, %v6983_v0, %v2374_v33 }
0x1a51   :  { %v2378_v1 = vpop.permute.xlu1 %2377 }
0x1a52   :  { %v2386_v62 = vsel %vm2385_vm7, %v2384_v15, %v2378_v1 }
0x1a55   :  { %v2382_v5 = vpop.permute.xlu1 %2381 }
0x1a56   :  { %v2388_v14 = vsel %vm2387_vm8, %v2386_v62, %v2382_v5 }
0x1a57   :  { %5249 = vmatmul.mubr.f32.vlgmr.msra.gmra.mrb[20].mxu1 %v2388_v14 }
0x1a58   :  { %5693 = vmatpush3.bf16.msra.mxu1 %v6868_v37  ;;  %5318 = vmatprep.mubr.msk.f32.mxu1 %vm6192_vm2, %v6186_v28  ;;  %v2539_v37 = vadd.s32 9, %v6938_v55 }
0x1a59   :  { %5694 = vmatprep.subr.bf16.mxu1 %v6191_v46 }
0x1a5a   :  { %vm2540_vm9 = vcmp.eq.s32.totalorder %v6953_v58, %v2539_v37 }
0x1a5c   :  { %5696 = vmatpush3.bf16.msra.mxu1 %v6880_v26  ;;  %v7156_v26 = vpop.f32.mrb[22].mxu0 }
0x1a5d   :  { %5697 = vmatprep.subr.bf16.mxu1 %v6191_v46 }
0x1a60   :  { %5699 = vmatpush3.bf16.msra.mxu1 %v6892_v13  ;;  %v5285_v13 = vpop.f32.mrb[23].mxu0 }
0x1a61   :  { %5700 = vmatprep.subr.bf16.mxu1 %v6191_v46 }
0x1a64   :  { %5702 = vmatpush3.bf16.msra.mxu1 %v6904_v19  ;;  %v2613_v19 = vmul.f32 %v6981_v29, %v7156_v26 }
0x1a65   :  { %5703 = vmatprep.subr.bf16.mxu1 %v6191_v46 }
0x1a68   :  { %5705 = vmatpush3.bf16.msra.mxu1 %v6916_v35  ;;  %v2614_v35 = vsel %vm67_vm0, %v2613_v19, 0.0  ;;  %v2965_v19 = vmul.u32 8, %v6923_v8 }
0x1a69   :  { %5706 = vmatprep.subr.bf16.mxu1 %v6191_v46  ;;  %2615 = vadd.xlane.f32.xlu0 %v2614_v35 }
0x1a6a   :  { %v3274_v35 = vadd.s32 4, %v2965_v19  ;;  %vm2966_vm10 = vcmp.eq.s32.totalorder %v6953_v58, %v2965_v19 }
0x1a6b   :  { %vm2968_vm13 = vmand %vm2966_vm10, %vm2967_vm11 }
0x1a6c   :  { %5708 = vmatpush3.bf16.msra.mxu1 %v6930_v3  ;;  %vm3275_vm12 = vcmp.eq.s32.totalorder %v6953_v58, %v3274_v35 }
0x1a6d   :  { %5709 = vmatprep.subr.bf16.mxu1 %v6191_v46  ;;  %vm3276_vm14 = vmand %vm3275_vm12, %vm2967_vm11 }
0x1a70   :  { %5711 = vmatpush3.bf16.msra.mxu1 %v6945_v44 }
0x1a71   :  { %5712 = vmatprep.subr.bf16.mxu1 %v6191_v46 }
0x1a74   :  { %5714 = vmatpush3.bf16.msra.mxu1 %v6958_v12 }
0x1a75   :  { %5739 = vmatprep.subr.bf16.mxu1 %v6191_v46 }
0x1a77   :  { %5319 = vmatmul.mubr.msk.f32.vlgmr.msra.gmra.mrb[22].mxu1 %vm2540_vm9, %v6193_v24  ;;  %v2690_v24 = vmul.f32 %v6976_v27, %v7156_v26 }
0x1a78   :  { %5375 = vmatprep.mubr.msk.f32.mxu1 %vm6192_vm2, %v6186_v28 }
0x1b2a   :  { %v7161_v3 = vpop.f32.mrb[20].mxu1 }
0x1b2b   :  { %v5250_v55 = vpop.f32.mrb[21].mxu1 }
0x1b2c   :  { %v4727_v55 = vld [vmem:[%s7565_s11] ss:$0 sm:$0xff] }
0x1b4a   :  { %v2609_v44 = vpop.f32.mrb[22].mxu1 }
0x1b4b   :  { %v5320_v12 = vpop.f32.mrb[23].mxu1  ;;  %5322 = vmatpush3.xpose.msk.msra.mxu0 %vm67_vm0, %v2609_v44 }
0x1b4c   :  { %5326 = vmatprep.subr.mxu0 %v6186_v28 }
0x1b4e   :  { %5324 = vmatmul.mubr.msk.f32.vlgmr.msra.gmra.mrb[24].mxu0 %vm67_vm0, %v6992_v17  ;;  %v2616_v17 = vpop.xlane.xlu0 %2615 }
0x1b4f   :  { %5327 = vmatpush3.xpose.msk.msra.mxu0 %vm67_vm0, %v2609_v44  ;;  %5328 = vmatprep.mubr.msk.f32.mxu0 %vm6192_vm2, %v6186_v28 }
0x1b50   :  { %5331 = vmatprep.subr.mxu0 %v6186_v28 }
0x1b52   :  { %5329 = vmatmul.mubr.msk.f32.vlgmr.msra.gmra.mrb[26].mxu0 %vm67_vm0, %v2690_v24  ;;  %v2462_v24 = vadd.f32 %v4727_v55, %v7161_v3  ;;  %v2969_v3 = vsel %vm2968_vm13, 1.0, %v6186_v28 }
0x1b53   :  { %5332 = vmatpush3.msra.mxu0 %v2609_v44  ;;  %5333 = vmatprep.mubr.msk.f32.mxu0 %vm6192_vm2, %v6186_v28  ;;  %v3428_v44 = vadd.s32 6, %v2965_v19 }
0x1b54   :  { %5715 = vmatprep.subr.bf16.mxu0 %v6191_v46 }
0x1b55   :  { %vm3429_vm3 = vcmp.eq.s32.totalorder %v6953_v58, %v3428_v44 }
0x1c21   :  { %v2686_v29 = vpop.f32.mrb[24].mxu0 }
0x1c22   :  { %v5325_v0 = vpop.f32.mrb[25].mxu0  ;;  %v2767_v27 = vrot.slane %v2686_v29, %v2257_v9 }
0x1c25   :  { %v2760_v22 = vpop.f32.mrb[26].mxu0 }
0x1c26   :  { %v2761_v7 = vadd.f32 %v2760_v22, %v2616_v17  ;;  %v5330_v63 = vpop.f32.mrb[27].mxu0  ;;  %v3120_v22 = vadd.s32 2, %v2965_v19 }
0x1c27   :  { %v3583_v63 = vld [vmem:[%s7564_s10 + $0x8] sm:$0xff] }
0x1c28   :  { %v2768_v4 = vadd.f32 %v2767_v27, %v2761_v7  ;;  %v3277_v27 = vsel %vm3276_vm14, 1.0, %v6186_v28  ;;  %v3582_v7 = vld [vmem:[%s7564_s10] sm:$0xff]  ;;  %vm3121_vm6 = vcmp.eq.s32.totalorder %v6953_v58, %v3120_v22 }
0x1c2a   :  { %v2769_v2 = vsel %vm2260_vm5, %v2768_v4, -inf }
0x1c2b   :  { %2770 = vmax.xlane.f32.xlu1 %v2769_v2 }
0x1cb8   :  { %v2771_v42 = vpop.xlane.xlu1 %2770 }
0x1cb9   :  { %v2772_v31 = vsub.f32 %v2768_v4, %v2771_v42  ;;  %v2853_v9 = vrot.slane %v2771_v42, 4  ;;  %v3197_v4 = vadd.s32 3, %v2965_v19 }
0x1cbb   :  { %v2773_v61 = vmul.f32 1.442695, %v2772_v31  ;;  %v7252_v31 = vpack.c.bf16 %v3583_v63, %v3582_v7 }
0x1cbd   :  { %6033 = vpow2.f32 %v2773_v61  ;;  %v3584_v61 = vld [vmem:[%s7564_s10 + $0x10] sm:$0xff] }
0x1cc7   :  { %v6034_v48 = vpop.eup %6033 }
0x1cc8   :  { %v2775_v21 = vsel %vm2260_vm5, %v6034_v48, 0.0 }
0x1cc9   :  { %2776 = vadd.xlane.f32.xlu0 %v2775_v21  ;;  %v3351_v21 = vadd.s32 5, %v2965_v19 }
0x1ccb   :  { %vm3352_vm10 = vcmp.eq.s32.totalorder %v6953_v58, %v3351_v21 }
0x1ccc   :  { %vm3353_vm12 = vmand %vm3352_vm10, %vm2967_vm11 }
0x1d56   :  { %v2777_v30 = vpop.xlane.xlu0 %2776 }
0x1d57   :  { %6035 = vrcp.f32 %v2777_v30 }
0x1d61   :  { %v6036_v41 = vpop.eup %6035 }
0x1d62   :  { %v2779_v16 = vmul.f32 %v6036_v41, %v6034_v48  ;;  %v3585_v48 = vld [vmem:[%s7564_s10 + $0x18] sm:$0xff] }
0x1d63   :  { %v7274_v41 = vpack.c.bf16 %v3585_v48, %v3584_v61 }
0x1d64   :  { %5334 = vmatmul.mubr.msk.f32.vlgmr.msra.gmra.mrb[28].mxu0 %vm2260_vm5, %v2779_v16  ;;  %vm3430_vm5 = vmand %vm3429_vm3, %vm2967_vm11  ;;  %v3505_v16 = vadd.s32 7, %v2965_v19 }
0x1d65   :  { %5717 = vmatpush3.bf16.msra.mxu0 %v7043_v45  ;;  %5368 = vmatprep.mubr.msk.f32.mxu0 %vm6192_vm2, %v6186_v28  ;;  %v2854_v45 = vmax.f32 %v2771_v42, %v2853_v9 }
0x1d66   :  { %5718 = vmatprep.subr.bf16.mxu0 %v6191_v46  ;;  %vm3506_vm13 = vcmp.eq.s32.totalorder %v6953_v58, %v3505_v16 }
0x1d67   :  { %vm3507_vm14 = vmand %vm3506_vm13, %vm2967_vm11 }
0x1d69   :  { %5720 = vmatpush3.bf16.msra.mxu0 %v7049_v23  ;;  %v2855_v23 = vrot.slane %v2854_v45, 2 }
0x1d6a   :  { %5721 = vmatprep.subr.bf16.mxu0 %v6191_v46 }
0x1d6d   :  { %5723 = vmatpush3.bf16.msra.mxu0 %v7059_v25  ;;  %v2856_v25 = vmax.f32 %v2854_v45, %v2855_v23  ;;  %v3354_v45 = vsel %vm3353_vm12, 1.0, %v6186_v28 }
0x1d6e   :  { %5724 = vmatprep.subr.bf16.mxu0 %v6191_v46 }
0x1d71   :  { %5726 = vmatpush3.bf16.msra.mxu0 %v7070_v11  ;;  %v2857_v11 = vrot.slane %v2856_v25, 1 }
0x1d72   :  { %5727 = vmatprep.subr.bf16.mxu0 %v6191_v46 }
0x1d75   :  { %5729 = vmatpush3.bf16.msra.mxu0 %v7081_v10  ;;  %v2858_v10 = vmax.f32 %v2856_v25, %v2857_v11 }
0x1d76   :  { %5730 = vmatprep.subr.bf16.mxu0 %v6191_v46 }
0x1d77   :  { %v2859_v32 = vsub.f32 %v2771_v42, %v2858_v10  ;;  %v3431_v42 = vsel %vm3430_vm5, 1.0, %v6186_v28 }
0x1d79   :  { %5732 = vmatpush3.bf16.msra.mxu0 %v7091_v20  ;;  %v2860_v56 = vmul.f32 1.442695, %v2859_v32 }
0x1d7a   :  { %5733 = vmatprep.subr.bf16.mxu0 %v6191_v46 }
0x1d7b   :  { %6037 = vpow2.f32 %v2860_v56 }
0x1d7d   :  { %5735 = vmatpush3.bf16.msra.mxu0 %v7101_v53 }
0x1d7e   :  { %5736 = vmatprep.subr.bf16.mxu0 %v6191_v46 }
0x1d81   :  { %5738 = vmatpush3.bf16.msra.mxu0 %v7115_v43 }
0x1d82   :  { %5751 = vmatprep.subr.bf16.mxu0 %v6191_v46 }
0x1d85   :  { %v6038_v20 = vpop.eup %6037 }
0x1d86   :  { %v2862_v40 = vrot.slane %v6038_v20, 4 }
0x1d88   :  { %v2863_v38 = vadd.f32 %v6038_v20, %v2862_v40 }
0x1d8a   :  { %v2864_v50 = vrot.slane %v2863_v38, 2 }
0x1d8c   :  { %v2865_v53 = vadd.f32 %v2864_v50, %v2863_v38  ;;  %v7337_v50 = vld [vmem:[%s7566_s12] ss:$0 sm:$0xff]  ;;  %s6195_s12 = smov [#allocation2]  }
0x1d8e   :  { %v2866_v34 = vrot.slane %v2865_v53, 1 }
0x1d90   :  { %v2867_v57 = vadd.f32 %v2866_v34, %v2865_v53 }
0x1d92   :  { %6039 = vrcp.f32 %v2867_v57 }
0x1d9c   :  { %v6040_v51 = vpop.eup %6039 }
0x1d9d   :  { %v2869_v39 = vmul.f32 %v6040_v51, %v6038_v20 }
0x1d9f   :  { %v2870_v49 = vmul.f32 %v2869_v39, %v7156_v26 }
0x1da1   :  { %v2871_v43 = vsel %vm67_vm0, %v2870_v49, 0.0 }
0x1da2   :  { %v2872_v6 = vrot.slane %v2871_v43, 4 }
0x1da4   :  { %v2873_v52 = vadd.f32 %v2872_v6, %v2871_v43 }
0x1da6   :  { %v2874_v54 = vrot.slane %v2873_v52, 2 }
0x1da8   :  { %v2875_v18 = vadd.f32 %v2874_v54, %v2873_v52 }
0x1daa   :  { %v2876_v59 = vrot.slane %v2875_v18, 1 }
0x1dac   :  { %v2877_v33 = vadd.f32 %v2876_v59, %v2875_v18 }
0x1dae   :  { %v2879_v1 = vmul.f32 %v2877_v33, %v7156_v26 }
0x1e37   :  { %v2849_v36 = vpop.f32.mrb[28].mxu0 }
0x1e38   :  { %v2878_v47 = vmul.f32 %v2849_v36, %v7156_v26  ;;  %2881 = vrot.lane.b32.xlu0 %v2849_v36, %s6188_s27  ;;  %v5335_v60 = vpop.f32.mrb[29].mxu0 }
0x1e3a   :  { %2885 = vrot.lane.b32.xlu1 %v2878_v47, %s6194_s4 }
0x1e3e   :  { %2889 = vrot.lane.b32.xlu1 %v2879_v1, %s6187_s26 }
0x1eaa   :  { %v2882_v15 = vpop.permute.xlu0 %2881 }
0x1eab   :  { %v2892_v5 = vsel %vm67_vm0, %v7156_v26, %v2882_v15  ;;  %v3043_v26 = vadd.s32 1, %v2965_v19 }
0x1eac   :  { %v2886_v62 = vpop.permute.xlu1 %2885 }
0x1ead   :  { %v2893_v14 = vsel %vm2385_vm7, %v2892_v5, %v2886_v62  ;;  %vm3044_vm15 = vcmp.eq.s32.totalorder %v6953_v58, %v3043_v26  ;;  %vm3122_vm7 = vmand %vm3121_vm6, %vm2967_vm11 }
0x1eae   :  { %vm3045_vm4 = vmand %vm3044_vm15, %vm2967_vm11  ;;  %v3123_v30 = vsel %vm3122_vm7, 1.0, %v6186_v28 }
0x1eaf   :  { %v3046_v2 = vsel %vm3045_vm4, 1.0, %v6186_v28 }
0x1eb0   :  { %v2890_v37 = vpop.permute.xlu1 %2889 }
0x1eb1   :  { %v2894_v13 = vsel %vm2387_vm8, %v2893_v14, %v2890_v37  ;;  %vm3198_vm8 = vcmp.eq.s32.totalorder %v6953_v58, %v3197_v4  ;;  %v3508_v58 = vsel %vm3507_vm14, 1.0, %v6186_v28 }
0x1eb2   :  { %5369 = vmatmul.mubr.f32.vlgmr.msra.gmra.mrb[30].mxu0 %v2894_v13  ;;  %vm3199_vm9 = vmand %vm3198_vm8, %vm2967_vm11  ;;  %vm4637_vm11 = vcmask 254976  }
0x1eb3   :  { %5403 = vmatprep.mubr.msk.f32.mxu0 %vm6192_vm2, %v6186_v28  ;;  %v3200_v9 = vsel %vm3199_vm9, 1.0, %v6186_v28 }
0x1f85   :  { %v2961_v12 = vpop.f32.mrb[30].mxu0 }
0x1f86   :  { %v2962_v29 = vadd.f32 %v4727_v55, %v2961_v12  ;;  %v5370_v0 = vpop.f32.mrb[31].mxu0 }
0x1f88   :  { %v7226_v17 = vpack.c.bf16 %v2962_v29, %v2462_v24 }
0x1f8a   :  { %5741 = vmatpush3.bf16.msra.mxu1 %v7226_v17  ;;  %5753 = vmatpush3.bf16.msra.mxu0 %v7226_v17 }
0x1f8b   :  { %5742 = vmatprep.subr.bf16.mxu1 %v6191_v46  ;;  %5757 = vmatprep.subr.bf16.mxu0 %v6191_v46 }
0x1f8d   :  { %5376 = vmatmul.mubr.msk.f32.vlgmr.msra.gmra.mrb[24].mxu1 %vm535_vm1, %v2969_v3  ;;  %5404 = vmatmul.mubr.msk.f32.vlgmr.msra.gmra.mrb[32].mxu0 %vm535_vm1, %v3277_v27 }
0x1f8e   :  { %5744 = vmatpush3.bf16.msra.mxu1 %v7226_v17  ;;  %5759 = vmatpush3.bf16.msra.mxu0 %v7226_v17 }
0x1f8f   :  { %5382 = vmatprep.mubr.msk.f32.mxu1 %vm6192_vm2, %v6186_v28  ;;  %5745 = vmatprep.subr.bf16.mxu1 %v6191_v46 }
0x1f90   :  { %5417 = vmatprep.mubr.msk.f32.mxu0 %vm6192_vm2, %v6186_v28  ;;  %5763 = vmatprep.subr.bf16.mxu0 %v6191_v46 }
0x1f91   :  { %5383 = vmatmul.mubr.msk.f32.vlgmr.msra.gmra.mrb[26].mxu1 %vm535_vm1, %v3046_v2  ;;  %5418 = vmatmul.mubr.msk.f32.vlgmr.msra.gmra.mrb[34].mxu0 %vm535_vm1, %v3431_v42 }
0x1f92   :  { %5747 = vmatpush3.bf16.msra.mxu1 %v7226_v17  ;;  %5765 = vmatpush3.bf16.msra.mxu0 %v7252_v31 }
0x1f93   :  { %5389 = vmatprep.mubr.msk.f32.mxu1 %vm6192_vm2, %v6186_v28  ;;  %5748 = vmatprep.subr.bf16.mxu1 %v6191_v46 }
0x1f94   :  { %5766 = vmatprep.subr.bf16.mxu0 %v6191_v46  ;;  %5435 = vmatprep.mubr.msk.f32.mxu0 %vm6192_vm2, %v6186_v28 }
0x1f95   :  { %5390 = vmatmul.mubr.msk.f32.vlgmr.msra.gmra.mrb[28].mxu1 %vm535_vm1, %v3123_v30 }
0x1f96   :  { %5750 = vmatpush3.bf16.msra.mxu1 %v7226_v17  ;;  %5768 = vmatpush3.bf16.msra.mxu0 %v7274_v41 }
0x1f97   :  { %5396 = vmatprep.mubr.msk.f32.mxu1 %vm6192_vm2, %v6186_v28  ;;  %5754 = vmatprep.subr.bf16.mxu1 %v6191_v46 }
0x1f98   :  { %5775 = vmatprep.subr.bf16.mxu0 %v6191_v46 }
0x1f99   :  { %5397 = vmatmul.mubr.msk.f32.vlgmr.msra.gmra.mrb[30].mxu1 %vm535_vm1, %v3200_v9  ;;  %5436 = vmatmul.mubr.f32.vlgmr.msra.gmra.mrb[36].mxu0 %v6186_v28 }
0x1f9a   :  { %5756 = vmatpush3.bf16.msra.mxu1 %v7226_v17  ;;  %5410 = vmatprep.mubr.msk.f32.mxu1 %vm6192_vm2, %v6186_v28 }
0x1f9b   :  { %5760 = vmatprep.subr.bf16.mxu1 %v6191_v46  ;;  %5777 = vmatpush3.bf16.msra.mxu0 %v7252_v31 }
0x1f9c   :  { %5778 = vmatprep.subr.bf16.mxu0 %v6191_v46  ;;  %5457 = vmatprep.mubr.msk.f32.mxu0 %vm6192_vm2, %v6186_v28 }
0x1f9d   :  { %5411 = vmatmul.mubr.msk.f32.vlgmr.msra.gmra.mrb[32].mxu1 %vm535_vm1, %v3354_v45 }
0x1f9e   :  { %5762 = vmatpush3.bf16.msra.mxu1 %v7226_v17  ;;  %5424 = vmatprep.mubr.msk.f32.mxu1 %vm6192_vm2, %v6186_v28 }
0x1f9f   :  { %5769 = vmatprep.subr.bf16.mxu1 %v6191_v46  ;;  %5780 = vmatpush3.bf16.msra.mxu0 %v7274_v41 }
0x1fa0   :  { %5787 = vmatprep.subr.bf16.mxu0 %v6191_v46 }
0x1fa1   :  { %5425 = vmatmul.mubr.msk.f32.vlgmr.msra.gmra.mrb[34].mxu1 %vm535_vm1, %v3508_v58 }
0x1fa2   :  { %5771 = vmatpush3.bf16.msra.mxu1 %v7252_v31  ;;  %5446 = vmatprep.mubr.msk.f32.mxu1 %vm6192_vm2, %v6186_v28 }
0x1fa3   :  { %5772 = vmatprep.subr.bf16.mxu1 %v6191_v46 }
0x1fa6   :  { %5774 = vmatpush3.bf16.msra.mxu1 %v7274_v41 }
0x1fa7   :  { %5781 = vmatprep.subr.bf16.mxu1 %v6191_v46 }
0x2060   :  { %v7324_v8 = vpop.f32.mrb[32].mxu0  ;;  %v7326_v23 = vpop.f32.mrb[24].mxu1 }
0x2061   :  { %v5405_v25 = vpop.f32.mrb[33].mxu0  ;;  %v5377_v11 = vpop.f32.mrb[25].mxu1 }
0x2064   :  { %v7328_v10 = vpop.f32.mrb[34].mxu0  ;;  %v7330_v32 = vpop.f32.mrb[26].mxu1 }
0x2065   :  { %v5419_v56 = vpop.f32.mrb[35].mxu0  ;;  %v5384_v20 = vpop.f32.mrb[27].mxu1 }
0x2068   :  { %v7332_v40 = vpop.f32.mrb[28].mxu1 }
0x2069   :  { %v5391_v38 = vpop.f32.mrb[29].mxu1 }
0x206c   :  { %v3659_v53 = vpop.f32.mrb[36].mxu0  ;;  %v7339_v34 = vpop.f32.mrb[30].mxu1 }
0x206d   :  { %v3660_v57 = vadd.f32 %v7337_v50, %v3659_v53  ;;  %v5437_v51 = vpop.f32.mrb[37].mxu0  ;;  %v5398_v39 = vpop.f32.mrb[31].mxu1 }
0x206f   :  { %v3663_v49 = vadd.f32 %v3660_v57, %v7326_v23  ;;  %3671 = vrot.lane.b32.xlu0 %v3660_v57, %s6187_s26 }
0x2070   :  { %v7344_v43 = vpop.f32.mrb[32].mxu1 }
0x2071   :  { %v5412_v6 = vpop.f32.mrb[33].mxu1  ;;  %v3664_v59 = vsub.f32 0.0, %v3663_v49 }
0x2073   :  { %v3665_v47 = vmul.f32 1.442695, %v3664_v59 }
0x2074   :  { %v7346_v52 = vpop.f32.mrb[34].mxu1 }
0x2075   :  { %v3689_v54 = vadd.f32 %v3660_v57, %v7346_v52  ;;  %v5426_v18 = vpop.f32.mrb[35].mxu1  ;;  %6041 = vpow2.f32 %v3665_v47 }
0x2077   :  { %v3690_v36 = vsub.f32 0.0, %v3689_v54 }
0x2079   :  { %v3691_v60 = vmul.f32 1.442695, %v3690_v36 }
0x207b   :  { %6043 = vpow2.f32 %v3691_v60 }
0x207f   :  { %v6042_v33 = vpop.eup %6041 }
0x2080   :  { %v3667_v15 = vadd.f32 1.0, %v6042_v33 }
0x2082   :  { %6045 = vrcp.f32 %v3667_v15 }
0x2085   :  { %v6044_v1 = vpop.eup %6043 }
0x2086   :  { %v3693_v62 = vadd.f32 1.0, %v6044_v1 }
0x2088   :  { %6047 = vrcp.f32 %v3693_v62 }
0x208c   :  { %v6046_v5 = vpop.eup %6045 }
0x208d   :  { %v3681_v17 = vsub.f32 1.0, %v6046_v5  ;;  %v3687_v7 = vmul.f32 0.0, %v6046_v5 }
0x2092   :  { %v6048_v14 = vpop.eup %6047 }
0x2093   :  { %v3703_v29 = vsub.f32 1.0, %v6048_v14  ;;  %v3709_v22 = vmul.f32 0.0, %v6048_v14 }
0x20e1   :  { %v3672_v37 = vpop.permute.xlu0 %3671 }
0x20e2   :  { %v3674_v13 = vmul.f32 %v6046_v5, %v3672_v37  ;;  %v3696_v19 = vmul.f32 %v6048_v14, %v3672_v37 }
0x20e4   :  { %3698 = vrot.lane.b32.xlu0 %v3696_v19, %s6188_s27  ;;  %3676 = vrot.lane.b32.xlu1 %v3674_v13, %s6188_s27 }
0x2156   :  { %v3699_v35 = vpop.permute.xlu0 %3698  ;;  %v3677_v55 = vpop.permute.xlu1 %3676 }
0x2157   :  { %v3701_v26 = vadd.f32 %v3699_v35, %v7346_v52  ;;  %v3679_v44 = vadd.f32 %v3677_v55, %v7326_v23 }
0x2159   :  { %6049 = vtanh.f32 %v3701_v26 }
0x215a   :  { %6051 = vtanh.f32 %v3679_v44 }
0x2163   :  { %v6050_v12 = vpop.eup %6049 }
0x2164   :  { %v6052_v24 = vpop.eup %6051  ;;  %3705 = vrot.lane.b32.xlu0 %v6050_v12, %s6189_s28 }
0x2165   :  { %3683 = vrot.lane.b32.xlu1 %v6052_v24, %s6189_s28 }
0x21d6   :  { %v3706_v0 = vpop.permute.xlu0 %3705 }
0x21d7   :  { %v3708_v3 = vmul.f32 %v3706_v0, %v3703_v29  ;;  %v3684_v27 = vpop.permute.xlu1 %3683 }
0x21d8   :  { %v3686_v63 = vmul.f32 %v3684_v27, %v3681_v17 }
0x21d9   :  { %v3710_v4 = vadd.f32 %v3709_v22, %v3708_v3 }
0x21da   :  { %v3688_v2 = vadd.f32 %v3687_v7, %v3686_v63 }
0x21db   :  { %3716 = vrot.lane.b32.xlu0 %v3710_v4, %s6190_s2 }
0x21dc   :  { %3712 = vrot.lane.b32.xlu1 %v3688_v2, %s6189_s28 }
0x224d   :  { %v7357_v42 = vpop.permute.xlu0 %3716 }
0x224e   :  { %v7359_v61 = vpop.permute.xlu1 %3712 }
0x224f   :  { %v3719_v48 = vsel %vm535_vm1, %v7359_v61, %v7357_v42 }
0x2250   :  { %5447 = vmatmul.mubr.msk.f32.vlgmr.msra.gmra.mrb[36].mxu1 %vm67_vm0, %v3719_v48 }
0x2251   :  { %5783 = vmatpush3.bf16.msra.mxu1 %v7252_v31  ;;  %5468 = vmatprep.mubr.msk.f32.mxu1 %vm6192_vm2, %v6186_v28 }
0x2252   :  { %5784 = vmatprep.subr.bf16.mxu1 %v6191_v46 }
0x2255   :  { %5786 = vmatpush3.bf16.msra.mxu1 %v7274_v41 }
0x2256   :  { %5793 = vmatprep.subr.bf16.mxu1 %v6191_v46 }
0x2323   :  { %v3789_v21 = vpop.f32.mrb[36].mxu1 }
0x2324   :  { %v3790_v30 = vadd.f32 %v7337_v50, %v3789_v21  ;;  %v5448_v16 = vpop.f32.mrb[37].mxu1 }
0x2326   :  { %v3793_v9 = vadd.f32 %v3790_v30, %v7330_v32  ;;  %v3819_v45 = vadd.f32 %v3790_v30, %v7328_v10  ;;  %3801 = vrot.lane.b32.xlu1 %v3790_v30, %s6187_s26 }
0x2328   :  { %v3794_v58 = vsub.f32 0.0, %v3793_v9  ;;  %v3820_v25 = vsub.f32 0.0, %v3819_v45 }
0x232a   :  { %v3795_v11 = vmul.f32 1.442695, %v3794_v58  ;;  %v3821_v56 = vmul.f32 1.442695, %v3820_v25 }
0x232c   :  { %6053 = vpow2.f32 %v3795_v11 }
0x232d   :  { %6055 = vpow2.f32 %v3821_v56 }
0x2336   :  { %v6054_v20 = vpop.eup %6053 }
0x2337   :  { %v6056_v38 = vpop.eup %6055  ;;  %v3797_v53 = vadd.f32 1.0, %v6054_v20 }
0x2338   :  { %v3823_v57 = vadd.f32 1.0, %v6056_v38 }
0x2339   :  { %6057 = vrcp.f32 %v3797_v53 }
0x233a   :  { %6059 = vrcp.f32 %v3823_v57 }
0x2343   :  { %v6058_v51 = vpop.eup %6057 }
0x2344   :  { %v6060_v39 = vpop.eup %6059  ;;  %v3811_v62 = vsub.f32 1.0, %v6058_v51  ;;  %v3817_v13 = vmul.f32 %v6058_v51, %v3688_v2 }
0x2345   :  { %v3833_v1 = vsub.f32 1.0, %v6060_v39  ;;  %v3839_v5 = vmul.f32 %v6060_v39, %v3710_v4 }
0x2398   :  { %v3802_v49 = vpop.permute.xlu1 %3801 }
0x2399   :  { %v3804_v6 = vmul.f32 %v6058_v51, %v3802_v49  ;;  %v3826_v54 = vmul.f32 %v6060_v39, %v3802_v49 }
0x239b   :  { %3828 = vrot.lane.b32.xlu1 %v3826_v54, %s6188_s27  ;;  %3806 = vrot.lane.b32.xlu0 %v3804_v6, %s6188_s27 }
0x240d   :  { %v3829_v18 = vpop.permute.xlu1 %3828  ;;  %v3807_v59 = vpop.permute.xlu0 %3806 }
0x240e   :  { %v3831_v36 = vadd.f32 %v3829_v18, %v7328_v10  ;;  %v3809_v47 = vadd.f32 %v3807_v59, %v7330_v32 }
0x2410   :  { %6061 = vtanh.f32 %v3831_v36 }
0x2411   :  { %6063 = vtanh.f32 %v3809_v47 }
0x241a   :  { %v6062_v60 = vpop.eup %6061 }
0x241b   :  { %v6064_v33 = vpop.eup %6063  ;;  %3835 = vrot.lane.b32.xlu1 %v6062_v60, %s6189_s28 }
0x241c   :  { %3813 = vrot.lane.b32.xlu0 %v6064_v33, %s6189_s28 }
0x248d   :  { %v3836_v15 = vpop.permute.xlu1 %3835 }
0x248e   :  { %v3838_v14 = vmul.f32 %v3836_v15, %v3833_v1  ;;  %v3814_v37 = vpop.permute.xlu0 %3813 }
0x248f   :  { %v3816_v19 = vmul.f32 %v3814_v37, %v3811_v62 }
0x2490   :  { %v3840_v35 = vadd.f32 %v3839_v5, %v3838_v14 }
0x2491   :  { %v3818_v55 = vadd.f32 %v3817_v13, %v3816_v19 }
0x2492   :  { %3846 = vrot.lane.b32.xlu1 %v3840_v35, %s6190_s2 }
0x2493   :  { %3842 = vrot.lane.b32.xlu0 %v3818_v55, %s6189_s28 }
0x2504   :  { %v7383_v26 = vpop.permute.xlu1 %3846 }
0x2505   :  { %v7385_v44 = vpop.permute.xlu0 %3842 }
0x2506   :  { %v3849_v12 = vsel %vm535_vm1, %v7385_v44, %v7383_v26 }
0x2507   :  { %5458 = vmatmul.mubr.msk.f32.vlgmr.msra.gmra.mrb[38].mxu0 %vm67_vm0, %v3849_v12 }
0x2508   :  { %5789 = vmatpush3.bf16.msra.mxu0 %v7252_v31  ;;  %5479 = vmatprep.mubr.msk.f32.mxu0 %vm6192_vm2, %v6186_v28 }
0x2509   :  { %5790 = vmatprep.subr.bf16.mxu0 %v6191_v46 }
0x250c   :  { %5792 = vmatpush3.bf16.msra.mxu0 %v7274_v41 }
0x250d   :  { %5799 = vmatprep.subr.bf16.mxu0 %v6191_v46 }
0x25da   :  { %v3919_v24 = vpop.f32.mrb[38].mxu0 }
0x25db   :  { %v3920_v29 = vadd.f32 %v7337_v50, %v3919_v24  ;;  %v5459_v0 = vpop.f32.mrb[39].mxu0 }
0x25dd   :  { %v3923_v17 = vadd.f32 %v3920_v29, %v7332_v40  ;;  %v3949_v22 = vadd.f32 %v3920_v29, %v7344_v43  ;;  %3931 = vrot.lane.b32.xlu0 %v3920_v29, %s6187_s26 }
0x25df   :  { %v3924_v3 = vsub.f32 0.0, %v3923_v17  ;;  %v3950_v27 = vsub.f32 0.0, %v3949_v22 }
0x25e1   :  { %v3925_v7 = vmul.f32 1.442695, %v3924_v3  ;;  %v3951_v63 = vmul.f32 1.442695, %v3950_v27 }
0x25e3   :  { %6065 = vpow2.f32 %v3925_v7 }
0x25e4   :  { %6067 = vpow2.f32 %v3951_v63 }
0x25ed   :  { %v6066_v4 = vpop.eup %6065 }
0x25ee   :  { %v6068_v2 = vpop.eup %6067  ;;  %v3927_v48 = vadd.f32 1.0, %v6066_v4 }
0x25ef   :  { %v3953_v21 = vadd.f32 1.0, %v6068_v2 }
0x25f0   :  { %6069 = vrcp.f32 %v3927_v48 }
0x25f1   :  { %6071 = vrcp.f32 %v3953_v21 }
0x25fa   :  { %v6070_v30 = vpop.eup %6069 }
0x25fb   :  { %v6072_v16 = vpop.eup %6071  ;;  %v3941_v39 = vsub.f32 1.0, %v6070_v30  ;;  %v3947_v18 = vmul.f32 %v6070_v30, %v3818_v55 }
0x25fc   :  { %v3963_v57 = vsub.f32 1.0, %v6072_v16  ;;  %v3969_v49 = vmul.f32 %v6072_v16, %v3840_v35 }
0x264f   :  { %v3932_v9 = vpop.permute.xlu0 %3931 }
0x2650   :  { %v3934_v45 = vmul.f32 %v6070_v30, %v3932_v9  ;;  %v3956_v58 = vmul.f32 %v6072_v16, %v3932_v9 }
0x2652   :  { %3958 = vrot.lane.b32.xlu0 %v3956_v58, %s6188_s27  ;;  %3936 = vrot.lane.b32.xlu1 %v3934_v45, %s6188_s27 }
0x26c4   :  { %v3959_v25 = vpop.permute.xlu0 %3958  ;;  %v3937_v11 = vpop.permute.xlu1 %3936 }
0x26c5   :  { %v3961_v56 = vadd.f32 %v3959_v25, %v7344_v43  ;;  %v3939_v20 = vadd.f32 %v3937_v11, %v7332_v40 }
0x26c7   :  { %6073 = vtanh.f32 %v3961_v56 }
0x26c8   :  { %6075 = vtanh.f32 %v3939_v20 }
0x26d1   :  { %v6074_v38 = vpop.eup %6073 }
0x26d2   :  { %v6076_v53 = vpop.eup %6075  ;;  %3965 = vrot.lane.b32.xlu0 %v6074_v38, %s6189_s28 }
0x26d3   :  { %3943 = vrot.lane.b32.xlu1 %v6076_v53, %s6189_s28 }
0x2744   :  { %v3966_v51 = vpop.permute.xlu0 %3965 }
0x2745   :  { %v3968_v6 = vmul.f32 %v3966_v51, %v3963_v57  ;;  %v3944_v54 = vpop.permute.xlu1 %3943 }
0x2746   :  { %v3946_v59 = vmul.f32 %v3944_v54, %v3941_v39 }
0x2747   :  { %v3970_v36 = vadd.f32 %v3969_v49, %v3968_v6 }
0x2748   :  { %v3948_v47 = vadd.f32 %v3947_v18, %v3946_v59 }
0x2749   :  { %3976 = vrot.lane.b32.xlu0 %v3970_v36, %s6190_s2 }
0x274a   :  { %3972 = vrot.lane.b32.xlu1 %v3948_v47, %s6189_s28 }
0x27bb   :  { %v7409_v60 = vpop.permute.xlu0 %3976 }
0x27bc   :  { %v7411_v33 = vpop.permute.xlu1 %3972 }
0x27bd   :  { %v3979_v1 = vsel %vm535_vm1, %v7411_v33, %v7409_v60 }
0x27be   :  { %5469 = vmatmul.mubr.msk.f32.vlgmr.msra.gmra.mrb[38].mxu1 %vm67_vm0, %v3979_v1 }
0x27bf   :  { %5795 = vmatpush3.bf16.msra.mxu1 %v7252_v31  ;;  %5490 = vmatprep.mubr.msk.f32.mxu1 %vm6192_vm2, %v6186_v28 }
0x27c0   :  { %5796 = vmatprep.subr.bf16.mxu1 %v6191_v46 }
0x27c3   :  { %5798 = vmatpush3.bf16.msra.mxu1 %v7274_v41 }
0x27c4   :  { %5805 = vmatprep.subr.bf16.mxu1 %v6191_v46 }
0x2891   :  { %v4049_v15 = vpop.f32.mrb[38].mxu1 }
0x2892   :  { %v4050_v62 = vadd.f32 %v7337_v50, %v4049_v15  ;;  %v5470_v5 = vpop.f32.mrb[39].mxu1 }
0x2894   :  { %v4053_v14 = vadd.f32 %v4050_v62, %v7339_v34  ;;  %v4079_v37 = vadd.f32 %v4050_v62, %v7324_v8  ;;  %4061 = vrot.lane.b32.xlu1 %v4050_v62, %s6187_s26 }
0x2896   :  { %v4054_v13 = vsub.f32 0.0, %v4053_v14  ;;  %v4080_v19 = vsub.f32 0.0, %v4079_v37 }
0x2898   :  { %v4055_v35 = vmul.f32 1.442695, %v4054_v13  ;;  %v4081_v55 = vmul.f32 1.442695, %v4080_v19 }
0x289a   :  { %6077 = vpow2.f32 %v4055_v35 }
0x289b   :  { %6079 = vpow2.f32 %v4081_v55 }
0x28a4   :  { %v6078_v12 = vpop.eup %6077 }
0x28a5   :  { %v6080_v24 = vpop.eup %6079  ;;  %v4057_v29 = vadd.f32 1.0, %v6078_v12 }
0x28a6   :  { %v4083_v0 = vadd.f32 1.0, %v6080_v24 }
0x28a7   :  { %6081 = vrcp.f32 %v4057_v29 }
0x28a8   :  { %6083 = vrcp.f32 %v4083_v0 }
0x28b1   :  { %v6082_v17 = vpop.eup %6081 }
0x28b2   :  { %v6084_v22 = vpop.eup %6083  ;;  %v4071_v45 = vsub.f32 1.0, %v6082_v17  ;;  %v4077_v56 = vmul.f32 %v6082_v17, %v3948_v47 }
0x28b3   :  { %v4093_v16 = vsub.f32 1.0, %v6084_v22  ;;  %v4099_v58 = vmul.f32 %v6084_v22, %v3970_v36 }
0x2906   :  { %v4062_v3 = vpop.permute.xlu1 %4061 }
0x2907   :  { %v4064_v27 = vmul.f32 %v6082_v17, %v4062_v3  ;;  %v4086_v7 = vmul.f32 %v6084_v22, %v4062_v3 }
0x2909   :  { %4088 = vrot.lane.b32.xlu1 %v4086_v7, %s6188_s27  ;;  %4066 = vrot.lane.b32.xlu0 %v4064_v27, %s6188_s27 }
0x297b   :  { %v4089_v63 = vpop.permute.xlu1 %4088  ;;  %v4067_v4 = vpop.permute.xlu0 %4066 }
0x297c   :  { %v4091_v2 = vadd.f32 %v4089_v63, %v7324_v8  ;;  %v4069_v48 = vadd.f32 %v4067_v4, %v7339_v34 }
0x297e   :  { %6085 = vtanh.f32 %v4091_v2 }
0x297f   :  { %6087 = vtanh.f32 %v4069_v48 }
0x2988   :  { %v6086_v21 = vpop.eup %6085 }
0x2989   :  { %v6088_v30 = vpop.eup %6087  ;;  %4095 = vrot.lane.b32.xlu1 %v6086_v21, %s6189_s28 }
0x298a   :  { %4073 = vrot.lane.b32.xlu0 %v6088_v30, %s6189_s28 }
0x29fb   :  { %v4096_v9 = vpop.permute.xlu1 %4095 }
0x29fc   :  { %v4098_v25 = vmul.f32 %v4096_v9, %v4093_v16  ;;  %v4074_v11 = vpop.permute.xlu0 %4073 }
0x29fd   :  { %v4076_v20 = vmul.f32 %v4074_v11, %v4071_v45 }
0x29fe   :  { %v4100_v38 = vadd.f32 %v4099_v58, %v4098_v25 }
0x29ff   :  { %v4078_v53 = vadd.f32 %v4077_v56, %v4076_v20 }
0x2a00   :  { %4106 = vrot.lane.b32.xlu1 %v4100_v38, %s6190_s2 }
0x2a01   :  { %4102 = vrot.lane.b32.xlu0 %v4078_v53, %s6189_s28 }
0x2a72   :  { %v4107_v57 = vpop.permute.xlu1 %4106 }
0x2a73   :  { %v4103_v51 = vpop.permute.xlu0 %4102 }
0x2a74   :  { %v4109_v39 = vsel %vm535_vm1, %v4103_v51, %v4107_v57 }
0x2a75   :  { %5480 = vmatmul.mubr.msk.f32.vlgmr.msra.gmra.mrb[40].mxu0 %vm67_vm0, %v4109_v39 }
0x2a76   :  { %5801 = vmatpush3.bf16.msra.mxu0 %v7252_v31  ;;  %5501 = vmatprep.mubr.msk.f32.mxu0 %vm6192_vm2, %v6186_v28 }
0x2a77   :  { %5802 = vmatprep.subr.bf16.mxu0 %v6191_v46 }
0x2a7a   :  { %5804 = vmatpush3.bf16.msra.mxu0 %v7274_v41 }
0x2b48   :  { %v4179_v49 = vpop.f32.mrb[40].mxu0 }
0x2b49   :  { %v4180_v6 = vadd.f32 %v7337_v50, %v4179_v49  ;;  %v5481_v54 = vpop.f32.mrb[41].mxu0 }
0x2b4b   :  { %v4183_v18 = vadd.f32 %v4180_v6, %v7324_v8  ;;  %v4209_v59 = vadd.f32 %v4180_v6, %v7339_v34  ;;  %4191 = vrot.lane.b32.xlu0 %v4180_v6, %s6187_s26 }
0x2b4d   :  { %v4184_v36 = vsub.f32 0.0, %v4183_v18  ;;  %v4210_v47 = vsub.f32 0.0, %v4209_v59 }
0x2b4f   :  { %v4185_v1 = vmul.f32 1.442695, %v4184_v36  ;;  %v4211_v15 = vmul.f32 1.442695, %v4210_v47 }
0x2b51   :  { %6089 = vpow2.f32 %v4185_v1 }
0x2b52   :  { %6091 = vpow2.f32 %v4211_v15 }
0x2b5b   :  { %v6090_v62 = vpop.eup %6089 }
0x2b5c   :  { %v6092_v5 = vpop.eup %6091  ;;  %v4187_v14 = vadd.f32 1.0, %v6090_v62 }
0x2b5d   :  { %v4213_v37 = vadd.f32 1.0, %v6092_v5 }
0x2b5e   :  { %6093 = vrcp.f32 %v4187_v14 }
0x2b5f   :  { %6095 = vrcp.f32 %v4213_v37 }
0x2b68   :  { %v6094_v13 = vpop.eup %6093 }
0x2b69   :  { %v6096_v19 = vpop.eup %6095  ;;  %v4201_v63 = vsub.f32 1.0, %v6094_v13  ;;  %v4207_v21 = vmul.f32 %v6094_v13, %v4078_v53 }
0x2b6a   :  { %v4223_v27 = vsub.f32 1.0, %v6096_v19  ;;  %v4229_v4 = vmul.f32 %v6096_v19, %v4100_v38 }
0x2bbd   :  { %v4192_v35 = vpop.permute.xlu0 %4191 }
0x2bbe   :  { %v4194_v55 = vmul.f32 %v6094_v13, %v4192_v35  ;;  %v4216_v12 = vmul.f32 %v6096_v19, %v4192_v35 }
0x2bc0   :  { %4218 = vrot.lane.b32.xlu0 %v4216_v12, %s6188_s27  ;;  %4196 = vrot.lane.b32.xlu1 %v4194_v55, %s6188_s27 }
0x2c32   :  { %v4219_v24 = vpop.permute.xlu0 %4218  ;;  %v4197_v29 = vpop.permute.xlu1 %4196 }
0x2c33   :  { %v4221_v0 = vadd.f32 %v4219_v24, %v7339_v34  ;;  %v4199_v17 = vadd.f32 %v4197_v29, %v7324_v8 }
0x2c35   :  { %6097 = vtanh.f32 %v4221_v0 }
0x2c36   :  { %6099 = vtanh.f32 %v4199_v17 }
0x2c3f   :  { %v6098_v22 = vpop.eup %6097 }
0x2c40   :  { %v6100_v3 = vpop.eup %6099  ;;  %4225 = vrot.lane.b32.xlu0 %v6098_v22, %s6189_s28 }
0x2c41   :  { %4203 = vrot.lane.b32.xlu1 %v6100_v3, %s6189_s28 }
0x2cb2   :  { %v4226_v7 = vpop.permute.xlu0 %4225 }
0x2cb3   :  { %v4228_v2 = vmul.f32 %v4226_v7, %v4223_v27  ;;  %v4204_v48 = vpop.permute.xlu1 %4203 }
0x2cb4   :  { %v4206_v30 = vmul.f32 %v4204_v48, %v4201_v63 }
0x2cb5   :  { %v4230_v16 = vadd.f32 %v4229_v4, %v4228_v2 }
0x2cb6   :  { %v4208_v34 = vadd.f32 %v4207_v21, %v4206_v30 }
0x2cb7   :  { %4236 = vrot.lane.b32.xlu0 %v4230_v16, %s6190_s2 }
0x2cb8   :  { %4232 = vrot.lane.b32.xlu1 %v4208_v34, %s6189_s28 }
0x2d29   :  { %v4237_v8 = vpop.permute.xlu0 %4236 }
0x2d2a   :  { %v4628_v9 = vsel %vm535_vm1, %v4103_v51, %v4237_v8  ;;  %v4233_v45 = vpop.permute.xlu1 %4232 }
0x2d2b   :  { %4641 = vst.msk [vmem:[#allocation2 + $0x6] sm:$0x3] %vm4637_vm11, %v4628_v9  ;;  %v4239_v58 = vsel %vm535_vm1, %v4233_v45, %v4237_v8  ;;  %v4629_v25 = vsel %vm535_vm1, %v4233_v45, %v4107_v57 }
0x2d2c   :  { %4642 = vst.msk [vmem:[#allocation2 + $0x8] sm:$0x3] %vm4637_vm11, %v4629_v25  ;;  %5491 = vmatmul.mubr.msk.f32.vlgmr.msra.gmra.mrb[40].mxu1 %vm67_vm0, %v4239_v58 }
0x2d2d   :  { %5807 = vmatpush3.bf16.msra.mxu1 %v7252_v31  ;;  %5512 = vmatprep.mubr.msk.f32.mxu1 %vm6192_vm2, %v6186_v28 }
0x2d2e   :  { %5808 = vmatprep.subr.bf16.mxu1 %v6191_v46 }
0x2d31   :  { %5810 = vmatpush3.bf16.msra.mxu1 %v7274_v41 }
0x2dff   :  { %v4309_v11 = vpop.f32.mrb[40].mxu1 }
0x2e00   :  { %v4310_v56 = vadd.f32 %v7337_v50, %v4309_v11  ;;  %v5492_v20 = vpop.f32.mrb[41].mxu1 }
0x2e02   :  { %v4313_v38 = vadd.f32 %v4310_v56, %v7344_v43  ;;  %v4339_v53 = vadd.f32 %v4310_v56, %v7332_v40  ;;  %4321 = vrot.lane.b32.xlu1 %v4310_v56, %s6187_s26 }
0x2e04   :  { %v4314_v57 = vsub.f32 0.0, %v4313_v38  ;;  %v4340_v51 = vsub.f32 0.0, %v4339_v53 }
0x2e06   :  { %v4315_v31 = vmul.f32 1.442695, %v4314_v57  ;;  %v4341_v39 = vmul.f32 1.442695, %v4340_v51 }
0x2e08   :  { %6101 = vpow2.f32 %v4315_v31 }
0x2e09   :  { %6103 = vpow2.f32 %v4341_v39 }
0x2e12   :  { %v6102_v28 = vpop.eup %6101 }
0x2e13   :  { %v6104_v46 = vpop.eup %6103  ;;  %v4317_v49 = vadd.f32 1.0, %v6102_v28 }
0x2e14   :  { %v4343_v41 = vadd.f32 1.0, %v6104_v46 }
0x2e15   :  { %6105 = vrcp.f32 %v4317_v49 }
0x2e16   :  { %6107 = vrcp.f32 %v4343_v41 }
0x2e1f   :  { %v6106_v6 = vpop.eup %6105 }
0x2e20   :  { %v6108_v54 = vpop.eup %6107  ;;  %v4331_v19 = vsub.f32 1.0, %v6106_v6  ;;  %v4337_v24 = vmul.f32 %v6106_v6, %v4208_v34 }
0x2e21   :  { %v4353_v37 = vsub.f32 1.0, %v6108_v54  ;;  %v4359_v35 = vmul.f32 %v6108_v54, %v4230_v16 }
0x2e74   :  { %v4322_v18 = vpop.permute.xlu1 %4321 }
0x2e75   :  { %v4324_v59 = vmul.f32 %v6106_v6, %v4322_v18  ;;  %v4346_v36 = vmul.f32 %v6108_v54, %v4322_v18 }
0x2e77   :  { %4348 = vrot.lane.b32.xlu1 %v4346_v36, %s6188_s27  ;;  %4326 = vrot.lane.b32.xlu0 %v4324_v59, %s6188_s27 }
0x2ee9   :  { %v4349_v47 = vpop.permute.xlu1 %4348  ;;  %v4327_v1 = vpop.permute.xlu0 %4326 }
0x2eea   :  { %v4351_v15 = vadd.f32 %v4349_v47, %v7332_v40  ;;  %v4329_v62 = vadd.f32 %v4327_v1, %v7344_v43 }
0x2eec   :  { %6109 = vtanh.f32 %v4351_v15 }
0x2eed   :  { %6111 = vtanh.f32 %v4329_v62 }
0x2ef6   :  { %v6110_v5 = vpop.eup %6109 }
0x2ef7   :  { %v6112_v14 = vpop.eup %6111  ;;  %4355 = vrot.lane.b32.xlu1 %v6110_v5, %s6189_s28 }
0x2ef8   :  { %4333 = vrot.lane.b32.xlu0 %v6112_v14, %s6189_s28 }
0x2f69   :  { %v4356_v13 = vpop.permute.xlu1 %4355 }
0x2f6a   :  { %v4358_v55 = vmul.f32 %v4356_v13, %v4353_v37  ;;  %v4334_v12 = vpop.permute.xlu0 %4333 }
0x2f6b   :  { %v4336_v29 = vmul.f32 %v4334_v12, %v4331_v19 }
0x2f6c   :  { %v4360_v0 = vadd.f32 %v4359_v35, %v4358_v55 }
0x2f6d   :  { %v4338_v40 = vadd.f32 %v4337_v24, %v4336_v29 }
0x2f6e   :  { %4366 = vrot.lane.b32.xlu1 %v4360_v0, %s6190_s2 }
0x2f6f   :  { %4362 = vrot.lane.b32.xlu0 %v4338_v40, %s6189_s28 }
0x2fe0   :  { %v4367_v43 = vpop.permute.xlu1 %4366 }
0x2fe1   :  { %v4627_v17 = vsel %vm535_vm1, %v7411_v33, %v4367_v43  ;;  %v4363_v22 = vpop.permute.xlu0 %4362 }
0x2fe2   :  { %4640 = vst.msk [vmem:[#allocation2 + $0x4] sm:$0x3] %vm4637_vm11, %v4627_v17  ;;  %v4369_v3 = vsel %vm535_vm1, %v4363_v22, %v4367_v43  ;;  %v4630_v27 = vsel %vm535_vm1, %v4363_v22, %v7409_v60 }
0x2fe3   :  { %4643 = vst.msk [vmem:[#allocation2 + $0xa] sm:$0x3] %vm4637_vm11, %v4630_v27  ;;  %5502 = vmatmul.mubr.msk.f32.vlgmr.msra.gmra.mrb[42].mxu0 %vm67_vm0, %v4369_v3 }
0x30b6   :  { %v4439_v7 = vpop.f32.mrb[42].mxu0 }
0x30b7   :  { %v4440_v63 = vadd.f32 %v7337_v50, %v4439_v7  ;;  %v5503_v4 = vpop.f32.mrb[43].mxu0 }
0x30b9   :  { %v4443_v2 = vadd.f32 %v4440_v63, %v7328_v10  ;;  %v4469_v33 = vadd.f32 %v4440_v63, %v7330_v32  ;;  %4451 = vrot.lane.b32.xlu0 %v4440_v63, %s6187_s26 }
0x30bb   :  { %v4444_v48 = vsub.f32 0.0, %v4443_v2  ;;  %v4470_v21 = vsub.f32 0.0, %v4469_v33 }
0x30bd   :  { %v4445_v30 = vmul.f32 1.442695, %v4444_v48  ;;  %v4471_v16 = vmul.f32 1.442695, %v4470_v21 }
0x30bf   :  { %6113 = vpow2.f32 %v4445_v30 }
0x30c0   :  { %6115 = vpow2.f32 %v4471_v16 }
0x30c9   :  { %v6114_v60 = vpop.eup %6113 }
0x30ca   :  { %v6116_v34 = vpop.eup %6115  ;;  %v4447_v8 = vadd.f32 1.0, %v6114_v60 }
0x30cb   :  { %v4473_v9 = vadd.f32 1.0, %v6116_v34 }
0x30cc   :  { %6117 = vrcp.f32 %v4447_v8 }
0x30cd   :  { %6119 = vrcp.f32 %v4473_v9 }
0x30d6   :  { %v6118_v45 = vpop.eup %6117 }
0x30d7   :  { %v6120_v58 = vpop.eup %6119  ;;  %v4461_v46 = vsub.f32 1.0, %v6118_v45  ;;  %v4467_v54 = vmul.f32 %v6118_v45, %v4338_v40 }
0x30d8   :  { %v4483_v39 = vsub.f32 1.0, %v6120_v58  ;;  %v4489_v49 = vmul.f32 %v6120_v58, %v4360_v0 }
0x312b   :  { %v4452_v25 = vpop.permute.xlu0 %4451 }
0x312c   :  { %v4454_v11 = vmul.f32 %v6118_v45, %v4452_v25  ;;  %v4476_v56 = vmul.f32 %v6120_v58, %v4452_v25 }
0x312e   :  { %4478 = vrot.lane.b32.xlu0 %v4476_v56, %s6188_s27  ;;  %4456 = vrot.lane.b32.xlu1 %v4454_v11, %s6188_s27 }
0x31a0   :  { %v4479_v20 = vpop.permute.xlu0 %4478  ;;  %v4457_v38 = vpop.permute.xlu1 %4456 }
0x31a1   :  { %v4481_v53 = vadd.f32 %v4479_v20, %v7330_v32  ;;  %v4459_v57 = vadd.f32 %v4457_v38, %v7328_v10 }
0x31a3   :  { %6121 = vtanh.f32 %v4481_v53 }
0x31a4   :  { %6123 = vtanh.f32 %v4459_v57 }
0x31ad   :  { %v6122_v51 = vpop.eup %6121 }
0x31ae   :  { %v6124_v31 = vpop.eup %6123  ;;  %4485 = vrot.lane.b32.xlu0 %v6122_v51, %s6189_s28 }
0x31af   :  { %4463 = vrot.lane.b32.xlu1 %v6124_v31, %s6189_s28 }
0x3220   :  { %v4486_v28 = vpop.permute.xlu0 %4485 }
0x3221   :  { %v4488_v41 = vmul.f32 %v4486_v28, %v4483_v39  ;;  %v4464_v6 = vpop.permute.xlu1 %4463 }
0x3222   :  { %v4466_v18 = vmul.f32 %v4464_v6, %v4461_v46 }
0x3223   :  { %v4490_v59 = vadd.f32 %v4489_v49, %v4488_v41 }
0x3224   :  { %v4468_v32 = vadd.f32 %v4467_v54, %v4466_v18 }
0x3225   :  { %4496 = vrot.lane.b32.xlu0 %v4490_v59, %s6190_s2 }
0x3226   :  { %4492 = vrot.lane.b32.xlu1 %v4468_v32, %s6189_s28 }
0x3297   :  { %v4497_v10 = vpop.permute.xlu0 %4496 }
0x3298   :  { %v4626_v36 = vsel %vm535_vm1, %v7385_v44, %v4497_v10  ;;  %v4493_v47 = vpop.permute.xlu1 %4492 }
0x3299   :  { %4639 = vst.msk [vmem:[#allocation2 + $0x2] sm:$0x3] %vm4637_vm11, %v4626_v36  ;;  %v4499_v1 = vsel %vm535_vm1, %v4493_v47, %v4497_v10  ;;  %v4631_v15 = vsel %vm535_vm1, %v4493_v47, %v7383_v26 }
0x329a   :  { %4644 = vst.msk [vmem:[#allocation2 + $0xc] sm:$0x3] %vm4637_vm11, %v4631_v15  ;;  %5513 = vmatmul.mubr.msk.f32.vlgmr.msra.gmra.mrb[42].mxu1 %vm67_vm0, %v4499_v1  ;;  %vm4649_vm0 = vcmask 123904  }
0x336d   :  { %v4569_v62 = vpop.f32.mrb[42].mxu1 }
0x336e   :  { %v4570_v5 = vadd.f32 %v7337_v50, %v4569_v62  ;;  %v5514_v14 = vpop.f32.mrb[43].mxu1 }
0x3370   :  { %v4573_v37 = vadd.f32 %v4570_v5, %v7346_v52  ;;  %v4599_v44 = vadd.f32 %v4570_v5, %v7326_v23  ;;  %4581 = vrot.lane.b32.xlu1 %v4570_v5, %s6187_s26  ;;  %s4657_s26 = sshll.u32 %s6195_s12, 4  ;;  %s4658_s26 = int_to_ptr.vmem [resolvable:$true] %s4657_s26 }
0x3371   :  { %p6143_p1 = scmp.lt.s32.totalorder %s4658_s26, %s4658_s26 }
0x3372   :  { %v4574_v13 = vsub.f32 0.0, %v4573_v37  ;;  %v4600_v19 = vsub.f32 0.0, %v4599_v44 }
0x3374   :  { %v4575_v35 = vmul.f32 1.442695, %v4574_v13  ;;  %v4601_v55 = vmul.f32 1.442695, %v4600_v19 }
0x3376   :  { %6125 = vpow2.f32 %v4575_v35 }
0x3377   :  { %6127 = vpow2.f32 %v4601_v55 }
0x3380   :  { %v6126_v26 = vpop.eup %6125 }
0x3381   :  { %v6128_v12 = vpop.eup %6127  ;;  %v4577_v24 = vadd.f32 1.0, %v6126_v26 }
0x3382   :  { %v4603_v29 = vadd.f32 1.0, %v6128_v12 }
0x3383   :  { %6129 = vrcp.f32 %v4577_v24 }
0x3384   :  { %6131 = vrcp.f32 %v4603_v29 }
0x338d   :  { %v6130_v50 = vpop.eup %6129 }
0x338e   :  { %v6132_v0 = vpop.eup %6131  ;;  %v4591_v48 = vsub.f32 1.0, %v6130_v50  ;;  %v4597_v60 = vmul.f32 %v6130_v50, %v4468_v32 }
0x338f   :  { %v4613_v2 = vsub.f32 1.0, %v6132_v0  ;;  %v4619_v21 = vmul.f32 %v6132_v0, %v4490_v59 }
0x33e2   :  { %v4582_v40 = vpop.permute.xlu1 %4581 }
0x33e3   :  { %v4584_v43 = vmul.f32 %v6130_v50, %v4582_v40  ;;  %v4606_v17 = vmul.f32 %v6132_v0, %v4582_v40 }
0x33e5   :  { %4608 = vrot.lane.b32.xlu0 %v4606_v17, %s6188_s27  ;;  %4586 = vrot.lane.b32.xlu1 %v4584_v43, %s6188_s27 }
0x3457   :  { %v4609_v22 = vpop.permute.xlu0 %4608  ;;  %v4587_v3 = vpop.permute.xlu1 %4586 }
0x3458   :  { %v4611_v27 = vadd.f32 %v4609_v22, %v7326_v23  ;;  %v4589_v7 = vadd.f32 %v4587_v3, %v7346_v52 }
0x345a   :  { %6133 = vtanh.f32 %v4611_v27 }
0x345b   :  { %6135 = vtanh.f32 %v4589_v7 }
0x3464   :  { %v6134_v63 = vpop.eup %6133 }
0x3465   :  { %v6136_v4 = vpop.eup %6135  ;;  %4615 = vrot.lane.b32.xlu0 %v6134_v63, %s6189_s28 }
0x3466   :  { %4593 = vrot.lane.b32.xlu1 %v6136_v4, %s6189_s28 }
0x34d7   :  { %v4616_v33 = vpop.permute.xlu0 %4615 }
0x34d8   :  { %v4618_v30 = vmul.f32 %v4616_v33, %v4613_v2  ;;  %v4594_v16 = vpop.permute.xlu1 %4593 }
0x34d9   :  { %v4596_v34 = vmul.f32 %v4594_v16, %v4591_v48 }
0x34da   :  { %v4620_v8 = vadd.f32 %v4619_v21, %v4618_v30 }
0x34db   :  { %v4598_v23 = vadd.f32 %v4597_v60, %v4596_v34 }
0x34dc   :  { %4622 = vrot.lane.b32.xlu0 %v4620_v8, %s6190_s2  ;;  %s6138_s2 = scalar_lea.vmem %s4658_s26, 256 }
0x34dd   :  { %4633 = vrot.lane.b32.xlu1 %v4598_v23, %s6189_s28  ;;  %p6139_p0 = scmp.ne.s32.totalorder %s4658_s26, %s6138_s2  ;;  %p6144_p2 = scmp.lt.s32.totalorder %s6138_s2, %s6138_s2 }
0x34df   :  { %p6145_p3 = por %p6144_p2, %p6143_p1 }
0x34e1   :  { %p6146_p4 = pnand %p6145_p3, %p6139_p0 }
0x354e   :  { %v4623_v52 = vpop.permute.xlu0 %4622 }
0x354f   :  { %v4625_v9 = vsel %vm535_vm1, %v7359_v61, %v4623_v52  ;;  %v4634_v45 = vpop.permute.xlu1 %4633  ;;  %4646 = vrot.lane.b32.xlu0 %v4623_v52, %s6189_s28 }
0x3550   :  { %4638 = vst.msk [vmem:[#allocation2] sm:$0x3] %vm4637_vm11, %v4625_v9  ;;  %v4636_v58 = vsel %vm535_vm1, %v4634_v45, %v7357_v42 }
0x3551   :  { %4650 = vst.msk [vmem:[#allocation4] sm:$0x3] %vm4649_vm0, %v4634_v45 }
0x3552   :  { %4645 = vst.msk [vmem:[#allocation2 + $0xe] sm:$0x3] %vm4637_vm11, %v4636_v58 }
0x3553   :  { %6149 = shalt.err (!%p6146_p4)
}
0x3554   :  { %s6150_s28 = scalar_lea.hbm %s7567_s13, 256 }
0x3555   :  { %p6151_p5 = scmp.ne.s32.totalorder %s7567_s13, %s6150_s28  ;;  %p6154_p6 = scmp.lt.u32.totalorder %s6150_s28, %s7567_s13 }
0x3557   :  { %p6156_p7 = pnand %p6154_p6, %p6151_p5 }
0x3559   :  { %6159 = shalt.err (!%p6156_p7)
}
0x355a   :  { %s6196_s22 = smov 2   ;;  %s6197_s0 = smov [#allocation4]  }
0x355b   :  { %4663 = dma.vmem_to_hbm [thread:$0]  %s4658_s26, 256, %s7567_s13, [#allocation3], %s6188_s27, %s6188_s27, %s6196_s22  }
0x355c   :  { %s4669_s1 = sshll.u32 %s6197_s0, 4  ;;  %s4670_s1 = int_to_ptr.vmem [resolvable:$true] %s4669_s1 }
0x355d   :  { %s6160_s4 = scalar_lea.vmem %s4670_s1, 64  ;;  %p6165_p9 = scmp.lt.s32.totalorder %s4670_s1, %s4670_s1 }
0x355e   :  { %p6161_p8 = scmp.ne.s32.totalorder %s4670_s1, %s6160_s4  ;;  %p6166_p10 = scmp.lt.s32.totalorder %s6160_s4, %s6160_s4 }
0x3560   :  { %p6167_p11 = por %p6166_p10, %p6165_p9 }
0x3562   :  { %p6168_p12 = pnand %p6167_p11, %p6161_p8 }
0x35c1   :  { %v4647_v42 = vpop.permute.xlu0 %4646 }
0x35c2   :  { %4651 = vst.msk [vmem:[#allocation4 + $0x2] sm:$0x3] %vm4649_vm0, %v4647_v42 }
0x35c3   :  { %6171 = shalt.err (!%p6168_p12)
}
0x35c4   :  { %s6172_s11 = scalar_lea.hbm %s7568_s14, 64 }
0x35c5   :  { %p6173_p13 = scmp.ne.s32.totalorder %s7568_s14, %s6172_s11  ;;  %p6176_p0 = scmp.lt.u32.totalorder %s6172_s11, %s7568_s14 }
0x35c7   :  { %p6178_p1 = pnand %p6176_p0, %p6173_p13 }
0x35c9   :  { %6181 = shalt.err (!%p6178_p1)
}
0x35ca   :  { %4675 = dma.vmem_to_hbm [thread:$0]  %s4670_s1, 64, %s7568_s14, [#allocation5], %s6188_s27, %s6188_s27, %s6196_s22  }
0x35cb   :  { %6182 = dma.done.wait [#allocation3], 256  }
0x35cc   :  { %6183 = vsyncadd [#allocation3], 4294967040 }
0x35cd   :  { %6184 = dma.done.wait [#allocation5], 64  }
0x35ce   :  { %6185 = vsyncadd [#allocation5], 4294967232 }
0x35cf   :  { %4682 = vsyncpa [#allocation3], 1 }
0x35d0   :  { %4683 = vsyncpa [#allocation5], 1 }

</bundles_post_ra>
